<compile_context>
chip_gen: v5e
topology: v5e:2x2
jax: 0.10.0
libtpu: 0.0.40
codegen_flags: <defaults>
</compile_context>

<pallas_src>
import jax
import jax.numpy as jnp
from jax.experimental import pallas as pl
from jax.experimental.pallas import tpu as pltpu

STATE_DIM = 11
ACTION_DIM = 5
HIDDEN_DIMS = (128, 256, 128)
LN_EPS = 1e-5

TILE_B = 128        # batch tile (multiple of 8 sublanes / 128 MXU rows)
OUT_PAD = 128       # lane-dense output width (Q-values live in lanes [0, ACTION_DIM))
VEC_ROWS = 10       # packed small-vector slab rows
VEC_W = 256         # packed small-vector slab width (widest hidden dim)


def _layernorm(x, gamma, beta):
    # PyTorch nn.LayerNorm: biased variance, eps inside the sqrt.
    mu = jnp.mean(x, axis=-1, keepdims=True)
    var = jnp.mean((x - mu) * (x - mu), axis=-1, keepdims=True)
    return (x - mu) * jax.lax.rsqrt(var + LN_EPS) * gamma + beta


# -----------------------------------------------------------------------------
# Kernel
# -----------------------------------------------------------------------------
def dqn_kernel(state_ref, w0_ref, w1_ref, w2_ref, w3_ref, vec_ref, out_ref):
    x = state_ref[...].astype(jnp.float32)                       # (TB, 11)

    # input LayerNorm (affine folded into W0/b0 offline): only mean/var/rsqrt here
    mu = jnp.mean(x, axis=-1, keepdims=True)
    var = jnp.mean((x - mu) * (x - mu), axis=-1, keepdims=True)
    xn = (x - mu) * jax.lax.rsqrt(var + LN_EPS)

    # hidden block 0: Linear -> ReLU -> LayerNorm  (Dropout = identity in eval)
    h = jnp.dot(xn, w0_ref[...], preferred_element_type=jnp.float32) + vec_ref[0:1, :128]
    h = jnp.maximum(h, 0.0)
    h = _layernorm(h, vec_ref[1:2, :128], vec_ref[2:3, :128])

    # hidden block 1
    h = jnp.dot(h, w1_ref[...], preferred_element_type=jnp.float32) + vec_ref[3:4, :256]
    h = jnp.maximum(h, 0.0)
    h = _layernorm(h, vec_ref[4:5, :256], vec_ref[5:6, :256])

    # hidden block 2
    h = jnp.dot(h, w2_ref[...], preferred_element_type=jnp.float32) + vec_ref[6:7, :128]
    h = jnp.maximum(h, 0.0)
    h = _layernorm(h, vec_ref[7:8, :128], vec_ref[8:9, :128])

    # output head -> Q-values (lane-dense: 128 lanes, only first ACTION_DIM valid)
    q = jnp.dot(h, w3_ref[...], preferred_element_type=jnp.float32) + vec_ref[9:10, :128]
    out_ref[...] = q.astype(out_ref.dtype)


# -----------------------------------------------------------------------------
# Parameter prep (done once, outside the kernel)
# -----------------------------------------------------------------------------
def pack_params(params):
    """Fold input-LN affine into W0/b0, pad output head to 128 lanes, and pack all
    small vectors into a single (10, 256) slab."""
    (lnin_g, lnin_b,
     w0, b0, g0, be0,
     w1, b1, g1, be1,
     w2, b2, g2, be2,
     w3, b3) = params

    # fold:  LN(x)*g+b  then  @W0+b0   ==   xn @ (g[:,None]*W0) + (b @ W0 + b0)
    w0f = lnin_g.reshape(-1, 1) * w0                              # (11, 128)
    b0f = lnin_b.reshape(1, -1) @ w0 + b0                         # (1, 128)

    # pad output head to 128 lanes (zero columns beyond ACTION_DIM)
    w3p = jnp.zeros((HIDDEN_DIMS[-1], OUT_PAD), jnp.float32).at[:, :ACTION_DIM].set(w3)
    b3p = jnp.zeros((1, OUT_PAD), jnp.float32).at[:, :ACTION_DIM].set(b3.reshape(1, -1))

    def row(v):
        v = v.reshape(-1).astype(jnp.float32)
        return jnp.zeros((VEC_W,), jnp.float32).at[: v.shape[0]].set(v)

    vec = jnp.stack([row(b0f), row(g0), row(be0),
                     row(b1), row(g1), row(be1),
                     row(b2), row(g2), row(be2),
                     row(b3p)])                                   # (10, 256)
    return (w0f.astype(jnp.float32),
            w1.astype(jnp.float32),
            w2.astype(jnp.float32),
            w3p, vec)


# -----------------------------------------------------------------------------
# Wrapper
# -----------------------------------------------------------------------------
@jax.jit
def double_dqn_forward(state, packed):
    """Forward pass of DoubleDQNModel (policy network) as one Pallas kernel."""
    w0f, w1, w2, w3p, vec = packed
    B = state.shape[0]
    num_tiles = pl.cdiv(B, TILE_B)
    Bp = num_tiles * TILE_B
    if Bp != B:
        state = jnp.pad(state, ((0, Bp - B), (0, 0)))

    out = pl.pallas_call(
        dqn_kernel,
        out_shape=jax.ShapeDtypeStruct((Bp, OUT_PAD), jnp.float32),
        grid=(num_tiles,),
        in_specs=[
            pl.BlockSpec((TILE_B, STATE_DIM), lambda i: (i, 0)),          # state (tiled)
            pl.BlockSpec((STATE_DIM, HIDDEN_DIMS[0]), lambda i: (0, 0)),  # W0 (resident)
            pl.BlockSpec((HIDDEN_DIMS[0], HIDDEN_DIMS[1]), lambda i: (0, 0)),
            pl.BlockSpec((HIDDEN_DIMS[1], HIDDEN_DIMS[2]), lambda i: (0, 0)),
            pl.BlockSpec((HIDDEN_DIMS[2], OUT_PAD), lambda i: (0, 0)),    # W3 padded
            pl.BlockSpec((VEC_ROWS, VEC_W), lambda i: (0, 0)),            # packed vectors
        ],
        out_specs=pl.BlockSpec((TILE_B, OUT_PAD), lambda i: (i, 0)),
        compiler_params=pltpu.CompilerParams(dimension_semantics=("parallel",)),
    )(state, w0f, w1, w2, w3p, vec)

    # drop batch padding and the lane padding beyond ACTION_DIM
    return out[:B, :ACTION_DIM]


# -----------------------------------------------------------------------------
# Init + pure-JAX reference
# -----------------------------------------------------------------------------
def xavier_uniform(key, fan_in, fan_out):
    bound = jnp.sqrt(6.0 / (fan_in + fan_out))
    # PyTorch weight is (out, in); we store the transpose (in, out) directly.
    return jax.random.uniform(
        key, (fan_in, fan_out), minval=-bound, maxval=bound, dtype=jnp.float32
    )


def init_params(key):
    """Matches DQNModel._initialize_weights (Xavier W, zero b, LN gamma=1 / beta=0).
    policy_net == target_net after update_target_network, so one set covers both."""
    dims = (STATE_DIM,) + HIDDEN_DIMS + (ACTION_DIM,)
    keys = jax.random.split(key, len(dims) - 1)

    params = []
    params.append(jnp.ones((1, STATE_DIM), jnp.float32))   # input LN gamma
    params.append(jnp.zeros((1, STATE_DIM), jnp.float32))  # input LN beta
    for i in range(len(HIDDEN_DIMS)):
        fi, fo = dims[i], dims[i + 1]
        params.append(xavier_uniform(keys[i], fi, fo))     # W (in, out)
        params.append(jnp.zeros((1, fo), jnp.float32))     # b
        params.append(jnp.ones((1, fo), jnp.float32))      # LN gamma
        params.append(jnp.zeros((1, fo), jnp.float32))     # LN beta
    fi, fo = dims[-2], dims[-1]
    params.append(xavier_uniform(keys[-1], fi, fo))        # output W
    params.append(jnp.zeros((1, fo), jnp.float32))         # output b
    return tuple(params)


def reference_forward(state, params):
    """Pure-JAX reference matching the PyTorch module (eval mode)."""
    (lnin_g, lnin_b,
     w0, b0, g0, be0,
     w1, b1, g1, be1,
     w2, b2, g2, be2,
     w3, b3) = params
    x = _layernorm(state.astype(jnp.float32), lnin_g, lnin_b)
    for (w, b, g, be) in ((w0, b0, g0, be0), (w1, b1, g1, be1), (w2, b2, g2, be2)):
        x = jnp.maximum(x @ w + b, 0.0)
        x = _layernorm(x, g, be)
    return x @ w3 + b3


if __name__ == "__main__":
    key = jax.random.PRNGKey(0)
    k_state, k_params, k_state2 = jax.random.split(key, 3)

    params = init_params(k_params)
    packed = pack_params(params)

    # small batch (pads to one 128-row tile)
    B = 8
    state = jax.random.normal(k_state, (B, STATE_DIM), dtype=jnp.float32)
    q = jax.block_until_ready(double_dqn_forward(state, packed))
    q_ref = reference_forward(state, params)
    assert q.shape == (B, ACTION_DIM)
    assert jnp.allclose(q, q_ref, atol=1e-4, rtol=1e-4)

    # multi-tile batch (2 grid steps + batch padding)
    B2 = 200
    state2 = jax.random.normal(k_state2, (B2, STATE_DIM), dtype=jnp.float32)
    q2 = jax.block_until_ready(double_dqn_forward(state2, packed))
    q2_ref = reference_forward(state2, params)
    assert q2.shape == (B2, ACTION_DIM)
    assert jnp.allclose(q2, q2_ref, atol=1e-4, rtol=1e-4)

    # TODO(synk): training-mode Dropout (random masking/scaling) is not implemented;
    # kernel reproduces eval-mode (inference) forward semantics.
    print("KERNEL_OK")
</pallas_src>

<mosaic_0001>
module attributes {stable_mosaic.version = 11 : i64} {
  func.func @dqn_kernel(%arg0: i32, %arg1: memref<128x11xf32, #tpu.memory_space<vmem>>, %arg2: memref<11x128xf32, #tpu.memory_space<vmem>>, %arg3: memref<128x256xf32, #tpu.memory_space<vmem>>, %arg4: memref<256x128xf32, #tpu.memory_space<vmem>>, %arg5: memref<128x128xf32, #tpu.memory_space<vmem>>, %arg6: memref<10x256xf32, #tpu.memory_space<vmem>>, %arg7: memref<128x128xf32, #tpu.memory_space<vmem>>) attributes {dimension_semantics = [#tpu.dimension_semantics<parallel>], iteration_bounds = array<i64: 1>, scalar_prefetch = 0 : i64, scratch_operands = 0 : i64, tpu.core_type = #tpu.core_type<tc>, window_params = [{transform_indices = @transform_0, window_bounds = array<i64: 128, 11>}, {pipeline_mode = #tpu.pipeline_mode<synchronous>, transform_indices = @transform_1, window_bounds = array<i64: 11, 128>}, {pipeline_mode = #tpu.pipeline_mode<synchronous>, transform_indices = @transform_2, window_bounds = array<i64: 128, 256>}, {pipeline_mode = #tpu.pipeline_mode<synchronous>, transform_indices = @transform_3, window_bounds = array<i64: 256, 128>}, {pipeline_mode = #tpu.pipeline_mode<synchronous>, transform_indices = @transform_4, window_bounds = array<i64: 128, 128>}, {pipeline_mode = #tpu.pipeline_mode<synchronous>, transform_indices = @transform_5, window_bounds = array<i64: 10, 256>}, {transform_indices = @transform_6, window_bounds = array<i64: 128, 128>}]} {
    %c0 = arith.constant 0 : index
    %c0_0 = arith.constant 0 : index
    %0 = vector.load %arg1[%c0, %c0_0] : memref<128x11xf32, #tpu.memory_space<vmem>>, vector<128x11xf32>
    %cst = arith.constant dense<0.000000e+00> : vector<128xf32>
    %1 = vector.multi_reduction <add>, %0, %cst [1] : vector<128x11xf32> to vector<128xf32>
    %2 = vector.shape_cast %1 : vector<128xf32> to vector<128x1xf32>
    %cst_1 = arith.constant 1.100000e+01 : f32
    %3 = vector.broadcast %cst_1 : f32 to vector<128x1xf32>
    %4 = arith.divf %2, %3 : vector<128x1xf32>
    %5 = vector.broadcast %4 : vector<128x1xf32> to vector<128x11xf32>
    %6 = arith.subf %0, %5 : vector<128x11xf32>
    %7 = vector.broadcast %4 : vector<128x1xf32> to vector<128x11xf32>
    %8 = arith.subf %0, %7 : vector<128x11xf32>
    %9 = arith.mulf %6, %8 : vector<128x11xf32>
    %cst_2 = arith.constant dense<0.000000e+00> : vector<128xf32>
    %10 = vector.multi_reduction <add>, %9, %cst_2 [1] : vector<128x11xf32> to vector<128xf32>
    %11 = vector.shape_cast %10 : vector<128xf32> to vector<128x1xf32>
    %cst_3 = arith.constant 1.100000e+01 : f32
    %12 = vector.broadcast %cst_3 : f32 to vector<128x1xf32>
    %13 = arith.divf %11, %12 : vector<128x1xf32>
    %14 = vector.broadcast %4 : vector<128x1xf32> to vector<128x11xf32>
    %15 = arith.subf %0, %14 : vector<128x11xf32>
    %cst_4 = arith.constant 9.99999974E-6 : f32
    %16 = vector.broadcast %cst_4 : f32 to vector<128x1xf32>
    %17 = arith.addf %13, %16 : vector<128x1xf32>
    %18 = math.rsqrt %17 : vector<128x1xf32>
    %19 = vector.broadcast %18 : vector<128x1xf32> to vector<128x11xf32>
    %20 = arith.mulf %15, %19 : vector<128x11xf32>
    %c0_5 = arith.constant 0 : index
    %c0_6 = arith.constant 0 : index
    %21 = vector.load %arg2[%c0_5, %c0_6] : memref<11x128xf32, #tpu.memory_space<vmem>>, vector<11x128xf32>
    %cst_7 = arith.constant dense<0.000000e+00> : vector<128x128xf32>
    %22 = tpu.matmul %20, %21, %cst_7 {dimension_numbers = #tpu.dot_dimension_numbers<[1], [0], [0], [1], [0, 0, 1, 1], [], []>} : vector<128x11xf32>, vector<11x128xf32>, vector<128x128xf32> -> vector<128x128xf32>
    %c0_8 = arith.constant 0 : index
    %c0_9 = arith.constant 0 : index
    %23 = vector.load %arg6[%c0_8, %c0_9] : memref<10x256xf32, #tpu.memory_space<vmem>>, vector<1x128xf32>
    %24 = vector.broadcast %23 : vector<1x128xf32> to vector<128x128xf32>
    %25 = arith.addf %22, %24 : vector<128x128xf32>
    %cst_10 = arith.constant 0.000000e+00 : f32
    %26 = vector.broadcast %cst_10 : f32 to vector<128x128xf32>
    %27 = arith.maximumf %25, %26 : vector<128x128xf32>
    %c1 = arith.constant 1 : index
    %c0_11 = arith.constant 0 : index
    %28 = vector.load %arg6[%c1, %c0_11] : memref<10x256xf32, #tpu.memory_space<vmem>>, vector<1x128xf32>
    %c2 = arith.constant 2 : index
    %c0_12 = arith.constant 0 : index
    %29 = vector.load %arg6[%c2, %c0_12] : memref<10x256xf32, #tpu.memory_space<vmem>>, vector<1x128xf32>
    %cst_13 = arith.constant dense<0.000000e+00> : vector<128xf32>
    %30 = vector.multi_reduction <add>, %27, %cst_13 [1] : vector<128x128xf32> to vector<128xf32>
    %31 = vector.shape_cast %30 : vector<128xf32> to vector<128x1xf32>
    %cst_14 = arith.constant 1.280000e+02 : f32
    %32 = vector.broadcast %cst_14 : f32 to vector<128x1xf32>
    %33 = arith.divf %31, %32 : vector<128x1xf32>
    %34 = vector.broadcast %33 : vector<128x1xf32> to vector<128x128xf32>
    %35 = arith.subf %27, %34 : vector<128x128xf32>
    %36 = vector.broadcast %33 : vector<128x1xf32> to vector<128x128xf32>
    %37 = arith.subf %27, %36 : vector<128x128xf32>
    %38 = arith.mulf %35, %37 : vector<128x128xf32>
    %cst_15 = arith.constant dense<0.000000e+00> : vector<128xf32>
    %39 = vector.multi_reduction <add>, %38, %cst_15 [1] : vector<128x128xf32> to vector<128xf32>
    %40 = vector.shape_cast %39 : vector<128xf32> to vector<128x1xf32>
    %cst_16 = arith.constant 1.280000e+02 : f32
    %41 = vector.broadcast %cst_16 : f32 to vector<128x1xf32>
    %42 = arith.divf %40, %41 : vector<128x1xf32>
    %43 = vector.broadcast %33 : vector<128x1xf32> to vector<128x128xf32>
    %44 = arith.subf %27, %43 : vector<128x128xf32>
    %cst_17 = arith.constant 9.99999974E-6 : f32
    %45 = vector.broadcast %cst_17 : f32 to vector<128x1xf32>
    %46 = arith.addf %42, %45 : vector<128x1xf32>
    %47 = math.rsqrt %46 : vector<128x1xf32>
    %48 = vector.broadcast %47 : vector<128x1xf32> to vector<128x128xf32>
    %49 = arith.mulf %44, %48 : vector<128x128xf32>
    %50 = vector.broadcast %28 : vector<1x128xf32> to vector<128x128xf32>
    %51 = arith.mulf %49, %50 : vector<128x128xf32>
    %52 = vector.broadcast %29 : vector<1x128xf32> to vector<128x128xf32>
    %53 = arith.addf %51, %52 : vector<128x128xf32>
    %c0_18 = arith.constant 0 : index
    %c0_19 = arith.constant 0 : index
    %54 = vector.load %arg3[%c0_18, %c0_19] : memref<128x256xf32, #tpu.memory_space<vmem>>, vector<128x256xf32>
    %cst_20 = arith.constant dense<0.000000e+00> : vector<128x256xf32>
    %55 = tpu.matmul %53, %54, %cst_20 {dimension_numbers = #tpu.dot_dimension_numbers<[1], [0], [0], [1], [0, 0, 1, 1], [], []>} : vector<128x128xf32>, vector<128x256xf32>, vector<128x256xf32> -> vector<128x256xf32>
    %c3 = arith.constant 3 : index
    %c0_21 = arith.constant 0 : index
    %56 = vector.load %arg6[%c3, %c0_21] : memref<10x256xf32, #tpu.memory_space<vmem>>, vector<1x256xf32>
    %57 = vector.broadcast %56 : vector<1x256xf32> to vector<128x256xf32>
    %58 = arith.addf %55, %57 : vector<128x256xf32>
    %cst_22 = arith.constant 0.000000e+00 : f32
    %59 = vector.broadcast %cst_22 : f32 to vector<128x256xf32>
    %60 = arith.maximumf %58, %59 : vector<128x256xf32>
    %c4 = arith.constant 4 : index
    %c0_23 = arith.constant 0 : index
    %61 = vector.load %arg6[%c4, %c0_23] : memref<10x256xf32, #tpu.memory_space<vmem>>, vector<1x256xf32>
    %c5 = arith.constant 5 : index
    %c0_24 = arith.constant 0 : index
    %62 = vector.load %arg6[%c5, %c0_24] : memref<10x256xf32, #tpu.memory_space<vmem>>, vector<1x256xf32>
    %cst_25 = arith.constant dense<0.000000e+00> : vector<128xf32>
    %63 = vector.multi_reduction <add>, %60, %cst_25 [1] : vector<128x256xf32> to vector<128xf32>
    %64 = vector.shape_cast %63 : vector<128xf32> to vector<128x1xf32>
    %cst_26 = arith.constant 2.560000e+02 : f32
    %65 = vector.broadcast %cst_26 : f32 to vector<128x1xf32>
    %66 = arith.divf %64, %65 : vector<128x1xf32>
    %67 = vector.broadcast %66 : vector<128x1xf32> to vector<128x256xf32>
    %68 = arith.subf %60, %67 : vector<128x256xf32>
    %69 = vector.broadcast %66 : vector<128x1xf32> to vector<128x256xf32>
    %70 = arith.subf %60, %69 : vector<128x256xf32>
    %71 = arith.mulf %68, %70 : vector<128x256xf32>
    %cst_27 = arith.constant dense<0.000000e+00> : vector<128xf32>
    %72 = vector.multi_reduction <add>, %71, %cst_27 [1] : vector<128x256xf32> to vector<128xf32>
    %73 = vector.shape_cast %72 : vector<128xf32> to vector<128x1xf32>
    %cst_28 = arith.constant 2.560000e+02 : f32
    %74 = vector.broadcast %cst_28 : f32 to vector<128x1xf32>
    %75 = arith.divf %73, %74 : vector<128x1xf32>
    %76 = vector.broadcast %66 : vector<128x1xf32> to vector<128x256xf32>
    %77 = arith.subf %60, %76 : vector<128x256xf32>
    %cst_29 = arith.constant 9.99999974E-6 : f32
    %78 = vector.broadcast %cst_29 : f32 to vector<128x1xf32>
    %79 = arith.addf %75, %78 : vector<128x1xf32>
    %80 = math.rsqrt %79 : vector<128x1xf32>
    %81 = vector.broadcast %80 : vector<128x1xf32> to vector<128x256xf32>
    %82 = arith.mulf %77, %81 : vector<128x256xf32>
    %83 = vector.broadcast %61 : vector<1x256xf32> to vector<128x256xf32>
    %84 = arith.mulf %82, %83 : vector<128x256xf32>
    %85 = vector.broadcast %62 : vector<1x256xf32> to vector<128x256xf32>
    %86 = arith.addf %84, %85 : vector<128x256xf32>
    %c0_30 = arith.constant 0 : index
    %c0_31 = arith.constant 0 : index
    %87 = vector.load %arg4[%c0_30, %c0_31] : memref<256x128xf32, #tpu.memory_space<vmem>>, vector<256x128xf32>
    %cst_32 = arith.constant dense<0.000000e+00> : vector<128x128xf32>
    %88 = tpu.matmul %86, %87, %cst_32 {dimension_numbers = #tpu.dot_dimension_numbers<[1], [0], [0], [1], [0, 0, 1, 1], [], []>} : vector<128x256xf32>, vector<256x128xf32>, vector<128x128xf32> -> vector<128x128xf32>
    %c6 = arith.constant 6 : index
    %c0_33 = arith.constant 0 : index
    %89 = vector.load %arg6[%c6, %c0_33] : memref<10x256xf32, #tpu.memory_space<vmem>>, vector<1x128xf32>
    %90 = vector.broadcast %89 : vector<1x128xf32> to vector<128x128xf32>
    %91 = arith.addf %88, %90 : vector<128x128xf32>
    %cst_34 = arith.constant 0.000000e+00 : f32
    %92 = vector.broadcast %cst_34 : f32 to vector<128x128xf32>
    %93 = arith.maximumf %91, %92 : vector<128x128xf32>
    %c7 = arith.constant 7 : index
    %c0_35 = arith.constant 0 : index
    %94 = vector.load %arg6[%c7, %c0_35] : memref<10x256xf32, #tpu.memory_space<vmem>>, vector<1x128xf32>
    %c8 = arith.constant 8 : index
    %c0_36 = arith.constant 0 : index
    %95 = vector.load %arg6[%c8, %c0_36] : memref<10x256xf32, #tpu.memory_space<vmem>>, vector<1x128xf32>
    %cst_37 = arith.constant dense<0.000000e+00> : vector<128xf32>
    %96 = vector.multi_reduction <add>, %93, %cst_37 [1] : vector<128x128xf32> to vector<128xf32>
    %97 = vector.shape_cast %96 : vector<128xf32> to vector<128x1xf32>
    %cst_38 = arith.constant 1.280000e+02 : f32
    %98 = vector.broadcast %cst_38 : f32 to vector<128x1xf32>
    %99 = arith.divf %97, %98 : vector<128x1xf32>
    %100 = vector.broadcast %99 : vector<128x1xf32> to vector<128x128xf32>
    %101 = arith.subf %93, %100 : vector<128x128xf32>
    %102 = vector.broadcast %99 : vector<128x1xf32> to vector<128x128xf32>
    %103 = arith.subf %93, %102 : vector<128x128xf32>
    %104 = arith.mulf %101, %103 : vector<128x128xf32>
    %cst_39 = arith.constant dense<0.000000e+00> : vector<128xf32>
    %105 = vector.multi_reduction <add>, %104, %cst_39 [1] : vector<128x128xf32> to vector<128xf32>
    %106 = vector.shape_cast %105 : vector<128xf32> to vector<128x1xf32>
    %cst_40 = arith.constant 1.280000e+02 : f32
    %107 = vector.broadcast %cst_40 : f32 to vector<128x1xf32>
    %108 = arith.divf %106, %107 : vector<128x1xf32>
    %109 = vector.broadcast %99 : vector<128x1xf32> to vector<128x128xf32>
    %110 = arith.subf %93, %109 : vector<128x128xf32>
    %cst_41 = arith.constant 9.99999974E-6 : f32
    %111 = vector.broadcast %cst_41 : f32 to vector<128x1xf32>
    %112 = arith.addf %108, %111 : vector<128x1xf32>
    %113 = math.rsqrt %112 : vector<128x1xf32>
    %114 = vector.broadcast %113 : vector<128x1xf32> to vector<128x128xf32>
    %115 = arith.mulf %110, %114 : vector<128x128xf32>
    %116 = vector.broadcast %94 : vector<1x128xf32> to vector<128x128xf32>
    %117 = arith.mulf %115, %116 : vector<128x128xf32>
    %118 = vector.broadcast %95 : vector<1x128xf32> to vector<128x128xf32>
    %119 = arith.addf %117, %118 : vector<128x128xf32>
    %c0_42 = arith.constant 0 : index
    %c0_43 = arith.constant 0 : index
    %120 = vector.load %arg5[%c0_42, %c0_43] : memref<128x128xf32, #tpu.memory_space<vmem>>, vector<128x128xf32>
    %cst_44 = arith.constant dense<0.000000e+00> : vector<128x128xf32>
    %121 = tpu.matmul %119, %120, %cst_44 {dimension_numbers = #tpu.dot_dimension_numbers<[1], [0], [0], [1], [0, 0, 1, 1], [], []>} : vector<128x128xf32>, vector<128x128xf32>, vector<128x128xf32> -> vector<128x128xf32>
    %c9 = arith.constant 9 : index
    %c0_45 = arith.constant 0 : index
    %122 = vector.load %arg6[%c9, %c0_45] : memref<10x256xf32, #tpu.memory_space<vmem>>, vector<1x128xf32>
    %123 = vector.broadcast %122 : vector<1x128xf32> to vector<128x128xf32>
    %124 = arith.addf %121, %123 : vector<128x128xf32>
    %c0_46 = arith.constant 0 : index
    %c0_47 = arith.constant 0 : index
    %125 = vector.load %arg7[%c0_46, %c0_47] : memref<128x128xf32, #tpu.memory_space<vmem>>, vector<128x128xf32>
    tpu.vector_store %arg7[%c0_46, %c0_47], %124 {strides = array<i32>} : memref<128x128xf32, #tpu.memory_space<vmem>>, vector<128x128xf32>,
    return
  }
  func.func @transform_0(%arg0: i32) -> (i32, i32) {
    %c0_i32 = arith.constant 0 : i32
    %c0_i32_0 = arith.constant 0 : i32
    return %arg0, %c0_i32 : i32, i32
  }
  func.func @transform_1(%arg0: i32) -> (i32, i32) {
    %c0_i32 = arith.constant 0 : i32
    %c0_i32_0 = arith.constant 0 : i32
    %c0_i32_1 = arith.constant 0 : i32
    return %c0_i32, %c0_i32_0 : i32, i32
  }
  func.func @transform_2(%arg0: i32) -> (i32, i32) {
    %c0_i32 = arith.constant 0 : i32
    %c0_i32_0 = arith.constant 0 : i32
    %c0_i32_1 = arith.constant 0 : i32
    return %c0_i32, %c0_i32_0 : i32, i32
  }
  func.func @transform_3(%arg0: i32) -> (i32, i32) {
    %c0_i32 = arith.constant 0 : i32
    %c0_i32_0 = arith.constant 0 : i32
    %c0_i32_1 = arith.constant 0 : i32
    return %c0_i32, %c0_i32_0 : i32, i32
  }
  func.func @transform_4(%arg0: i32) -> (i32, i32) {
    %c0_i32 = arith.constant 0 : i32
    %c0_i32_0 = arith.constant 0 : i32
    %c0_i32_1 = arith.constant 0 : i32
    return %c0_i32, %c0_i32_0 : i32, i32
  }
  func.func @transform_5(%arg0: i32) -> (i32, i32) {
    %c0_i32 = arith.constant 0 : i32
    %c0_i32_0 = arith.constant 0 : i32
    %c0_i32_1 = arith.constant 0 : i32
    return %c0_i32, %c0_i32_0 : i32, i32
  }
  func.func @transform_6(%arg0: i32) -> (i32, i32) {
    %c0_i32 = arith.constant 0 : i32
    %c0_i32_0 = arith.constant 0 : i32
    return %arg0, %c0_i32 : i32, i32
  }
}

</mosaic_0001>

<bundles_post_ra>
// kernel: double_dqn_forward.1
= control target key start
LH: loop header
LB: loop body
LE: loop exit
PB: predicated region body
PF: predicated region fallthrough
CT: control target
= control target key end

     0   :  { %11 = vsyncpa [#allocation3], 0  ;;  %s4221_s0 = inlined_call_operand.vmem [shape: f32[128,11], index: 0, kind: input, shape index: {}]   ;;  %s4222_s1 = inlined_call_operand.hbm [shape: f32[11,128], index: 1, kind: input, shape index: {}]   ;;  %s4223_s2 = inlined_call_operand.hbm [shape: f32[128,256], index: 2, kind: input, shape index: {}]   ;;  %s4224_s3 = inlined_call_operand.hbm [shape: f32[256,128], index: 3, kind: input, shape index: {}]   ;;  %s4225_s4 = inlined_call_operand.vmem [shape: f32[128,128], index: 4, kind: input, shape index: {}]   ;;  %s4226_s5 = inlined_call_operand.hbm [shape: f32[10,256], index: 5, kind: input, shape index: {}]   ;;  %s4227_s6 = inlined_call_operand.vmem [shape: f32[128,128], index: 6, kind: output, shape index: {}]  }
   0x1   :  { %12 = vsyncpa [#allocation5], 0  ;;  %s33_s23 = sshll.u32 %s4223_s2, 4  ;;  %s34_s23 = int_to_ptr.hbm [resolvable:$true] %s33_s23 }
   0x2   :  { %13 = vsyncpa [#allocation8], 0  ;;  %s2581_s24 = smov [#allocation4]   ;;  %s20_s28 = sshll.u32 %s4222_s1, 4  ;;  %s21_s28 = int_to_ptr.hbm [resolvable:$true] %s20_s28 }
   0x3   :  { %s35_s25 = sshll.u32 %s2581_s24, 4  ;;  %s2582_s29 = smov 256   ;;  %s36_s25 = int_to_ptr.vmem [resolvable:$true] %s35_s25 }
   0x4   :  { %s2583_s30 = smov 16   ;;  %s2584_s7 = smov [#allocation2]  }
   0x5   :  { %41 = dma.hbm_to_vmem [thread:$0]  %s34_s23, 4096, %s36_s25, [#allocation5], %s2582_s29, %s2582_s29, %s2583_s30  }
   0x6   :  { %s22_s8 = sshll.u32 %s2584_s7, 4  ;;  %s2585_s9 = smov 128   ;;  %s23_s8 = int_to_ptr.vmem [resolvable:$true] %s22_s8 }
   0x7   :  { %s2586_s10 = smov 8   ;;  %s46_s12 = sshll.u32 %s4224_s3, 4  ;;  %s47_s12 = int_to_ptr.hbm [resolvable:$true] %s46_s12 }
   0x8   :  { %28 = dma.hbm_to_vmem [thread:$0]  %s21_s28, 256, %s23_s8, [#allocation3], %s2585_s9, %s2585_s9, %s2586_s10  }
   0x9   :  { %s2587_s13 = smov [#allocation6]   ;;  %s61_s16 = sshll.u32 %s4226_s5, 4  ;;  %s62_s16 = int_to_ptr.hbm [resolvable:$true] %s61_s16 }
   0xa   :  { %s48_s14 = sshll.u32 %s2587_s13, 4  ;;  %s2588_s17 = smov [#allocation7]   ;;  %s49_s14 = int_to_ptr.vmem [resolvable:$true] %s48_s14 }
   0xb   :  { %54 = dma.hbm_to_vmem [thread:$0]  %s47_s12, 4096, %s49_s14, [#allocation5], %s2585_s9, %s2585_s9, %s2586_s10  }
   0xc   :  { %s63_s18 = sshll.u32 %s2588_s17, 4  ;;  %s64_s18 = int_to_ptr.vmem [resolvable:$true] %s63_s18 }
   0xd   :  { %69 = dma.hbm_to_vmem [thread:$0]  %s62_s16, 512, %s64_s18, [#allocation8], %s2582_s29, %s2582_s29, %s2583_s30  }
   0xe   :  { %2575 = dma.done.wait [#allocation3], 256  }
   0xf   :  { %2576 = vsyncadd [#allocation3], 4294967040 }
  0x10   :  { %2577 = dma.done.wait [#allocation5], 8192  }
  0x11   :  { %2578 = vsyncadd [#allocation5], 4294959104 }
  0x12   :  { %2579 = dma.done.wait [#allocation8], 512  }
  0x13   :  { %2580 = vsyncadd [#allocation8], 4294966784  ;;  %vm102_vm0 = vcmask 89088   ;;  %v88_v0 = vld [vmem:[%s4221_s0 + $0x10] sm:$0xff]  ;;  %v86_v1 = vld [vmem:[%s4221_s0] sm:$0xff]  ;;  %v2589_v14 = vmov 11.0  }
  0x14   :  { %v109_v2 = vsel %vm102_vm0, %v88_v0, 0.0  ;;  %v103_v3 = vsel %vm102_vm0, %v86_v1, 0.0  ;;  %v90_v4 = vld [vmem:[%s4221_s0 + $0x20] sm:$0xff]  ;;  %v87_v6 = vld [vmem:[%s4221_s0 + $0x8] sm:$0xff]  ;;  %v89_v7 = vld [vmem:[%s4221_s0 + $0x18] sm:$0xff]  ;;  %2345 = vrcp.f32 %v2589_v14  ;;  %vm513_vm2 = vcmask 1042432  }
  0x15   :  { %110 = vadd.xlane.f32.xlu1 %v109_v2  ;;  %104 = vadd.xlane.f32.xlu0 %v103_v3  ;;  %v115_v5 = vsel %vm102_vm0, %v90_v4, 0.0  ;;  %v2660_v8 = vld [vmem:[%s4221_s0 + $0x28] sm:$0xff]  ;;  %v106_v9 = vsel %vm102_vm0, %v87_v6, 0.0  ;;  %v112_v10 = vsel %vm102_vm0, %v89_v7, 0.0  ;;  %v92_v12 = vld [vmem:[%s4221_s0 + $0x30] sm:$0xff]  ;;  %v93_v36 = vld [vmem:[%s4221_s0 + $0x38] sm:$0xff] }
  0x16   :  { %116 = vadd.xlane.f32.xlu2 %v115_v5  ;;  %v118_v11 = vsel %vm102_vm0, %v2660_v8, 0.0  ;;  %v121_v13 = vsel %vm102_vm0, %v92_v12, 0.0  ;;  %v95_v35 = vld [vmem:[%s4221_s0 + $0x48] sm:$0xff]  ;;  %v124_v40 = vsel %vm102_vm0, %v93_v36, 0.0  ;;  %v2707_v46 = vld [vmem:[%s4221_s0 + $0x58] sm:$0xff]  ;;  %v2712_v47 = vld [vmem:[%s4221_s0 + $0x40] sm:$0xff] }
  0x17   :  { %v130_v38 = vsel %vm102_vm0, %v95_v35, 0.0  ;;  %v136_v50 = vsel %vm102_vm0, %v2707_v46, 0.0  ;;  %v127_v51 = vsel %vm102_vm0, %v2712_v47, 0.0  ;;  %v2728_v57 = vld [vmem:[%s4221_s0 + $0x50] sm:$0xff]  ;;  %v463_v2 = vld [vmem:[#allocation2 + $0x8] sm:$0x7] }
  0x18   :  { %v133_v61 = vsel %vm102_vm0, %v2728_v57, 0.0  ;;  %2283 = vmatpush.msk.msra.mxu0 %vm513_vm2, %v463_v2  ;;  %2300 = vmatpush.msk.msra.mxu3 %vm513_vm2, %v463_v2  ;;  %v462_v3 = vld [vmem:[#allocation2] sm:$0xff] }
  0x1a   :  { %v2346_v15 = vpop.eup %2345  ;;  %532 = vmatpush.msra.mxu0 %v462_v3  ;;  %2301 = vmatpush.msra.mxu3 %v462_v3 }
  0x1b   :  { %v152_v16 = vmul.f32 11.0, %v2346_v15  ;;  %vm156_vm1 = vweird.f32 %v2346_v15 }
  0x1d   :  { %107 = vadd.xlane.f32.xlu0 %v106_v9  ;;  %113 = vadd.xlane.f32.xlu1 %v112_v10  ;;  %v153_v17 = vsub.f32 1.0, %v152_v16 }
  0x1e   :  { %119 = vadd.xlane.f32.xlu2 %v118_v11 }
  0x1f   :  { %v154_v18 = vmul.f32 %v2346_v15, %v153_v17 }
  0x21   :  { %v155_v19 = vadd.f32 %v2346_v15, %v154_v18 }
  0x23   :  { %v2670_v20 = vsel %vm156_vm1, %v2346_v15, %v155_v19 }
  0x25   :  { %122 = vadd.xlane.f32.xlu1 %v121_v13 }
  0x88   :  { %v111_v21 = vpop.xlane.xlu1 %110  ;;  %v105_v22 = vpop.xlane.xlu0 %104 }
  0x89   :  { %v160_v23 = vmul.f32 %v2670_v20, %v111_v21  ;;  %v158_v24 = vmul.f32 %v2670_v20, %v105_v22  ;;  %v117_v42 = vpop.xlane.xlu2 %116 }
  0x8a   :  { %v162_v44 = vmul.f32 %v2670_v20, %v117_v42 }
  0x8b   :  { %v2674_v25 = vsub.f32 %v88_v0, %v160_v23  ;;  %v2676_v26 = vsub.f32 %v86_v1, %v158_v24 }
  0x8c   :  { %v2714_v48 = vsub.f32 %v90_v4, %v162_v44 }
  0x8d   :  { %v192_v27 = vmul.f32 %v2674_v25, %v2674_v25  ;;  %v190_v28 = vmul.f32 %v2676_v26, %v2676_v26 }
  0x8e   :  { %v194_v55 = vmul.f32 %v2714_v48, %v2714_v48 }
  0x8f   :  { %v212_v29 = vsel %vm102_vm0, %v192_v27, 0.0  ;;  %v206_v30 = vsel %vm102_vm0, %v190_v28, 0.0 }
  0x90   :  { %213 = vadd.xlane.f32.xlu1 %v212_v29  ;;  %207 = vadd.xlane.f32.xlu0 %v206_v30  ;;  %v108_v31 = vpop.xlane.xlu0 %107  ;;  %v114_v32 = vpop.xlane.xlu1 %113  ;;  %v218_v59 = vsel %vm102_vm0, %v194_v55, 0.0 }
  0x91   :  { %v159_v33 = vmul.f32 %v2670_v20, %v108_v31  ;;  %v161_v34 = vmul.f32 %v2670_v20, %v114_v32  ;;  %v120_v53 = vpop.xlane.xlu2 %119 }
  0x92   :  { %v163_v56 = vmul.f32 %v2670_v20, %v120_v53 }
  0x93   :  { %v2692_v37 = vsub.f32 %v87_v6, %v159_v33  ;;  %v2695_v39 = vsub.f32 %v89_v7, %v161_v34 }
  0x94   :  { %v2734_v60 = vsub.f32 %v2660_v8, %v163_v56 }
  0x95   :  { %v191_v41 = vmul.f32 %v2692_v37, %v2692_v37  ;;  %v193_v45 = vmul.f32 %v2695_v39, %v2695_v39 }
  0x96   :  { %v195_v63 = vmul.f32 %v2734_v60, %v2734_v60 }
  0x97   :  { %v209_v43 = vsel %vm102_vm0, %v191_v41, 0.0  ;;  %v215_v49 = vsel %vm102_vm0, %v193_v45, 0.0 }
  0x98   :  { %131 = vadd.xlane.f32.xlu1 %v130_v38  ;;  %125 = vadd.xlane.f32.xlu0 %v124_v40  ;;  %v123_v52 = vpop.xlane.xlu1 %122  ;;  %v221_v1 = vsel %vm102_vm0, %v195_v63, 0.0  ;;  %v2772_v40 = vld [vmem:[%s4221_s0 + $0x60] sm:$0xff] }
  0x99   :  { %210 = vadd.xlane.f32.xlu2 %v209_v43  ;;  %v164_v54 = vmul.f32 %v2670_v20, %v123_v52 }
  0x9b   :  { %v2730_v58 = vsub.f32 %v92_v12, %v164_v54 }
  0x9d   :  { %v196_v62 = vmul.f32 %v2730_v58, %v2730_v58 }
  0x9f   :  { %v224_v0 = vsel %vm102_vm0, %v196_v62, 0.0 }
  0xa0   :  { %216 = vadd.xlane.f32.xlu0 %v215_v49  ;;  %137 = vadd.xlane.f32.xlu1 %v136_v50  ;;  %v139_v49 = vsel %vm102_vm0, %v2772_v40, 0.0 }
  0xa1   :  { %128 = vadd.xlane.f32.xlu2 %v127_v51 }
  0xa8   :  { %219 = vadd.xlane.f32.xlu0 %v218_v59 }
  0xa9   :  { %134 = vadd.xlane.f32.xlu2 %v133_v61 }
  0xb0   :  { %225 = vadd.xlane.f32.xlu0 %v224_v0 }
  0xb1   :  { %222 = vadd.xlane.f32.xlu2 %v221_v1  ;;  %v2795_v1 = vld [vmem:[%s4221_s0 + $0x78] sm:$0xff] }
 0x103   :  { %v214_v4 = vpop.xlane.xlu1 %213  ;;  %v208_v5 = vpop.xlane.xlu0 %207 }
 0x104   :  { %v256_v6 = vmul.f32 %v214_v4, %v2670_v20  ;;  %v254_v7 = vmul.f32 %v208_v5, %v2670_v20 }
 0x106   :  { %v270_v8 = vadd.f32 1e-05, %v254_v7  ;;  %v2746_v9 = vadd.f32 1e-05, %v256_v6  ;;  %v148_v7 = vsel %vm102_vm0, %v2795_v1, 0.0 }
 0x108   :  { %2347 = vrsqrt.f32 %v270_v8  ;;  %vm292_vm4 = vweird.f32 %v270_v8  ;;  %vm312_vm9 = vweird.f32 %v2746_v9 }
 0x109   :  { %2349 = vrsqrt.f32 %v2746_v9 }
 0x10b   :  { %v132_v10 = vpop.xlane.xlu1 %131  ;;  %v126_v11 = vpop.xlane.xlu0 %125 }
 0x10c   :  { %v167_v12 = vmul.f32 %v2670_v20, %v132_v10  ;;  %v211_v13 = vpop.xlane.xlu2 %210  ;;  %v165_v14 = vmul.f32 %v2670_v20, %v126_v11 }
 0x10d   :  { %v255_v15 = vmul.f32 %v211_v13, %v2670_v20 }
 0x10e   :  { %v2752_v16 = vsub.f32 %v95_v35, %v167_v12  ;;  %v2754_v17 = vsub.f32 %v93_v36, %v165_v14  ;;  %v2348_v18 = vpop.eup %2347 }
 0x10f   :  { %v271_v19 = vadd.f32 1e-05, %v255_v15  ;;  %v287_v21 = vmul.f32 %v2348_v18, %v270_v8  ;;  %v2760_v24 = vpop.eup %2349  ;;  %vm293_vm3 = vweird.f32 %v2348_v18 }
 0x110   :  { %v199_v22 = vmul.f32 %v2752_v16, %v2752_v16  ;;  %v197_v23 = vmul.f32 %v2754_v17, %v2754_v17  ;;  %v307_v35 = vmul.f32 %v2760_v24, %v2746_v9  ;;  %vm294_vm5 = vmor %vm292_vm4, %vm293_vm3  ;;  %vm313_vm10 = vweird.f32 %v2760_v24 }
 0x111   :  { %2351 = vrsqrt.f32 %v271_v19  ;;  %v288_v27 = vmul.f32 %v2348_v18, %v287_v21  ;;  %vm302_vm7 = vweird.f32 %v271_v19  ;;  %vm314_vm11 = vmor %vm312_vm9, %vm313_vm10 }
 0x112   :  { %v233_v28 = vsel %vm102_vm0, %v199_v22, 0.0  ;;  %v227_v29 = vsel %vm102_vm0, %v197_v23, 0.0  ;;  %v308_v50 = vmul.f32 %v2760_v24, %v307_v35 }
 0x113   :  { %234 = vadd.xlane.f32.xlu0 %v233_v28  ;;  %228 = vadd.xlane.f32.xlu1 %v227_v29  ;;  %v217_v30 = vpop.xlane.xlu0 %216  ;;  %v138_v31 = vpop.xlane.xlu1 %137  ;;  %v289_v32 = vmul.f32 0.5, %v288_v27  ;;  %v2821_v27 = vld [vmem:[%s4221_s0 + $0x70] sm:$0xff]  ;;  %v2826_v28 = vld [vmem:[%s4221_s0 + $0x68] sm:$0xff] }
 0x114   :  { %v129_v33 = vpop.xlane.xlu2 %128  ;;  %v257_v34 = vmul.f32 %v217_v30, %v2670_v20  ;;  %v169_v38 = vmul.f32 %v2670_v20, %v138_v31 }
 0x115   :  { %v166_v36 = vmul.f32 %v2670_v20, %v129_v33  ;;  %v290_v41 = vsub.f32 1.5, %v289_v32  ;;  %v145_v33 = vsel %vm102_vm0, %v2821_v27, 0.0 }
 0x116   :  { %v2774_v42 = vadd.f32 1e-05, %v257_v34  ;;  %v2784_v51 = vsub.f32 %v2707_v46, %v169_v38  ;;  %v309_v46 = vmul.f32 0.5, %v308_v50  ;;  %v142_v34 = vsel %vm102_vm0, %v2826_v28, 0.0 }
 0x117   :  { %v2352_v43 = vpop.eup %2351  ;;  %v2777_v44 = vsub.f32 %v2712_v47, %v166_v36  ;;  %v291_v53 = vmul.f32 %v2348_v18, %v290_v41 }
 0x118   :  { %v297_v45 = vmul.f32 %v2352_v43, %v271_v19  ;;  %2353 = vrsqrt.f32 %v2774_v42  ;;  %v201_v2 = vmul.f32 %v2784_v51, %v2784_v51  ;;  %vm303_vm6 = vweird.f32 %v2352_v43 }
 0x119   :  { %v198_v52 = vmul.f32 %v2777_v44, %v2777_v44  ;;  %v295_v56 = vsel %vm294_vm5, %v2348_v18, %v291_v53  ;;  %v310_v10 = vsub.f32 1.5, %v309_v46  ;;  %vm304_vm8 = vmor %vm302_vm7, %vm303_vm6  ;;  %vm322_vm12 = vweird.f32 %v2774_v42 }
 0x11a   :  { %v298_v54 = vmul.f32 %v2352_v43, %v297_v45  ;;  %v446_v63 = vmul.f32 %v295_v56, %v2676_v26  ;;  %v239_v12 = vsel %vm102_vm0, %v201_v2, 0.0 }
 0x11b   :  { %140 = vadd.xlane.f32.xlu0 %v139_v49  ;;  %v230_v47 = vsel %vm102_vm0, %v198_v52, 0.0  ;;  %v220_v55 = vpop.xlane.xlu0 %219 }
 0x11c   :  { %v299_v59 = vmul.f32 0.5, %v298_v54  ;;  %231 = vadd.xlane.f32.xlu2 %v230_v47  ;;  %v135_v61 = vpop.xlane.xlu2 %134  ;;  %v258_v62 = vmul.f32 %v220_v55, %v2670_v20  ;;  %2284 = vmatmul.msk.f32.vlgmr.msra.gmra.mxu0 %vm102_vm0, %v446_v63 }
 0x11d   :  { %v168_v0 = vmul.f32 %v2670_v20, %v135_v61 }
 0x11e   :  { %v2354_v3 = vpop.eup %2353  ;;  %v300_v4 = vsub.f32 1.5, %v299_v59  ;;  %v2799_v5 = vadd.f32 1e-05, %v258_v62 }
 0x11f   :  { %v317_v26 = vmul.f32 %v2354_v3, %v2774_v42  ;;  %v2804_v6 = vsub.f32 %v2728_v57, %v168_v0  ;;  %vm323_vm13 = vweird.f32 %v2354_v3 }
 0x120   :  { %2355 = vrsqrt.f32 %v2799_v5  ;;  %v301_v8 = vmul.f32 %v2352_v43, %v300_v4  ;;  %vm324_vm14 = vmor %vm322_vm12, %vm323_vm13  ;;  %vm332_vm15 = vweird.f32 %v2799_v5 }
 0x121   :  { %v318_v11 = vmul.f32 %v2354_v3, %v317_v26  ;;  %v200_v13 = vmul.f32 %v2804_v6, %v2804_v6 }
 0x122   :  { %v305_v14 = vsel %vm304_vm8, %v2352_v43, %v301_v8 }
 0x123   :  { %149 = vadd.xlane.f32.xlu0 %v148_v7  ;;  %v236_v57 = vsel %vm102_vm0, %v200_v13, 0.0  ;;  %v226_v15 = vpop.xlane.xlu0 %225  ;;  %v447_v18 = vmul.f32 %v305_v14, %v2692_v37  ;;  %v319_v22 = vmul.f32 0.5, %v318_v11  ;;  %v311_v37 = vmul.f32 %v2760_v24, %v310_v10 }
 0x124   :  { %240 = vadd.xlane.f32.xlu2 %v239_v12  ;;  %v223_v19 = vpop.xlane.xlu2 %222  ;;  %237 = vadd.xlane.f32.xlu1 %v236_v57  ;;  %v260_v21 = vmul.f32 %v226_v15, %v2670_v20 }
 0x125   :  { %v259_v23 = vmul.f32 %v223_v19, %v2670_v20  ;;  %2285 = vmatmul.msk.f32.gmra.mxu0 %vm102_vm0, %v447_v18  ;;  %v320_v35 = vsub.f32 1.5, %v319_v22  ;;  %v315_v38 = vsel %vm314_vm11, %v2760_v24, %v311_v37 }
 0x126   :  { %v2356_v29 = vpop.eup %2355  ;;  %v276_v32 = vadd.f32 1e-05, %v260_v21  ;;  %v448_v9 = vmul.f32 %v315_v38, %v2674_v25 }
 0x127   :  { %v327_v30 = vmul.f32 %v2356_v29, %v2799_v5  ;;  %v275_v31 = vadd.f32 1e-05, %v259_v23  ;;  %v321_v43 = vmul.f32 %v2354_v3, %v320_v35  ;;  %vm333_vm1 = vweird.f32 %v2356_v29 }
 0x128   :  { %vm334_vm2 = vmor %vm332_vm15, %vm333_vm1  ;;  %vm352_vm6 = vweird.f32 %v276_v32 }
 0x129   :  { %v328_v36 = vmul.f32 %v2356_v29, %v327_v30  ;;  %2357 = vrsqrt.f32 %v275_v31  ;;  %v325_v52 = vsel %vm324_vm14, %v2354_v3, %v321_v43  ;;  %vm342_vm3 = vweird.f32 %v275_v31 }
 0x12a   :  { %2359 = vrsqrt.f32 %v276_v32  ;;  %v449_v24 = vmul.f32 %v325_v52, %v2695_v39 }
 0x12b   :  { %v329_v41 = vmul.f32 0.5, %v328_v36 }
 0x12c   :  { %146 = vadd.xlane.f32.xlu2 %v145_v33  ;;  %143 = vadd.xlane.f32.xlu1 %v142_v34 }
 0x12d   :  { %2286 = vmatmul.msk.f32.gmra.mxu0 %vm102_vm0, %v448_v9  ;;  %v330_v50 = vsub.f32 1.5, %v329_v41 }
 0x12f   :  { %v2358_v45 = vpop.eup %2357  ;;  %v331_v42 = vmul.f32 %v2356_v29, %v330_v50 }
 0x130   :  { %v337_v49 = vmul.f32 %v2358_v45, %v275_v31  ;;  %v2360_v53 = vpop.eup %2359  ;;  %vm343_vm4 = vweird.f32 %v2358_v45 }
 0x131   :  { %v347_v47 = vmul.f32 %v2360_v53, %v276_v32  ;;  %v335_v59 = vsel %vm334_vm2, %v2356_v29, %v331_v42  ;;  %vm344_vm5 = vmor %vm342_vm3, %vm343_vm4  ;;  %vm353_vm7 = vweird.f32 %v2360_v53 }
 0x132   :  { %v338_v54 = vmul.f32 %v2358_v45, %v337_v49  ;;  %v450_v61 = vmul.f32 %v335_v59, %v2714_v48  ;;  %vm354_vm8 = vmor %vm352_vm6, %vm353_vm7 }
 0x133   :  { %v348_v56 = vmul.f32 %v2360_v53, %v347_v47 }
 0x134   :  { %v339_v25 = vmul.f32 0.5, %v338_v54 }
 0x135   :  { %2287 = vmatmul.msk.f32.gmra.mxu0 %vm102_vm0, %v449_v24  ;;  %v349_v62 = vmul.f32 0.5, %v348_v56 }
 0x136   :  { %v340_v55 = vsub.f32 1.5, %v339_v25 }
 0x137   :  { %v350_v39 = vsub.f32 1.5, %v349_v62 }
 0x138   :  { %v341_v63 = vmul.f32 %v2358_v45, %v340_v55 }
 0x139   :  { %v351_v2 = vmul.f32 %v2360_v53, %v350_v39 }
 0x13a   :  { %v345_v46 = vsel %vm344_vm5, %v2358_v45, %v341_v63 }
 0x13b   :  { %v451_v0 = vmul.f32 %v345_v46, %v2734_v60  ;;  %v355_v3 = vsel %vm354_vm8, %v2360_v53, %v351_v2 }
 0x13c   :  { %v452_v48 = vmul.f32 %v355_v3, %v2730_v58 }
 0x13d   :  { %2288 = vmatmul.msk.f32.gmra.mxu0 %vm102_vm0, %v450_v61 }
 0x145   :  { %2289 = vmatmul.msk.f32.gmra.mxu0 %vm102_vm0, %v451_v0 }
 0x14d   :  { %2290 = vmatmul.msk.f32.gmra.mxu0 %vm102_vm0, %v452_v48 }
 0x186   :  { %v229_v4 = vpop.xlane.xlu1 %228  ;;  %v235_v5 = vpop.xlane.xlu0 %234 }
 0x187   :  { %v261_v26 = vmul.f32 %v229_v4, %v2670_v20  ;;  %v263_v7 = vmul.f32 %v235_v5, %v2670_v20 }
 0x189   :  { %v277_v8 = vadd.f32 1e-05, %v261_v26  ;;  %v2854_v10 = vadd.f32 1e-05, %v263_v7 }
 0x18b   :  { %2361 = vrsqrt.f32 %v277_v8  ;;  %vm362_vm10 = vweird.f32 %v277_v8  ;;  %vm382_vm14 = vweird.f32 %v2854_v10 }
 0x18c   :  { %2363 = vrsqrt.f32 %v2854_v10 }
 0x18e   :  { %v141_v60 = vpop.xlane.xlu0 %140 }
 0x18f   :  { %v232_v11 = vpop.xlane.xlu2 %231  ;;  %v170_v12 = vmul.f32 %v2670_v20, %v141_v60 }
 0x190   :  { %v262_v58 = vmul.f32 %v232_v11, %v2670_v20 }
 0x191   :  { %v2362_v13 = vpop.eup %2361  ;;  %v2860_v14 = vsub.f32 %v2772_v40, %v170_v12 }
 0x192   :  { %v357_v57 = vmul.f32 %v2362_v13, %v277_v8  ;;  %v278_v15 = vadd.f32 1e-05, %v262_v58  ;;  %v2864_v19 = vpop.eup %2363  ;;  %vm363_vm9 = vweird.f32 %v2362_v13 }
 0x193   :  { %v202_v18 = vmul.f32 %v2860_v14, %v2860_v14  ;;  %v377_v29 = vmul.f32 %v2864_v19, %v2854_v10  ;;  %vm364_vm11 = vmor %vm362_vm10, %vm363_vm9  ;;  %vm383_vm1 = vweird.f32 %v2864_v19 }
 0x194   :  { %v358_v21 = vmul.f32 %v2362_v13, %v357_v57  ;;  %2365 = vrsqrt.f32 %v278_v15  ;;  %vm372_vm13 = vweird.f32 %v278_v15  ;;  %vm384_vm2 = vmor %vm382_vm14, %vm383_vm1 }
 0x195   :  { %v242_v22 = vsel %vm102_vm0, %v202_v18, 0.0  ;;  %v378_v43 = vmul.f32 %v2864_v19, %v377_v29 }
 0x196   :  { %v359_v23 = vmul.f32 0.5, %v358_v21  ;;  %243 = vadd.xlane.f32.xlu1 %v242_v22  ;;  %v150_v37 = vpop.xlane.xlu0 %149 }
 0x197   :  { %v241_v30 = vpop.xlane.xlu2 %240  ;;  %v238_v40 = vpop.xlane.xlu1 %237  ;;  %v173_v31 = vmul.f32 %v2670_v20, %v150_v37  ;;  %v379_v24 = vmul.f32 0.5, %v378_v43 }
 0x198   :  { %v360_v32 = vsub.f32 1.5, %v359_v23  ;;  %v265_v33 = vmul.f32 %v241_v30, %v2670_v20  ;;  %v264_v34 = vmul.f32 %v238_v40, %v2670_v20 }
 0x199   :  { %v2873_v35 = vsub.f32 %v2795_v1, %v173_v31  ;;  %v2878_v49 = vpop.f32.mrf.mxu0  ;;  %v380_v39 = vsub.f32 1.5, %v379_v24 }
 0x19a   :  { %v2366_v36 = vpop.eup %2365  ;;  %v2875_v38 = vadd.f32 1e-05, %v265_v33  ;;  %v280_v9 = vadd.f32 1e-05, %v264_v34  ;;  %v361_v41 = vmul.f32 %v2362_v13, %v360_v32 }
 0x19b   :  { %v367_v45 = vmul.f32 %v2366_v36, %v278_v15  ;;  %v205_v50 = vmul.f32 %v2873_v35, %v2873_v35  ;;  %vm373_vm12 = vweird.f32 %v2366_v36  ;;  %v381_v10 = vmul.f32 %v2864_v19, %v380_v39 }
 0x19c   :  { %2367 = vrsqrt.f32 %v2875_v38  ;;  %v365_v53 = vsel %vm364_vm11, %v2362_v13, %v361_v41  ;;  %vm374_vm15 = vmor %vm372_vm13, %vm373_vm12  ;;  %vm392_vm4 = vweird.f32 %v280_v9  ;;  %vm402_vm6 = vweird.f32 %v2875_v38 }
 0x19d   :  { %v368_v52 = vmul.f32 %v2366_v36, %v367_v45  ;;  %2369 = vrsqrt.f32 %v280_v9  ;;  %v251_v1 = vsel %vm102_vm0, %v205_v50, 0.0  ;;  %v453_v54 = vmul.f32 %v365_v53, %v2754_v17 }
 0x19e   :  { %252 = vadd.xlane.f32.xlu1 %v251_v1  ;;  %v385_v13 = vsel %vm384_vm2, %v2864_v19, %v381_v10 }
 0x19f   :  { %v369_v25 = vmul.f32 0.5, %v368_v52  ;;  %v147_v47 = vpop.xlane.xlu2 %146  ;;  %v144_v42 = vpop.xlane.xlu1 %143  ;;  %2291 = vmatmul.msk.f32.gmra.mxu0 %vm102_vm0, %v453_v54  ;;  %v455_v15 = vmul.f32 %v385_v13, %v2752_v16  ;;  %v2920_v16 = vld [vmem:[#allocation7] ss:$0 sm:$0xff]  ;;  %v2590_v52 = vmov 128.0  }
 0x1a0   :  { %v172_v55 = vmul.f32 %v2670_v20, %v147_v47  ;;  %v171_v56 = vmul.f32 %v2670_v20, %v144_v42 }
 0x1a1   :  { %v370_v59 = vsub.f32 1.5, %v369_v25 }
 0x1a2   :  { %v2368_v61 = vpop.eup %2367  ;;  %v2889_v62 = vsub.f32 %v2821_v27, %v172_v55  ;;  %v2892_v63 = vsub.f32 %v2826_v28, %v171_v56  ;;  %v2895_v0 = vpop.f32.mrf.mxu0 }
 0x1a3   :  { %v2370_v17 = vpop.eup %2369  ;;  %v397_v46 = vmul.f32 %v2368_v61, %v2875_v38  ;;  %v371_v2 = vmul.f32 %v2366_v36, %v370_v59  ;;  %vm403_vm7 = vweird.f32 %v2368_v61 }
 0x1a4   :  { %v387_v3 = vmul.f32 %v2370_v17, %v280_v9  ;;  %v204_v48 = vmul.f32 %v2889_v62, %v2889_v62  ;;  %v203_v28 = vmul.f32 %v2892_v63, %v2892_v63  ;;  %vm393_vm3 = vweird.f32 %v2370_v17  ;;  %vm404_vm8 = vmor %vm402_vm6, %vm403_vm7 }
 0x1a5   :  { %v398_v27 = vmul.f32 %v2368_v61, %v397_v46  ;;  %v375_v4 = vsel %vm374_vm15, %v2366_v36, %v371_v2  ;;  %vm394_vm5 = vmor %vm392_vm4, %vm393_vm3 }
 0x1a6   :  { %v388_v5 = vmul.f32 %v2370_v17, %v387_v3  ;;  %v248_v26 = vsel %vm102_vm0, %v204_v48, 0.0  ;;  %v454_v7 = vmul.f32 %v375_v4, %v2777_v44  ;;  %v245_v8 = vsel %vm102_vm0, %v203_v28, 0.0 }
 0x1a7   :  { %249 = vadd.xlane.f32.xlu0 %v248_v26  ;;  %v399_v60 = vmul.f32 0.5, %v398_v27  ;;  %246 = vadd.xlane.f32.xlu2 %v245_v8 }
 0x1a8   :  { %v389_v11 = vmul.f32 0.5, %v388_v5  ;;  %2292 = vmatmul.msk.f32.gmra.mxu0 %vm102_vm0, %v454_v7 }
 0x1a9   :  { %v400_v57 = vsub.f32 1.5, %v399_v60 }
 0x1aa   :  { %v390_v12 = vsub.f32 1.5, %v389_v11  ;;  %v2908_v58 = vpop.f32.mrf.mxu0 }
 0x1ab   :  { %v401_v22 = vmul.f32 %v2368_v61, %v400_v57 }
 0x1ac   :  { %v391_v44 = vmul.f32 %v2370_v17, %v390_v12 }
 0x1ad   :  { %v405_v19 = vsel %vm404_vm8, %v2368_v61, %v401_v22 }
 0x1ae   :  { %v395_v18 = vsel %vm394_vm5, %v2370_v17, %v391_v44  ;;  %v457_v37 = vmul.f32 %v405_v19, %v2784_v51 }
 0x1af   :  { %v456_v21 = vmul.f32 %v395_v18, %v2804_v6 }
 0x1b0   :  { %2293 = vmatmul.msk.f32.gmra.mxu0 %vm102_vm0, %v455_v15 }
 0x1b1   :  { %2294 = vmatmul.msk.f32.vlgmr.msra.gmra.mxu3 %vm102_vm0, %v456_v21 }
 0x1b2   :  { %v2916_v23 = vpop.f32.mrf.mxu0 }
 0x1b9   :  { %2295 = vmatmul.msk.f32.gmra.mxu3 %vm102_vm0, %v457_v37 }
 0x1ba   :  { %v546_v29 = vpop.f32.mrf.mxu0 }
 0x1bb   :  { %v2923_v6 = vadd.f32 %v546_v29, %v2920_v16 }
 0x1bd   :  { %v586_v30 = vmax.f32 %v2923_v6, 0.0 }
 0x1bf   :  { %608 = vadd.xlane.f32.xlu2 %v586_v30 }
 0x1c2   :  { %v549_v40 = vpop.f32.mrf.mxu0 }
 0x1c3   :  { %v2929_v31 = vadd.f32 %v549_v40, %v2920_v16 }
 0x1c5   :  { %v587_v32 = vmax.f32 %v2929_v31, 0.0 }
 0x1c7   :  { %610 = vadd.xlane.f32.xlu0 %v587_v32 }
 0x1ca   :  { %v552_v51 = vpop.f32.mrf.mxu0 }
 0x1cb   :  { %v2935_v33 = vadd.f32 %v552_v51, %v2920_v16 }
 0x1cd   :  { %v588_v34 = vmax.f32 %v2935_v33, 0.0  ;;  %v989_v33 = vld [vmem:[#allocation4 + $0xf0] sm:$0xff] }
 0x1ce   :  { %2302 = vmatpush.msra.mxu2 %v989_v33  ;;  %998 = vmatpush.msra.mxu1 %v989_v33 }
 0x1cf   :  { %612 = vadd.xlane.f32.xlu1 %v588_v34  ;;  %2303 = vmatpush.msrb.mxu3 %v989_v33 }
 0x209   :  { %v244_v36 = vpop.xlane.xlu1 %243 }
 0x20a   :  { %v266_v38 = vmul.f32 %v244_v36, %v2670_v20 }
 0x20c   :  { %v282_v9 = vadd.f32 1e-05, %v266_v38 }
 0x20e   :  { %2371 = vrsqrt.f32 %v282_v9  ;;  %vm412_vm9 = vweird.f32 %v282_v9 }
 0x20f   :  { %2373 = vrcp.f32 %v2590_v52 }
 0x211   :  { %v253_v45 = vpop.xlane.xlu1 %252 }
 0x212   :  { %v269_v53 = vmul.f32 %v253_v45, %v2670_v20 }
 0x214   :  { %v2372_v41 = vpop.eup %2371  ;;  %v2944_v55 = vadd.f32 1e-05, %v269_v53 }
 0x215   :  { %v407_v43 = vmul.f32 %v2372_v41, %v282_v9  ;;  %vm413_vm10 = vweird.f32 %v2372_v41  ;;  %v2374_v17 = vpop.eup %2373 }
 0x216   :  { %vm414_vm11 = vmor %vm412_vm9, %vm413_vm10  ;;  %vm637_vm15 = vweird.f32 %v2374_v17  ;;  %vm442_vm4 = vweird.f32 %v2944_v55 }
 0x217   :  { %v408_v50 = vmul.f32 %v2372_v41, %v407_v43 }
 0x219   :  { %v409_v1 = vmul.f32 0.5, %v408_v50 }
 0x21a   :  { %v250_v54 = vpop.xlane.xlu0 %249  ;;  %v247_v25 = vpop.xlane.xlu2 %246 }
 0x21b   :  { %v410_v24 = vsub.f32 1.5, %v409_v1  ;;  %v268_v47 = vmul.f32 %v250_v54, %v2670_v20  ;;  %v267_v42 = vmul.f32 %v247_v25, %v2670_v20  ;;  %v633_v20 = vmul.f32 128.0, %v2374_v17 }
 0x21c   :  { %v555_v59 = vpop.f32.mrf.mxu0 }
 0x21d   :  { %v284_v56 = vadd.f32 1e-05, %v268_v47  ;;  %v411_v61 = vmul.f32 %v2372_v41, %v410_v24  ;;  %v283_v39 = vadd.f32 1e-05, %v267_v42  ;;  %v2947_v46 = vadd.f32 %v555_v59, %v2920_v16 }
 0x21e   :  { %v634_v4 = vsub.f32 1.0, %v633_v20 }
 0x21f   :  { %2375 = vrsqrt.f32 %v284_v56  ;;  %v415_v2 = vsel %vm414_vm11, %v2372_v41, %v411_v61  ;;  %v589_v3 = vmax.f32 %v2947_v46, 0.0  ;;  %vm422_vm12 = vweird.f32 %v283_v39 }
 0x220   :  { %2377 = vrsqrt.f32 %v283_v39  ;;  %v458_v48 = vmul.f32 %v415_v2, %v2860_v14  ;;  %v635_v12 = vmul.f32 %v2374_v17, %v634_v4  ;;  %vm432_vm1 = vweird.f32 %v284_v56  ;;  %v979_v4 = vld [vmem:[#allocation4 + $0xa0] sm:$0xff] }
 0x221   :  { %2379 = vrsqrt.f32 %v2944_v55  ;;  %614 = vadd.xlane.f32.xlu2 %v589_v3  ;;  %v3004_v2 = vadd.f32 %v2878_v49, %v2920_v16  ;;  %v3033_v46 = vadd.f32 %v2908_v58, %v2920_v16 }
 0x222   :  { %2296 = vmatmul.msk.f32.gmra.mxu3 %vm102_vm0, %v458_v48  ;;  %v636_v21 = vadd.f32 %v2374_v17, %v635_v12  ;;  %v973_v12 = vld [vmem:[#allocation4 + $0x70] sm:$0xff] }
 0x223   :  { %v582_v20 = vmax.f32 %v3004_v2, 0.0 }
 0x224   :  { %v2966_v51 = vsel %vm637_vm15, %v2374_v17, %v636_v21  ;;  %v584_v21 = vmax.f32 %v3033_v46, 0.0 }
 0x225   :  { %v2376_v27 = vpop.eup %2375  ;;  %v558_v28 = vpop.f32.mrf.mxu0 }
 0x226   :  { %v2378_v5 = vpop.eup %2377  ;;  %v427_v26 = vmul.f32 %v2376_v27, %v284_v56  ;;  %v2956_v7 = vadd.f32 %v558_v28, %v2920_v16  ;;  %vm433_vm2 = vweird.f32 %v2376_v27  ;;  %v983_v28 = vld [vmem:[#allocation4 + $0xc0] sm:$0xff] }
 0x227   :  { %v2380_v8 = vpop.eup %2379  ;;  %v417_v10 = vmul.f32 %v2378_v5, %v283_v39  ;;  %vm423_vm13 = vweird.f32 %v2378_v5  ;;  %vm434_vm3 = vmor %vm432_vm1, %vm433_vm2 }
 0x228   :  { %v428_v60 = vmul.f32 %v2376_v27, %v427_v26  ;;  %v590_v14 = vmax.f32 %v2956_v7, 0.0  ;;  %v437_v13 = vmul.f32 %v2380_v8, %v2944_v55  ;;  %vm424_vm14 = vmor %vm422_vm12, %vm423_vm13  ;;  %vm443_vm5 = vweird.f32 %v2380_v8  ;;  %v963_v7 = vld [vmem:[#allocation4 + $0x20] sm:$0xff] }
 0x229   :  { %v418_v11 = vmul.f32 %v2378_v5, %v417_v10  ;;  %vm444_vm6 = vmor %vm442_vm4, %vm443_vm5 }
 0x22a   :  { %616 = vadd.xlane.f32.xlu0 %v590_v14  ;;  %v429_v44 = vmul.f32 0.5, %v428_v60  ;;  %v438_v19 = vmul.f32 %v2380_v8, %v437_v13  ;;  %v975_v60 = vld [vmem:[#allocation4 + $0x80] sm:$0xff] }
 0x22b   :  { %v419_v57 = vmul.f32 0.5, %v418_v11  ;;  %v971_v13 = vld [vmem:[#allocation4 + $0x60] sm:$0xff] }
 0x22c   :  { %v430_v37 = vsub.f32 1.5, %v429_v44  ;;  %v439_v9 = vmul.f32 0.5, %v438_v19  ;;  %v969_v44 = vld [vmem:[#allocation4 + $0x50] sm:$0xff] }
 0x22d   :  { %v420_v15 = vsub.f32 1.5, %v419_v57  ;;  %v561_v18 = vpop.f32.mrf.mxu0  ;;  %v965_v19 = vld [vmem:[#allocation4 + $0x30] sm:$0xff] }
 0x22e   :  { %v2963_v22 = vadd.f32 %v561_v18, %v2920_v16  ;;  %v431_v43 = vmul.f32 %v2376_v27, %v430_v37  ;;  %v440_v53 = vsub.f32 1.5, %v439_v9  ;;  %v967_v18 = vld [vmem:[#allocation4 + $0x40] sm:$0xff]  ;;  %v3047_v37 = vadd.f32 %v2916_v23, %v2920_v16 }
 0x22f   :  { %v421_v29 = vmul.f32 %v2378_v5, %v420_v15  ;;  %v959_v9 = vld [vmem:[#allocation4] sm:$0xff] }
 0x230   :  { %v591_v40 = vmax.f32 %v2963_v22, 0.0  ;;  %v441_v6 = vmul.f32 %v2380_v8, %v440_v53 }
 0x231   :  { %v425_v36 = vsel %vm424_vm14, %v2378_v5, %v421_v29 }
 0x232   :  { %618 = vadd.xlane.f32.xlu1 %v591_v40  ;;  %v459_v38 = vmul.f32 %v425_v36, %v2892_v63  ;;  %v609_v41 = vpop.xlane.xlu2 %608  ;;  %v435_v63 = vsel %vm434_vm3, %v2376_v27, %v431_v43  ;;  %v445_v61 = vsel %vm444_vm6, %v2380_v8, %v441_v6  ;;  %v985_v27 = vld [vmem:[#allocation4 + $0xd0] sm:$0xff] }
 0x233   :  { %v643_v45 = vmul.f32 %v2966_v51, %v609_v41  ;;  %v460_v25 = vmul.f32 %v435_v63, %v2889_v62  ;;  %v461_v17 = vmul.f32 %v445_v61, %v2873_v35  ;;  %v3019_v35 = vadd.f32 %v2895_v0, %v2920_v16  ;;  %v981_v0 = vld [vmem:[#allocation4 + $0xb0] sm:$0xff] }
 0x234   :  { %v564_v50 = vpop.f32.mrf.mxu3  ;;  %2297 = vmatmul.msk.f32.gmra.mxu3 %vm102_vm0, %v459_v38  ;;  %v977_v8 = vld [vmem:[#allocation4 + $0x90] sm:$0xff]  ;;  %v585_v41 = vmax.f32 %v3047_v37, 0.0 }
 0x235   :  { %v2974_v52 = vadd.f32 %v564_v50, %v2920_v16  ;;  %v2978_v1 = vsub.f32 %v586_v30, %v643_v45  ;;  %v583_v49 = vmax.f32 %v3019_v35, 0.0  ;;  %v961_v36 = vld [vmem:[#allocation4 + $0x10] sm:$0xff] }
 0x237   :  { %v592_v54 = vmax.f32 %v2974_v52, 0.0  ;;  %v675_v24 = vmul.f32 %v2978_v1, %v2978_v1 }
 0x239   :  { %620 = vadd.xlane.f32.xlu0 %v592_v54  ;;  %695 = vadd.xlane.f32.xlu2 %v675_v24 }
 0x23a   :  { %v611_v47 = vpop.xlane.xlu0 %610 }
 0x23b   :  { %v644_v30 = vmul.f32 %v2966_v51, %v611_v47 }
 0x23c   :  { %v567_v42 = vpop.f32.mrf.mxu3  ;;  %2298 = vmatmul.msk.f32.gmra.mxu3 %vm102_vm0, %v460_v25 }
 0x23d   :  { %v2990_v56 = vadd.f32 %v567_v42, %v2920_v16  ;;  %v2994_v55 = vsub.f32 %v587_v32, %v644_v30 }
 0x23f   :  { %v593_v59 = vmax.f32 %v2990_v56, 0.0  ;;  %v676_v62 = vmul.f32 %v2994_v55, %v2994_v55 }
 0x241   :  { %622 = vadd.xlane.f32.xlu2 %v593_v59  ;;  %697 = vadd.xlane.f32.xlu1 %v676_v62 }
 0x242   :  { %v613_v39 = vpop.xlane.xlu1 %612 }
 0x243   :  { %v645_v31 = vmul.f32 %v2966_v51, %v613_v39 }
 0x244   :  { %2299 = vmatmul.msk.f32.gmra.mxu3 %vm102_vm0, %v461_v17 }
 0x245   :  { %v3010_v32 = vsub.f32 %v588_v34, %v645_v31  ;;  %v987_v34 = vld [vmem:[#allocation4 + $0xe0] sm:$0xff] }
 0x246   :  { %2304 = vmatpush.msra.mxu2 %v987_v34  ;;  %999 = vmatpush.msra.mxu1 %v987_v34 }
 0x247   :  { %v677_v48 = vmul.f32 %v3010_v32, %v3010_v32  ;;  %2305 = vmatpush.msrb.mxu3 %v987_v34 }
 0x248   :  { %2306 = vmatpush.msra.mxu2 %v985_v27  ;;  %1000 = vmatpush.msra.mxu1 %v985_v27 }
 0x249   :  { %699 = vadd.xlane.f32.xlu0 %v677_v48  ;;  %600 = vadd.xlane.f32.xlu1 %v582_v20 }
 0x24a   :  { %2307 = vmatpush.msrb.mxu3 %v985_v27  ;;  %2308 = vmatpush.msra.mxu2 %v983_v28 }
 0x24b   :  { %1001 = vmatpush.msra.mxu1 %v983_v28 }
 0x24c   :  { %2309 = vmatpush.msrb.mxu3 %v983_v28  ;;  %2310 = vmatpush.msra.mxu2 %v981_v0 }
 0x24d   :  { %1002 = vmatpush.msra.mxu1 %v981_v0 }
 0x24e   :  { %2311 = vmatpush.msrb.mxu3 %v981_v0  ;;  %2312 = vmatpush.msra.mxu2 %v979_v4 }
 0x24f   :  { %1003 = vmatpush.msra.mxu1 %v979_v4 }
 0x250   :  { %2313 = vmatpush.msrb.mxu3 %v979_v4  ;;  %2314 = vmatpush.msra.mxu2 %v977_v8 }
 0x251   :  { %602 = vadd.xlane.f32.xlu0 %v583_v49  ;;  %1004 = vmatpush.msra.mxu1 %v977_v8 }
 0x252   :  { %2315 = vmatpush.msrb.mxu3 %v977_v8  ;;  %2316 = vmatpush.msra.mxu2 %v975_v60 }
 0x253   :  { %1005 = vmatpush.msra.mxu1 %v975_v60 }
 0x254   :  { %2317 = vmatpush.msrb.mxu3 %v975_v60  ;;  %2318 = vmatpush.msra.mxu2 %v973_v12  ;;  %v3085_v60 = vld [vmem:[#allocation7 + $0x1] ss:$0 sm:$0xff] }
 0x255   :  { %1006 = vmatpush.msra.mxu1 %v973_v12 }
 0x256   :  { %2319 = vmatpush.msrb.mxu3 %v973_v12  ;;  %2320 = vmatpush.msra.mxu2 %v971_v13 }
 0x257   :  { %1007 = vmatpush.msra.mxu1 %v971_v13 }
 0x258   :  { %2321 = vmatpush.msrb.mxu3 %v971_v13  ;;  %2322 = vmatpush.msra.mxu2 %v969_v44 }
 0x259   :  { %1008 = vmatpush.msra.mxu1 %v969_v44 }
 0x25a   :  { %2323 = vmatpush.msrb.mxu3 %v969_v44  ;;  %2324 = vmatpush.msra.mxu2 %v967_v18 }
 0x25b   :  { %1009 = vmatpush.msra.mxu1 %v967_v18 }
 0x25c   :  { %2325 = vmatpush.msrb.mxu3 %v967_v18  ;;  %2326 = vmatpush.msra.mxu2 %v965_v19 }
 0x25d   :  { %1010 = vmatpush.msra.mxu1 %v965_v19 }
 0x25e   :  { %2328 = vmatpush.msra.mxu2 %v963_v7  ;;  %2327 = vmatpush.msrb.mxu3 %v965_v19 }
 0x25f   :  { %1011 = vmatpush.msra.mxu1 %v963_v7 }
 0x260   :  { %2330 = vmatpush.msra.mxu2 %v961_v36  ;;  %2329 = vmatpush.msrb.mxu3 %v963_v7 }
 0x261   :  { %1012 = vmatpush.msra.mxu1 %v961_v36 }
 0x262   :  { %2332 = vmatpush.msra.mxu2 %v959_v9  ;;  %2331 = vmatpush.msrb.mxu3 %v961_v36 }
 0x263   :  { %1013 = vmatpush.msra.mxu1 %v959_v9 }
 0x264   :  { %2333 = vmatpush.msrb.mxu3 %v959_v9 }
 0x294   :  { %v615_v5 = vpop.xlane.xlu2 %614 }
 0x295   :  { %v646_v26 = vmul.f32 %v2966_v51, %v615_v5 }
 0x297   :  { %v3027_v10 = vsub.f32 %v589_v3, %v646_v26 }
 0x299   :  { %v678_v11 = vmul.f32 %v3027_v10, %v3027_v10 }
 0x29b   :  { %701 = vadd.xlane.f32.xlu2 %v678_v11 }
 0x29d   :  { %v617_v57 = vpop.xlane.xlu0 %616 }
 0x29e   :  { %v647_v3 = vmul.f32 %v2966_v51, %v617_v57 }
 0x2a0   :  { %v3038_v15 = vsub.f32 %v590_v14, %v647_v3 }
 0x2a2   :  { %v679_v58 = vmul.f32 %v3038_v15, %v3038_v15 }
 0x2a3   :  { %604 = vadd.xlane.f32.xlu2 %v584_v21 }
 0x2a4   :  { %703 = vadd.xlane.f32.xlu1 %v679_v58 }
 0x2a5   :  { %v619_v14 = vpop.xlane.xlu1 %618  ;;  %v570_v30 = vpop.f32.mrf.mxu3 }
 0x2a6   :  { %v648_v29 = vmul.f32 %v2966_v51, %v619_v14 }
 0x2a8   :  { %v3052_v38 = vsub.f32 %v591_v40, %v648_v29 }
 0x2aa   :  { %v680_v23 = vmul.f32 %v3052_v38, %v3052_v38 }
 0x2ac   :  { %v621_v43 = vpop.xlane.xlu0 %620  ;;  %705 = vadd.xlane.f32.xlu0 %v680_v23  ;;  %606 = vadd.xlane.f32.xlu1 %v585_v41  ;;  %v696_v22 = vpop.xlane.xlu2 %695  ;;  %v3106_v23 = vadd.f32 %v570_v30, %v2920_v16 }
 0x2ad   :  { %v649_v45 = vmul.f32 %v2966_v51, %v621_v43  ;;  %v723_v40 = vmul.f32 %v696_v22, %v2966_v51 }
 0x2af   :  { %v3063_v50 = vsub.f32 %v592_v54, %v649_v45  ;;  %v739_v53 = vadd.f32 1e-05, %v723_v40 }
 0x2b1   :  { %v681_v63 = vmul.f32 %v3063_v50, %v3063_v50  ;;  %2381 = vrsqrt.f32 %v739_v53  ;;  %vm797_vm7 = vweird.f32 %v739_v53 }
 0x2b3   :  { %707 = vadd.xlane.f32.xlu2 %v681_v63 }
 0x2b4   :  { %v623_v24 = vpop.xlane.xlu2 %622  ;;  %v698_v25 = vpop.xlane.xlu1 %697 }
 0x2b5   :  { %v650_v47 = vmul.f32 %v2966_v51, %v623_v24  ;;  %v724_v6 = vmul.f32 %v698_v25, %v2966_v51 }
 0x2b7   :  { %v2382_v42 = vpop.eup %2381  ;;  %v3071_v61 = vsub.f32 %v593_v59, %v650_v47  ;;  %v740_v52 = vadd.f32 1e-05, %v724_v6  ;;  %v3077_v56 = vpop.f32.mrf.mxu3 }
 0x2b8   :  { %v792_v54 = vmul.f32 %v2382_v42, %v739_v53  ;;  %vm798_vm0 = vweird.f32 %v2382_v42  ;;  %v594_v53 = vmax.f32 %v3106_v23, 0.0  ;;  %v3139_v46 = vadd.f32 %v3077_v56, %v2920_v16 }
 0x2b9   :  { %2383 = vrsqrt.f32 %v740_v52  ;;  %v682_v62 = vmul.f32 %v3071_v61, %v3071_v61  ;;  %vm799_vm8 = vmor %vm797_vm7, %vm798_vm0  ;;  %vm807_vm10 = vweird.f32 %v740_v52 }
 0x2ba   :  { %v793_v17 = vmul.f32 %v2382_v42, %v792_v54  ;;  %v986_v54 = vld [vmem:[#allocation4 + $0xd8] sm:$0xff]  ;;  %v595_v56 = vmax.f32 %v3139_v46, 0.0 }
 0x2bb   :  { %709 = vadd.xlane.f32.xlu0 %v682_v62 }
 0x2bc   :  { %v794_v39 = vmul.f32 0.5, %v793_v17  ;;  %v601_v31 = vpop.xlane.xlu1 %600  ;;  %v700_v48 = vpop.xlane.xlu0 %699 }
 0x2bd   :  { %v639_v33 = vmul.f32 %v2966_v51, %v601_v31  ;;  %v725_v34 = vmul.f32 %v700_v48, %v2966_v51  ;;  %v982_v31 = vld [vmem:[#allocation4 + $0xb8] sm:$0xff] }
 0x2be   :  { %v795_v27 = vsub.f32 1.5, %v794_v39  ;;  %v984_v39 = vld [vmem:[#allocation4 + $0xc8] sm:$0xff] }
 0x2bf   :  { %v2384_v59 = vpop.eup %2383  ;;  %v3081_v28 = vsub.f32 %v582_v20, %v639_v33  ;;  %v741_v0 = vadd.f32 1e-05, %v725_v34  ;;  %v3088_v20 = vld [vmem:[#allocation7 + $0x2] ss:$0 sm:$0xff]  ;;  %v3099_v14 = vpop.f32.mrf.mxu3 }
 0x2c0   :  { %v796_v4 = vmul.f32 %v2382_v42, %v795_v27  ;;  %v802_v5 = vmul.f32 %v2384_v59, %v740_v52  ;;  %vm808_vm9 = vweird.f32 %v2384_v59  ;;  %v988_v52 = vld [vmem:[#allocation4 + $0xe8] sm:$0xff] }
 0x2c1   :  { %2385 = vrsqrt.f32 %v741_v0  ;;  %v671_v26 = vmul.f32 %v3081_v28, %v3081_v28  ;;  %vm809_vm11 = vmor %vm807_vm10, %vm808_vm9  ;;  %vm817_vm13 = vweird.f32 %v741_v0 }
 0x2c2   :  { %v803_v8 = vmul.f32 %v2384_v59, %v802_v5  ;;  %v800_v11 = vsel %vm799_vm8, %v2382_v42, %v796_v4  ;;  %v990_v42 = vld [vmem:[#allocation4 + $0xf8] sm:$0xff]  ;;  %v980_v5 = vld [vmem:[#allocation4 + $0xa8] sm:$0xff] }
 0x2c3   :  { %687 = vadd.xlane.f32.xlu1 %v671_v26  ;;  %v915_v12 = vmul.f32 %v800_v11, %v2978_v1  ;;  %1063 = vmatpush.msrb.mxu2 %v990_v42  ;;  %v978_v26 = vld [vmem:[#allocation4 + $0x98] sm:$0xff] }
 0x2c4   :  { %v804_v13 = vmul.f32 0.5, %v803_v8  ;;  %v603_v2 = vpop.xlane.xlu0 %602 }
 0x2c5   :  { %v640_v57 = vmul.f32 %v2966_v51, %v603_v2  ;;  %v931_v3 = vmul.f32 %v915_v12, %v3085_v60  ;;  %1064 = vmatpush.msrb.mxu2 %v988_v52 }
 0x2c6   :  { %v805_v44 = vsub.f32 1.5, %v804_v13 }
 0x2c7   :  { %v2386_v18 = vpop.eup %2385  ;;  %v3094_v58 = vsub.f32 %v583_v49, %v640_v57  ;;  %v3097_v19 = vadd.f32 %v931_v3, %v3088_v20  ;;  %v579_v63 = vpop.f32.mrf.mxu3  ;;  %1065 = vmatpush.msrb.mxu2 %v986_v54 }
 0x2c8   :  { %v806_v7 = vmul.f32 %v2384_v59, %v805_v44  ;;  %v812_v1 = vmul.f32 %v2386_v18, %v741_v0  ;;  %vm818_vm12 = vweird.f32 %v2386_v18  ;;  %v3118_v25 = vadd.f32 %v579_v63, %v2920_v16 }
 0x2c9   :  { %1026 = vmatmul.f32.vlgmr.msra.gmra.mxu2 %v3097_v19  ;;  %v672_v29 = vmul.f32 %v3094_v58, %v3094_v58  ;;  %vm819_vm14 = vmor %vm817_vm13, %vm818_vm12 }
 0x2ca   :  { %v813_v36 = vmul.f32 %v2386_v18, %v812_v1  ;;  %v810_v9 = vsel %vm809_vm11, %v2384_v59, %v806_v7  ;;  %v597_v30 = vmax.f32 %v3118_v25, 0.0  ;;  %1066 = vmatpush.msrb.mxu2 %v984_v39 }
 0x2cb   :  { %689 = vadd.xlane.f32.xlu2 %v672_v29  ;;  %v916_v35 = vmul.f32 %v810_v9, %v2994_v55  ;;  %v976_v9 = vld [vmem:[#allocation4 + $0x88] sm:$0xff] }
 0x2cc   :  { %v814_v49 = vmul.f32 0.5, %v813_v36  ;;  %1067 = vmatpush.msrb.mxu2 %v982_v31 }
 0x2cd   :  { %v932_v43 = vmul.f32 %v916_v35, %v3085_v60 }
 0x2ce   :  { %v815_v45 = vsub.f32 1.5, %v814_v49  ;;  %1068 = vmatpush.msrb.mxu2 %v980_v5  ;;  %v974_v49 = vld [vmem:[#allocation4 + $0x78] sm:$0xff]  ;;  %v964_v5 = vld [vmem:[#allocation4 + $0x28] sm:$0xff] }
 0x2cf   :  { %v3110_v22 = vadd.f32 %v932_v43, %v3088_v20 }
 0x2d0   :  { %v816_v40 = vmul.f32 %v2386_v18, %v815_v45  ;;  %1069 = vmatpush.msrb.mxu2 %v978_v26 }
 0x2d1   :  { %1029 = vmatmul.f32.gmra.mxu2 %v3110_v22 }
 0x2d2   :  { %v820_v55 = vsel %vm819_vm14, %v2386_v18, %v816_v40  ;;  %1070 = vmatpush.msrb.mxu2 %v976_v9 }
 0x2d3   :  { %624 = vadd.xlane.f32.xlu2 %v594_v53  ;;  %v917_v24 = vmul.f32 %v820_v55, %v3010_v32  ;;  %v3159_v55 = vadd.f32 %v3099_v14, %v2920_v16  ;;  %v968_v14 = vld [vmem:[#allocation4 + $0x48] sm:$0xff] }
 0x2d4   :  { %1071 = vmatpush.msrb.mxu2 %v974_v49 }
 0x2d5   :  { %v933_v47 = vmul.f32 %v917_v24, %v3085_v60  ;;  %v596_v16 = vmax.f32 %v3159_v55, 0.0 }
 0x2d7   :  { %v3122_v6 = vadd.f32 %v933_v47, %v3088_v20  ;;  %v972_v47 = vld [vmem:[#allocation4 + $0x68] sm:$0xff] }
 0x2d8   :  { %1072 = vmatpush.msrb.mxu2 %v972_v47 }
 0x2d9   :  { %1032 = vmatmul.f32.gmra.mxu2 %v3122_v6 }
 0x2db   :  { %630 = vadd.xlane.f32.xlu2 %v597_v30 }
 0x30e   :  { %v702_v32 = vpop.xlane.xlu2 %701 }
 0x30f   :  { %v726_v62 = vmul.f32 %v702_v32, %v2966_v51 }
 0x311   :  { %v742_v17 = vadd.f32 1e-05, %v726_v62 }
 0x313   :  { %2387 = vrsqrt.f32 %v742_v17  ;;  %vm827_vm1 = vweird.f32 %v742_v17 }
 0x316   :  { %v605_v48 = vpop.xlane.xlu2 %604 }
 0x317   :  { %v704_v33 = vpop.xlane.xlu1 %703  ;;  %v641_v34 = vmul.f32 %v2966_v51, %v605_v48 }
 0x318   :  { %v727_v27 = vmul.f32 %v704_v33, %v2966_v51  ;;  %v966_v33 = vld [vmem:[#allocation4 + $0x38] sm:$0xff] }
 0x319   :  { %v2388_v59 = vpop.eup %2387  ;;  %v3133_v0 = vsub.f32 %v584_v21, %v641_v34 }
 0x31a   :  { %v743_v4 = vadd.f32 1e-05, %v727_v27  ;;  %v822_v8 = vmul.f32 %v2388_v59, %v742_v17  ;;  %vm828_vm15 = vweird.f32 %v2388_v59 }
 0x31b   :  { %v673_v11 = vmul.f32 %v3133_v0, %v3133_v0  ;;  %vm829_vm2 = vmor %vm827_vm1, %vm828_vm15 }
 0x31c   :  { %2389 = vrsqrt.f32 %v743_v4  ;;  %v823_v12 = vmul.f32 %v2388_v59, %v822_v8  ;;  %vm837_vm4 = vweird.f32 %v743_v4 }
 0x31d   :  { %691 = vadd.xlane.f32.xlu0 %v673_v11 }
 0x31e   :  { %v824_v13 = vmul.f32 0.5, %v823_v12 }
 0x31f   :  { %v607_v2 = vpop.xlane.xlu1 %606  ;;  %v706_v57 = vpop.xlane.xlu0 %705 }
 0x320   :  { %v642_v21 = vmul.f32 %v2966_v51, %v607_v2  ;;  %v728_v3 = vmul.f32 %v706_v57, %v2966_v51  ;;  %v825_v44 = vsub.f32 1.5, %v824_v13  ;;  %v962_v2 = vld [vmem:[#allocation4 + $0x18] sm:$0xff]  ;;  %v960_v57 = vld [vmem:[#allocation4 + $0x8] sm:$0xff] }
 0x322   :  { %v2390_v18 = vpop.eup %2389  ;;  %v3145_v7 = vsub.f32 %v585_v41, %v642_v21  ;;  %v3147_v1 = vadd.f32 1e-05, %v728_v3  ;;  %v826_v29 = vmul.f32 %v2388_v59, %v825_v44 }
 0x323   :  { %v832_v36 = vmul.f32 %v2390_v18, %v743_v4  ;;  %vm838_vm3 = vweird.f32 %v2390_v18 }
 0x324   :  { %2391 = vrsqrt.f32 %v3147_v1  ;;  %v674_v35 = vmul.f32 %v3145_v7, %v3145_v7  ;;  %v830_v37 = vsel %vm829_vm2, %v2388_v59, %v826_v29  ;;  %vm839_vm5 = vmor %vm837_vm4, %vm838_vm3  ;;  %vm847_vm0 = vweird.f32 %v3147_v1 }
 0x325   :  { %v833_v43 = vmul.f32 %v2390_v18, %v832_v36  ;;  %626 = vadd.xlane.f32.xlu0 %v595_v56  ;;  %v918_v45 = vmul.f32 %v830_v37, %v3027_v10  ;;  %v970_v10 = vld [vmem:[#allocation4 + $0x58] sm:$0xff] }
 0x326   :  { %v708_v41 = vpop.xlane.xlu2 %707  ;;  %693 = vadd.xlane.f32.xlu1 %v674_v35  ;;  %1073 = vmatpush.msrb.mxu2 %v970_v10 }
 0x327   :  { %v834_v40 = vmul.f32 0.5, %v833_v43  ;;  %v729_v63 = vmul.f32 %v708_v41, %v2966_v51  ;;  %v934_v24 = vmul.f32 %v918_v45, %v3085_v60 }
 0x328   :  { %1074 = vmatpush.msrb.mxu2 %v968_v14 }
 0x329   :  { %v835_v42 = vsub.f32 1.5, %v834_v40  ;;  %v745_v52 = vadd.f32 1e-05, %v729_v63  ;;  %v3163_v32 = vadd.f32 %v934_v24, %v3088_v20 }
 0x32a   :  { %v2392_v54 = vpop.eup %2391  ;;  %1075 = vmatpush.msrb.mxu2 %v966_v33 }
 0x32b   :  { %v836_v62 = vmul.f32 %v2390_v18, %v835_v42  ;;  %v842_v17 = vmul.f32 %v2392_v54, %v3147_v1  ;;  %2393 = vrsqrt.f32 %v745_v52  ;;  %1035 = vmatmul.f32.gmra.mxu2 %v3163_v32  ;;  %vm848_vm6 = vweird.f32 %v2392_v54 }
 0x32c   :  { %1076 = vmatpush.msrb.mxu2 %v964_v5  ;;  %vm849_vm7 = vmor %vm847_vm0, %vm848_vm6  ;;  %vm857_vm9 = vweird.f32 %v745_v52 }
 0x32d   :  { %v843_v39 = vmul.f32 %v2392_v54, %v842_v17  ;;  %v840_v31 = vsel %vm839_vm5, %v2390_v18, %v836_v62 }
 0x32e   :  { %628 = vadd.xlane.f32.xlu1 %v596_v16  ;;  %v919_v48 = vmul.f32 %v840_v31, %v3038_v15  ;;  %v710_v27 = vpop.xlane.xlu0 %709  ;;  %1077 = vmatpush.msrb.mxu2 %v962_v2 }
 0x32f   :  { %v844_v34 = vmul.f32 0.5, %v843_v39  ;;  %v730_v59 = vmul.f32 %v710_v27, %v2966_v51 }
 0x330   :  { %v935_v4 = vmul.f32 %v919_v48, %v3085_v60  ;;  %1078 = vmatpush.msrb.mxu2 %v960_v57 }
 0x331   :  { %v2394_v26 = vpop.eup %2393  ;;  %v845_v8 = vsub.f32 1.5, %v844_v34  ;;  %v746_v12 = vadd.f32 1e-05, %v730_v59 }
 0x332   :  { %v852_v11 = vmul.f32 %v2394_v26, %v745_v52  ;;  %v3174_v13 = vadd.f32 %v935_v4, %v3088_v20  ;;  %vm858_vm8 = vweird.f32 %v2394_v26 }
 0x333   :  { %v846_v15 = vmul.f32 %v2392_v54, %v845_v8  ;;  %2395 = vrsqrt.f32 %v746_v12  ;;  %vm859_vm10 = vmor %vm857_vm9, %vm858_vm8  ;;  %vm867_vm12 = vweird.f32 %v746_v12 }
 0x334   :  { %v853_v21 = vmul.f32 %v2394_v26, %v852_v11  ;;  %1038 = vmatmul.f32.gmra.mxu2 %v3174_v13 }
 0x335   :  { %v850_v3 = vsel %vm849_vm7, %v2392_v54, %v846_v15 }
 0x336   :  { %v854_v44 = vmul.f32 0.5, %v853_v21  ;;  %v920_v18 = vmul.f32 %v850_v3, %v3052_v38  ;;  %v688_v29 = vpop.xlane.xlu1 %687 }
 0x337   :  { %v719_v9 = vmul.f32 %v688_v29, %v2966_v51 }
 0x338   :  { %v855_v36 = vsub.f32 1.5, %v854_v44  ;;  %v936_v35 = vmul.f32 %v920_v18, %v3085_v60 }
 0x339   :  { %v2396_v1 = vpop.eup %2395  ;;  %v735_v43 = vadd.f32 1e-05, %v719_v9 }
 0x33a   :  { %v856_v49 = vmul.f32 %v2394_v26, %v855_v36  ;;  %v3182_v37 = vadd.f32 %v936_v35, %v3088_v20  ;;  %v862_v41 = vmul.f32 %v2396_v1, %v746_v12  ;;  %vm868_vm11 = vweird.f32 %v2396_v1 }
 0x33b   :  { %2397 = vrsqrt.f32 %v735_v43  ;;  %vm869_vm13 = vmor %vm867_vm12, %vm868_vm11  ;;  %vm757_vm15 = vweird.f32 %v735_v43 }
 0x33c   :  { %1041 = vmatmul.f32.gmra.mxu2 %v3182_v37  ;;  %v860_v38 = vsel %vm859_vm10, %v2394_v26, %v856_v49  ;;  %v863_v45 = vmul.f32 %v2396_v1, %v862_v41 }
 0x33d   :  { %v921_v40 = vmul.f32 %v860_v38, %v3063_v50 }
 0x33e   :  { %v864_v63 = vmul.f32 0.5, %v863_v45  ;;  %v690_v24 = vpop.xlane.xlu2 %689 }
 0x33f   :  { %v937_v47 = vmul.f32 %v921_v40, %v3085_v60  ;;  %v720_v42 = vmul.f32 %v690_v24, %v2966_v51 }
 0x340   :  { %v865_v52 = vsub.f32 1.5, %v864_v63 }
 0x341   :  { %v2398_v54 = vpop.eup %2397  ;;  %v736_v10 = vadd.f32 1e-05, %v720_v42  ;;  %v3189_v62 = vadd.f32 %v937_v47, %v3088_v20 }
 0x342   :  { %v866_v17 = vmul.f32 %v2396_v1, %v865_v52  ;;  %v752_v14 = vmul.f32 %v2398_v54, %v735_v43  ;;  %vm758_vm14 = vweird.f32 %v2398_v54 }
 0x343   :  { %2399 = vrsqrt.f32 %v736_v10  ;;  %vm759_vm1 = vmor %vm757_vm15, %vm758_vm14  ;;  %vm767_vm3 = vweird.f32 %v736_v10 }
 0x344   :  { %1044 = vmatmul.f32.gmra.mxu2 %v3189_v62  ;;  %v753_v50 = vmul.f32 %v2398_v54, %v752_v14  ;;  %v870_v39 = vsel %vm869_vm13, %v2396_v1, %v866_v17 }
 0x345   :  { %v922_v31 = vmul.f32 %v870_v39, %v3071_v61 }
 0x346   :  { %v754_v48 = vmul.f32 0.5, %v753_v50  ;;  %v625_v33 = vpop.xlane.xlu2 %624 }
 0x347   :  { %v651_v34 = vmul.f32 %v2966_v51, %v625_v33  ;;  %v938_v27 = vmul.f32 %v922_v31, %v3085_v60 }
 0x348   :  { %v755_v59 = vsub.f32 1.5, %v754_v48 }
 0x349   :  { %v2400_v4 = vpop.eup %2399  ;;  %v3197_v5 = vsub.f32 %v594_v53, %v651_v34  ;;  %v3200_v26 = vadd.f32 %v938_v27, %v3088_v20 }
 0x34a   :  { %v756_v8 = vmul.f32 %v2398_v54, %v755_v59  ;;  %v762_v11 = vmul.f32 %v2400_v4, %v736_v10  ;;  %vm768_vm2 = vweird.f32 %v2400_v4 }
 0x34b   :  { %v683_v61 = vmul.f32 %v3197_v5, %v3197_v5  ;;  %vm769_vm4 = vmor %vm767_vm3, %vm768_vm2 }
 0x34c   :  { %1047 = vmatmul.f32.gmra.mxu2 %v3200_v26  ;;  %v763_v12 = vmul.f32 %v2400_v4, %v762_v11  ;;  %v760_v2 = vsel %vm759_vm1, %v2398_v54, %v756_v8  ;;  %v3219_v49 = vpop.f32.mrf.mxu2 }
 0x34d   :  { %711 = vadd.xlane.f32.xlu0 %v683_v61  ;;  %v911_v15 = vmul.f32 %v760_v2, %v3081_v28 }
 0x34e   :  { %v764_v23 = vmul.f32 0.5, %v763_v12  ;;  %v631_v53 = vpop.xlane.xlu2 %630 }
 0x34f   :  { %v654_v57 = vmul.f32 %v2966_v51, %v631_v53  ;;  %v927_v21 = vmul.f32 %v911_v15, %v3085_v60 }
 0x350   :  { %v765_v3 = vsub.f32 1.5, %v764_v23 }
 0x351   :  { %v3210_v44 = vsub.f32 %v597_v30, %v654_v57  ;;  %v943_v18 = vadd.f32 %v927_v21, %v3088_v20 }
 0x352   :  { %v766_v29 = vmul.f32 %v2400_v4, %v765_v3 }
 0x353   :  { %1014 = vmatmul.f32.vlgmr.msra.gmra.mxu1 %v943_v18  ;;  %v686_v28 = vmul.f32 %v3210_v44, %v3210_v44 }
 0x354   :  { %1079 = vmatmul.f32.vlgmr.msrb.gmra.mxu2 %v943_v18  ;;  %v770_v36 = vsel %vm769_vm4, %v2400_v4, %v766_v29  ;;  %v3227_v47 = vpop.f32.mrf.mxu2 }
 0x355   :  { %717 = vadd.xlane.f32.xlu0 %v686_v28  ;;  %v912_v9 = vmul.f32 %v770_v36, %v3094_v58 }
 0x357   :  { %v928_v35 = vmul.f32 %v912_v9, %v3085_v60  ;;  %v992_v9 = vld [vmem:[#allocation7 + $0x3] ss:$8 sm:$0x3] }
 0x359   :  { %v944_v25 = vadd.f32 %v928_v35, %v3088_v20 }
 0x35b   :  { %1017 = vmatmul.f32.gmra.mxu1 %v944_v25 }
 0x35c   :  { %1082 = vmatmul.f32.gmra.mxu2 %v944_v25  ;;  %v3238_v33 = vpop.f32.mrf.mxu2 }
 0x390   :  { %v692_v30 = vpop.xlane.xlu0 %691 }
 0x391   :  { %v721_v1 = vmul.f32 %v692_v30, %v2966_v51  ;;  %v3260_v30 = vperm.slane %v992_v9, 0 }
 0x393   :  { %v737_v43 = vadd.f32 1e-05, %v721_v1  ;;  %v3262_v1 = vperm.slane %v992_v9, 1 }
 0x395   :  { %2401 = vrsqrt.f32 %v737_v43  ;;  %vm777_vm6 = vweird.f32 %v737_v43 }
 0x398   :  { %v627_v38 = vpop.xlane.xlu0 %626 }
 0x399   :  { %v694_v41 = vpop.xlane.xlu1 %693  ;;  %v652_v40 = vmul.f32 %v2966_v51, %v627_v38 }
 0x39a   :  { %v722_v45 = vmul.f32 %v694_v41, %v2966_v51 }
 0x39b   :  { %v2402_v58 = vpop.eup %2401  ;;  %v3225_v24 = vsub.f32 %v595_v56, %v652_v40 }
 0x39c   :  { %v738_v63 = vadd.f32 1e-05, %v722_v45  ;;  %v772_v42 = vmul.f32 %v2402_v58, %v737_v43  ;;  %vm778_vm5 = vweird.f32 %v2402_v58 }
 0x39d   :  { %v684_v52 = vmul.f32 %v3225_v24, %v3225_v24  ;;  %vm779_vm0 = vmor %vm777_vm6, %vm778_vm5 }
 0x39e   :  { %2403 = vrsqrt.f32 %v738_v63  ;;  %v773_v54 = vmul.f32 %v2402_v58, %v772_v42  ;;  %vm787_vm8 = vweird.f32 %v738_v63 }
 0x39f   :  { %713 = vadd.xlane.f32.xlu1 %v684_v52 }
 0x3a0   :  { %v774_v10 = vmul.f32 0.5, %v773_v54 }
 0x3a1   :  { %v629_v17 = vpop.xlane.xlu1 %628 }
 0x3a2   :  { %v653_v14 = vmul.f32 %v2966_v51, %v629_v17  ;;  %v775_v50 = vsub.f32 1.5, %v774_v10 }
 0x3a4   :  { %v2404_v39 = vpop.eup %2403  ;;  %v3234_v46 = vsub.f32 %v596_v16, %v653_v14  ;;  %v776_v56 = vmul.f32 %v2402_v58, %v775_v50 }
 0x3a5   :  { %v782_v31 = vmul.f32 %v2404_v39, %v738_v63  ;;  %vm788_vm7 = vweird.f32 %v2404_v39 }
 0x3a6   :  { %v685_v48 = vmul.f32 %v3234_v46, %v3234_v46  ;;  %v780_v27 = vsel %vm779_vm0, %v2402_v58, %v776_v56  ;;  %vm789_vm9 = vmor %vm787_vm8, %vm788_vm7 }
 0x3a7   :  { %v783_v34 = vmul.f32 %v2404_v39, %v782_v31  ;;  %v913_v59 = vmul.f32 %v780_v27, %v3133_v0 }
 0x3a8   :  { %715 = vadd.xlane.f32.xlu2 %v685_v48 }
 0x3a9   :  { %v784_v4 = vmul.f32 0.5, %v783_v34  ;;  %v929_v8 = vmul.f32 %v913_v59, %v3085_v60 }
 0x3ab   :  { %v785_v55 = vsub.f32 1.5, %v784_v4  ;;  %v945_v16 = vadd.f32 %v929_v8, %v3088_v20 }
 0x3ad   :  { %v786_v11 = vmul.f32 %v2404_v39, %v785_v55  ;;  %1020 = vmatmul.f32.gmra.mxu1 %v945_v16  ;;  %1085 = vmatmul.f32.gmra.mxu2 %v945_v16 }
 0x3ae   :  { %v3243_v61 = vpop.f32.mrf.mxu2 }
 0x3af   :  { %v790_v12 = vsel %vm789_vm9, %v2404_v39, %v786_v11 }
 0x3b0   :  { %v914_v2 = vmul.f32 %v790_v12, %v3145_v7 }
 0x3b2   :  { %v930_v15 = vmul.f32 %v914_v2, %v3085_v60 }
 0x3b4   :  { %v946_v0 = vadd.f32 %v930_v15, %v3088_v20 }
 0x3b6   :  { %1023 = vmatmul.f32.gmra.mxu1 %v946_v0  ;;  %1088 = vmatmul.f32.gmra.mxu2 %v946_v0 }
 0x3b7   :  { %v3248_v23 = vpop.f32.mrf.mxu2 }
 0x3be   :  { %1091 = vmatmul.f32.gmra.mxu2 %v3097_v19 }
 0x3bf   :  { %v3251_v53 = vpop.f32.mrf.mxu2 }
 0x3c0   :  { %v712_v57 = vpop.xlane.xlu0 %711 }
 0x3c1   :  { %v731_v21 = vmul.f32 %v712_v57, %v2966_v51 }
 0x3c3   :  { %v747_v3 = vadd.f32 1e-05, %v731_v21 }
 0x3c5   :  { %2405 = vrsqrt.f32 %v747_v3  ;;  %vm877_vm11 = vweird.f32 %v747_v3 }
 0x3c6   :  { %1094 = vmatmul.f32.gmra.mxu2 %v3110_v22 }
 0x3c7   :  { %v3255_v7 = vpop.f32.mrf.mxu2 }
 0x3cb   :  { %v2406_v18 = vpop.eup %2405 }
 0x3cc   :  { %v872_v29 = vmul.f32 %v2406_v18, %v747_v3  ;;  %vm878_vm10 = vweird.f32 %v2406_v18 }
 0x3cd   :  { %vm879_vm12 = vmor %vm877_vm11, %vm878_vm10 }
 0x3ce   :  { %1097 = vmatmul.f32.gmra.mxu2 %v3122_v6  ;;  %v873_v28 = vmul.f32 %v2406_v18, %v872_v29 }
 0x3cf   :  { %v3258_v36 = vpop.f32.mrf.mxu2 }
 0x3d0   :  { %v874_v19 = vmul.f32 0.5, %v873_v28  ;;  %v1015_v35 = vpop.f32.mrf.mxu1 }
 0x3d1   :  { %v3265_v22 = vadd.f32 %v1015_v35, %v3260_v30 }
 0x3d2   :  { %v875_v25 = vsub.f32 1.5, %v874_v19 }
 0x3d3   :  { %v1128_v40 = vmax.f32 %v3265_v22, 0.0  ;;  %v3388_v22 = vadd.f32 %v3243_v61, %v3260_v30 }
 0x3d4   :  { %v876_v43 = vmul.f32 %v2406_v18, %v875_v25 }
 0x3d6   :  { %1100 = vmatmul.f32.gmra.mxu2 %v3163_v32  ;;  %v880_v6 = vsel %vm879_vm12, %v2406_v18, %v876_v43 }
 0x3d7   :  { %v1080_v41 = vpop.f32.mrf.mxu2  ;;  %v923_v45 = vmul.f32 %v880_v6, %v3197_v5 }
 0x3d8   :  { %v3269_v38 = vadd.f32 %v1080_v41, %v3262_v1  ;;  %v1018_v42 = vpop.f32.mrf.mxu1 }
 0x3d9   :  { %v939_v63 = vmul.f32 %v923_v45, %v3085_v60  ;;  %v3281_v54 = vadd.f32 %v1018_v42, %v3260_v30 }
 0x3da   :  { %v1129_v58 = vmax.f32 %v3269_v38, 0.0 }
 0x3db   :  { %v955_v52 = vadd.f32 %v939_v63, %v3088_v20  ;;  %v1130_v17 = vmax.f32 %v3281_v54, 0.0  ;;  %v3414_v54 = vadd.f32 %v3248_v23, %v3260_v30 }
 0x3dc   :  { %v1164_v32 = vadd.f32 %v1129_v58, %v1128_v40 }
 0x3dd   :  { %1050 = vmatmul.f32.vlgmr.msrb.gmra.mxu3 %v955_v52 }
 0x3de   :  { %1103 = vmatmul.f32.gmra.mxu2 %v3174_v13  ;;  %1165 = vadd.xlane.f32.xlu1 %v1164_v32  ;;  %v718_v13 = vpop.xlane.xlu0 %717 }
 0x3df   :  { %v1083_v5 = vpop.f32.mrf.mxu2  ;;  %v734_v39 = vmul.f32 %v718_v13, %v2966_v51 }
 0x3e0   :  { %v3285_v10 = vadd.f32 %v1083_v5, %v3262_v1 }
 0x3e1   :  { %v750_v56 = vadd.f32 1e-05, %v734_v39 }
 0x3e2   :  { %v1131_v14 = vmax.f32 %v3285_v10, 0.0 }
 0x3e3   :  { %2407 = vrsqrt.f32 %v750_v56  ;;  %vm907_vm5 = vweird.f32 %v750_v56 }
 0x3e4   :  { %v1167_v50 = vadd.f32 %v1131_v14, %v1130_v17 }
 0x3e6   :  { %1168 = vadd.xlane.f32.xlu2 %v1167_v50  ;;  %1106 = vmatmul.f32.gmra.mxu2 %v3182_v37 }
 0x3e9   :  { %v2408_v59 = vpop.eup %2407 }
 0x3ea   :  { %vm908_vm2 = vweird.f32 %v2408_v59 }
 0x3eb   :  { %vm909_vm6 = vmor %vm907_vm5, %vm908_vm2 }
 0x3ee   :  { %1109 = vmatmul.f32.gmra.mxu2 %v3189_v62  ;;  %v902_v62 = vmul.f32 %v2408_v59, %v750_v56 }
 0x3f0   :  { %v903_v16 = vmul.f32 %v2408_v59, %v902_v62 }
 0x3f2   :  { %v904_v15 = vmul.f32 0.5, %v903_v16 }
 0x3f4   :  { %v905_v29 = vsub.f32 1.5, %v904_v15 }
 0x3f6   :  { %1112 = vmatmul.f32.gmra.mxu2 %v3200_v26  ;;  %v906_v43 = vmul.f32 %v2408_v59, %v905_v29 }
 0x3fe   :  { %1115 = vmatmul.f32.gmra.mxu2 %v955_v52  ;;  %v910_v52 = vsel %vm909_vm6, %v2408_v59, %v906_v43 }
 0x412   :  { %v714_v31 = vpop.xlane.xlu1 %713 }
 0x413   :  { %v732_v48 = vmul.f32 %v714_v31, %v2966_v51  ;;  %v926_v31 = vmul.f32 %v910_v52, %v3210_v44 }
 0x415   :  { %v748_v34 = vadd.f32 1e-05, %v732_v48  ;;  %v2591_v48 = vmov 256.0   ;;  %v942_v59 = vmul.f32 %v926_v31, %v3085_v60 }
 0x417   :  { %2409 = vrsqrt.f32 %v748_v34  ;;  %vm887_vm14 = vweird.f32 %v748_v34  ;;  %v958_v62 = vadd.f32 %v942_v59, %v3088_v20 }
 0x41b   :  { %v716_v27 = vpop.xlane.xlu2 %715 }
 0x41c   :  { %v733_v4 = vmul.f32 %v716_v27, %v2966_v51 }
 0x41d   :  { %v2410_v37 = vpop.eup %2409 }
 0x41e   :  { %v749_v8 = vadd.f32 1e-05, %v733_v4  ;;  %v882_v55 = vmul.f32 %v2410_v37, %v748_v34  ;;  %vm888_vm13 = vweird.f32 %v2410_v37 }
 0x41f   :  { %vm889_vm15 = vmor %vm887_vm14, %vm888_vm13 }
 0x420   :  { %2411 = vrsqrt.f32 %v749_v8  ;;  %v883_v26 = vmul.f32 %v2410_v37, %v882_v55  ;;  %vm897_vm3 = vweird.f32 %v749_v8  ;;  %v3334_v55 = vadd.f32 %v3219_v49, %v3260_v30 }
 0x421   :  { %2413 = vrcp.f32 %v2591_v48  ;;  %v3347_v49 = vadd.f32 %v3227_v47, %v3260_v30  ;;  %v3360_v47 = vadd.f32 %v3238_v33, %v3260_v30 }
 0x422   :  { %v884_v11 = vmul.f32 0.5, %v883_v26 }
 0x423   :  { %v1140_v43 = vmax.f32 %v3360_v47, 0.0 }
 0x424   :  { %v885_v12 = vsub.f32 1.5, %v884_v11  ;;  %v1136_v11 = vmax.f32 %v3334_v55, 0.0  ;;  %v1650_v55 = vld [vmem:[#allocation6 + $0x28] sm:$0xff] }
 0x426   :  { %v2412_v2 = vpop.eup %2411  ;;  %v886_v0 = vmul.f32 %v2410_v37, %v885_v12 }
 0x427   :  { %v892_v57 = vmul.f32 %v2412_v2, %v749_v8  ;;  %vm898_vm1 = vweird.f32 %v2412_v2  ;;  %v2414_v8 = vpop.eup %2413 }
 0x428   :  { %v890_v3 = vsel %vm889_vm15, %v2410_v37, %v886_v0  ;;  %vm899_vm4 = vmor %vm897_vm3, %vm898_vm1  ;;  %v1213_v26 = vmul.f32 256.0, %v2414_v8  ;;  %vm1217_vm0 = vweird.f32 %v2414_v8 }
 0x429   :  { %v893_v21 = vmul.f32 %v2412_v2, %v892_v57  ;;  %v924_v18 = vmul.f32 %v890_v3, %v3225_v24 }
 0x42a   :  { %v1021_v9 = vpop.f32.mrf.mxu1 }
 0x42b   :  { %v894_v28 = vmul.f32 0.5, %v893_v21  ;;  %v940_v19 = vmul.f32 %v924_v18, %v3085_v60  ;;  %v3303_v41 = vadd.f32 %v1021_v9, %v3260_v30  ;;  %v1138_v21 = vmax.f32 %v3347_v49, 0.0  ;;  %v1662_v49 = vld [vmem:[#allocation6 + $0x88] sm:$0xff] }
 0x42d   :  { %v895_v35 = vsub.f32 1.5, %v894_v28  ;;  %v956_v25 = vadd.f32 %v940_v19, %v3088_v20  ;;  %v1132_v32 = vmax.f32 %v3303_v41, 0.0 }
 0x42f   :  { %v896_v6 = vmul.f32 %v2412_v2, %v895_v35  ;;  %1053 = vmatmul.f32.gmra.mxu3 %v956_v25  ;;  %1118 = vmatmul.f32.gmra.mxu2 %v956_v25 }
 0x430   :  { %v1086_v24 = vpop.f32.mrf.mxu2 }
 0x431   :  { %v900_v45 = vsel %vm899_vm4, %v2412_v2, %v896_v6  ;;  %v3306_v63 = vadd.f32 %v1086_v24, %v3262_v1  ;;  %v1214_v2 = vsub.f32 1.0, %v1213_v26  ;;  %v1675_v26 = vld [vmem:[#allocation6 + $0xf0] sm:$0xff] }
 0x432   :  { %v925_v42 = vmul.f32 %v900_v45, %v3234_v46 }
 0x433   :  { %v1133_v5 = vmax.f32 %v3306_v63, 0.0  ;;  %v1024_v13 = vpop.f32.mrf.mxu1  ;;  %v1215_v15 = vmul.f32 %v2414_v8, %v1214_v2  ;;  %v3456_v63 = vadd.f32 %v3255_v7, %v3260_v30 }
 0x434   :  { %v941_v50 = vmul.f32 %v925_v42, %v3085_v60  ;;  %v3319_v46 = vadd.f32 %v1024_v13, %v3260_v30 }
 0x435   :  { %v1170_v39 = vadd.f32 %v1133_v5, %v1132_v32  ;;  %v1216_v18 = vadd.f32 %v2414_v8, %v1215_v15  ;;  %v1148_v7 = vmax.f32 %v3456_v63, 0.0 }
 0x436   :  { %v957_v56 = vadd.f32 %v941_v50, %v3088_v20  ;;  %v1134_v4 = vmax.f32 %v3319_v46, 0.0 }
 0x437   :  { %1171 = vadd.xlane.f32.xlu0 %v1170_v39  ;;  %v3362_v28 = vsel %vm1217_vm0, %v2414_v8, %v1216_v18  ;;  %v1142_v39 = vmax.f32 %v3388_v22, 0.0  ;;  %v1144_v8 = vmax.f32 %v3414_v54, 0.0  ;;  %v1161_v54 = vld [vmem:[#allocation7 + $0x4] ss:$8 sm:$0x3] }
 0x438   :  { %1056 = vmatmul.f32.gmra.mxu3 %v957_v56  ;;  %1121 = vmatmul.f32.gmra.mxu2 %v957_v56 }
 0x439   :  { %v1089_v34 = vpop.f32.mrf.mxu2 }
 0x43a   :  { %v3322_v27 = vadd.f32 %v1089_v34, %v3262_v1 }
 0x43c   :  { %v1135_v37 = vmax.f32 %v3322_v27, 0.0 }
 0x43e   :  { %v1173_v44 = vadd.f32 %v1135_v37, %v1134_v4 }
 0x440   :  { %1174 = vadd.xlane.f32.xlu1 %v1173_v44  ;;  %1059 = vmatmul.f32.gmra.mxu3 %v958_v62 }
 0x441   :  { %1124 = vmatmul.f32.gmra.mxu2 %v958_v62  ;;  %v1092_v60 = vpop.f32.mrf.mxu2  ;;  %v1676_v62 = vld [vmem:[#allocation6 + $0xf8] sm:$0xff] }
 0x442   :  { %v3337_v16 = vadd.f32 %v1092_v60, %v3262_v1  ;;  %1743 = vmatpush.msrb.mxu0 %v1676_v62  ;;  %v3427_v60 = vadd.f32 %v3251_v53, %v3260_v30  ;;  %v1672_v53 = vld [vmem:[#allocation6 + $0xd8] sm:$0xff] }
 0x444   :  { %v1137_v12 = vmax.f32 %v3337_v16, 0.0  ;;  %1744 = vmatpush.msrb.mxu0 %v1675_v26  ;;  %v1146_v15 = vmax.f32 %v3427_v60, 0.0  ;;  %v1657_v26 = vld [vmem:[#allocation6 + $0x60] sm:$0xff] }
 0x446   :  { %v1176_v20 = vadd.f32 %v1137_v12, %v1136_v11 }
 0x448   :  { %1177 = vadd.xlane.f32.xlu2 %v1176_v20 }
 0x449   :  { %v1095_v0 = vpop.f32.mrf.mxu2 }
 0x44a   :  { %v3350_v57 = vadd.f32 %v1095_v0, %v3262_v1 }
 0x44c   :  { %v1139_v3 = vmax.f32 %v3350_v57, 0.0  ;;  %v1661_v57 = vld [vmem:[#allocation6 + $0x80] sm:$0xff] }
 0x44e   :  { %v1179_v29 = vadd.f32 %v1139_v3, %v1138_v21 }
 0x450   :  { %1180 = vadd.xlane.f32.xlu0 %v1179_v29  ;;  %v1674_v29 = vld [vmem:[#allocation6 + $0xe8] sm:$0xff] }
 0x451   :  { %v1098_v9 = vpop.f32.mrf.mxu2  ;;  %v1166_v35 = vpop.xlane.xlu1 %1165  ;;  %1745 = vmatpush.msrb.mxu0 %v1674_v29 }
 0x452   :  { %v3365_v19 = vadd.f32 %v1098_v9, %v3262_v1  ;;  %v1219_v25 = vmul.f32 %v3362_v28, %v1166_v35  ;;  %v1673_v9 = vld [vmem:[#allocation6 + $0xe0] sm:$0xff]  ;;  %v1671_v35 = vld [vmem:[#allocation6 + $0xd0] sm:$0xff] }
 0x453   :  { %1746 = vmatpush.msrb.mxu0 %v1673_v9 }
 0x454   :  { %v1141_v6 = vmax.f32 %v3365_v19, 0.0  ;;  %v3372_v24 = vsub.f32 %v1128_v40, %v1219_v25  ;;  %v3376_v33 = vsub.f32 %v1129_v58, %v1219_v25  ;;  %v1670_v25 = vld [vmem:[#allocation6 + $0xc8] sm:$0xff] }
 0x455   :  { %1747 = vmatpush.msrb.mxu0 %v1672_v53  ;;  %v1655_v53 = vld [vmem:[#allocation6 + $0x50] sm:$0xff] }
 0x456   :  { %v1182_v45 = vadd.f32 %v1141_v6, %v1140_v43  ;;  %v1267_v42 = vmul.f32 %v3372_v24, %v3372_v24  ;;  %v1268_v52 = vmul.f32 %v3376_v33, %v3376_v33 }
 0x457   :  { %1748 = vmatpush.msrb.mxu0 %v1671_v35 }
 0x458   :  { %1183 = vadd.xlane.f32.xlu1 %v1182_v45  ;;  %v1299_v58 = vadd.f32 %v1268_v52, %v1267_v42  ;;  %v1669_v45 = vld [vmem:[#allocation6 + $0xc0] sm:$0xff]  ;;  %v1660_v42 = vld [vmem:[#allocation6 + $0x78] sm:$0xff] }
 0x459   :  { %v1169_v40 = vpop.xlane.xlu2 %1168  ;;  %v1101_v38 = vpop.f32.mrf.mxu2  ;;  %1749 = vmatpush.msrb.mxu0 %v1670_v25  ;;  %v1668_v52 = vld [vmem:[#allocation6 + $0xb8] sm:$0xff]  ;;  %1678 = vmatpush.msra.mxu3 %v1660_v42 }
 0x45a   :  { %v1220_v50 = vmul.f32 %v3362_v28, %v1169_v40  ;;  %v3392_v13 = vadd.f32 %v1101_v38, %v3262_v1  ;;  %1300 = vadd.xlane.f32.xlu2 %v1299_v58 }
 0x45b   :  { %1750 = vmatpush.msrb.mxu0 %v1669_v45  ;;  %v1654_v45 = vld [vmem:[#allocation6 + $0x48] sm:$0xff] }
 0x45c   :  { %v3397_v56 = vsub.f32 %v1130_v17, %v1220_v50  ;;  %v3401_v61 = vsub.f32 %v1131_v14, %v1220_v50  ;;  %v1143_v31 = vmax.f32 %v3392_v13, 0.0 }
 0x45d   :  { %1751 = vmatpush.msrb.mxu0 %v1668_v52 }
 0x45e   :  { %v1185_v48 = vadd.f32 %v1143_v31, %v1142_v39  ;;  %v1269_v34 = vmul.f32 %v3397_v56, %v3397_v56  ;;  %v1270_v59 = vmul.f32 %v3401_v61, %v3401_v61 }
 0x460   :  { %1186 = vadd.xlane.f32.xlu0 %v1185_v48  ;;  %v1302_v10 = vadd.f32 %v1270_v59, %v1269_v34  ;;  %v1659_v34 = vld [vmem:[#allocation6 + $0x70] sm:$0xff]  ;;  %v1051_v42 = vpop.f32.mrf.mxu3 }
 0x461   :  { %v1104_v17 = vpop.f32.mrf.mxu2  ;;  %1679 = vmatpush.msra.mxu3 %v1659_v34  ;;  %v1652_v34 = vld [vmem:[#allocation6 + $0x38] sm:$0xff] }
 0x462   :  { %v3417_v14 = vadd.f32 %v1104_v17, %v3262_v1  ;;  %1303 = vadd.xlane.f32.xlu1 %v1302_v10  ;;  %v1658_v17 = vld [vmem:[#allocation6 + $0x68] sm:$0xff] }
 0x463   :  { %1680 = vmatpush.msra.mxu3 %v1658_v17 }
 0x464   :  { %v1145_v44 = vmax.f32 %v3417_v14, 0.0 }
 0x465   :  { %1681 = vmatpush.msra.mxu3 %v1657_v26 }
 0x466   :  { %v1188_v23 = vadd.f32 %v1145_v44, %v1144_v8 }
 0x468   :  { %1189 = vadd.xlane.f32.xlu2 %v1188_v23 }
 0x469   :  { %v1107_v2 = vpop.f32.mrf.mxu2 }
 0x46a   :  { %v3430_v20 = vadd.f32 %v1107_v2, %v3262_v1  ;;  %v1656_v2 = vld [vmem:[#allocation6 + $0x58] sm:$0xff] }
 0x46b   :  { %1682 = vmatpush.msra.mxu3 %v1656_v2  ;;  %v1665_v2 = vld [vmem:[#allocation6 + $0xa0] sm:$0xff] }
 0x46c   :  { %v1147_v0 = vmax.f32 %v3430_v20, 0.0 }
 0x46d   :  { %1683 = vmatpush.msra.mxu3 %v1655_v53  ;;  %v1649_v53 = vld [vmem:[#allocation6 + $0x20] sm:$0xff] }
 0x46e   :  { %v1191_v18 = vadd.f32 %v1147_v0, %v1146_v15 }
 0x46f   :  { %1684 = vmatpush.msra.mxu3 %v1654_v45  ;;  %v3507_v45 = vadd.f32 %v1051_v42, %v3260_v30  ;;  %v1663_v42 = vld [vmem:[#allocation6 + $0x90] sm:$0xff] }
 0x470   :  { %1192 = vadd.xlane.f32.xlu1 %v1191_v18 }
 0x471   :  { %v1110_v40 = vpop.f32.mrf.mxu2 }
 0x472   :  { %v3452_v62 = vadd.f32 %v1110_v40, %v3262_v1  ;;  %v3482_v40 = vadd.f32 %v3258_v36, %v3260_v30  ;;  %v1651_v36 = vld [vmem:[#allocation6 + $0x30] sm:$0xff] }
 0x474   :  { %v1149_v18 = vmax.f32 %v3452_v62, 0.0 }
 0x476   :  { %v1194_v27 = vadd.f32 %v1149_v18, %v1148_v7 }
 0x479   :  { %v1113_v41 = vpop.f32.mrf.mxu2 }
 0x47a   :  { %v3474_v46 = vadd.f32 %v1113_v41, %v3262_v1  ;;  %v1667_v41 = vld [vmem:[#allocation6 + $0xb0] sm:$0xff] }
 0x47b   :  { %1752 = vmatpush.msrb.mxu0 %v1667_v41  ;;  %v1647_v41 = vld [vmem:[#allocation6 + $0x10] sm:$0xff] }
 0x4aa   :  { %v1172_v38 = vpop.xlane.xlu0 %1171 }
 0x4ab   :  { %v1221_v58 = vmul.f32 %v3362_v28, %v1172_v38  ;;  %v1116_v38 = vpop.f32.mrf.mxu2 }
 0x4ac   :  { %v3500_v16 = vadd.f32 %v1116_v38, %v3262_v1 }
 0x4ad   :  { %v3441_v50 = vsub.f32 %v1132_v32, %v1221_v58  ;;  %v3445_v48 = vsub.f32 %v1133_v5, %v1221_v58 }
 0x4ae   :  { %v1153_v38 = vmax.f32 %v3500_v16, 0.0 }
 0x4af   :  { %v1271_v59 = vmul.f32 %v3441_v50, %v3441_v50  ;;  %v1272_v10 = vmul.f32 %v3445_v48, %v3445_v48 }
 0x4b1   :  { %v1305_v32 = vadd.f32 %v1272_v10, %v1271_v59  ;;  %v1151_v59 = vmax.f32 %v3474_v46, 0.0 }
 0x4b3   :  { %v1175_v23 = vpop.xlane.xlu1 %1174  ;;  %1306 = vadd.xlane.f32.xlu0 %v1305_v32  ;;  %v1150_v32 = vmax.f32 %v3482_v40, 0.0 }
 0x4b4   :  { %v1222_v5 = vmul.f32 %v3362_v28, %v1175_v23 }
 0x4b6   :  { %v3462_v29 = vsub.f32 %v1134_v4, %v1222_v5  ;;  %v3466_v9 = vsub.f32 %v1135_v37, %v1222_v5  ;;  %v1653_v37 = vld [vmem:[#allocation6 + $0x40] sm:$0xff]  ;;  %v1666_v5 = vld [vmem:[#allocation6 + $0xa8] sm:$0xff] }
 0x4b7   :  { %1685 = vmatpush.msra.mxu3 %v1653_v37  ;;  %1753 = vmatpush.msrb.mxu0 %v1666_v5  ;;  %v1664_v37 = vld [vmem:[#allocation6 + $0x98] sm:$0xff]  ;;  %v1646_v5 = vld [vmem:[#allocation6 + $0x8] sm:$0xff] }
 0x4b8   :  { %v1273_v35 = vmul.f32 %v3462_v29, %v3462_v29  ;;  %v1274_v25 = vmul.f32 %v3466_v9, %v3466_v9 }
 0x4b9   :  { %1686 = vmatpush.msra.mxu3 %v1652_v34  ;;  %1754 = vmatpush.msrb.mxu0 %v1665_v2 }
 0x4ba   :  { %v1308_v4 = vadd.f32 %v1274_v25, %v1273_v35  ;;  %v1054_v35 = vpop.f32.mrf.mxu3 }
 0x4bb   :  { %v1178_v52 = vpop.xlane.xlu2 %1177  ;;  %1195 = vadd.xlane.f32.xlu0 %v1194_v27  ;;  %1687 = vmatpush.msra.mxu3 %v1651_v36  ;;  %v1152_v36 = vmax.f32 %v3507_v45, 0.0 }
 0x4bc   :  { %v1223_v58 = vmul.f32 %v3362_v28, %v1178_v52  ;;  %1309 = vadd.xlane.f32.xlu2 %v1308_v4  ;;  %v1119_v4 = vpop.f32.mrf.mxu2  ;;  %v1648_v52 = vld [vmem:[#allocation6 + $0x18] sm:$0xff]  ;;  %1755 = vmatpush.msrb.mxu0 %v1664_v37 }
 0x4bd   :  { %1688 = vmatpush.msra.mxu3 %v1650_v55  ;;  %v3528_v55 = vadd.f32 %v1119_v4, %v3262_v1 }
 0x4be   :  { %v3488_v10 = vsub.f32 %v1136_v11, %v1223_v58  ;;  %v3492_v17 = vsub.f32 %v1137_v12, %v1223_v58  ;;  %v1197_v12 = vadd.f32 %v1151_v59, %v1150_v32  ;;  %1756 = vmatpush.msrb.mxu0 %v1663_v42 }
 0x4bf   :  { %1689 = vmatpush.msra.mxu3 %v1649_v53 }
 0x4c0   :  { %v1275_v26 = vmul.f32 %v3488_v10, %v3488_v10  ;;  %v1276_v23 = vmul.f32 %v3492_v17, %v3492_v17  ;;  %1757 = vmatpush.msrb.mxu0 %v1662_v49 }
 0x4c1   :  { %1690 = vmatpush.msra.mxu3 %v1648_v52 }
 0x4c2   :  { %v1311_v11 = vadd.f32 %v1276_v23, %v1275_v26  ;;  %1758 = vmatpush.msrb.mxu0 %v1661_v57 }
 0x4c3   :  { %v1181_v25 = vpop.xlane.xlu0 %1180  ;;  %1691 = vmatpush.msra.mxu3 %v1647_v41 }
 0x4c4   :  { %v1224_v27 = vmul.f32 %v3362_v28, %v1181_v25  ;;  %1312 = vadd.xlane.f32.xlu1 %v1311_v11  ;;  %1198 = vadd.xlane.f32.xlu2 %v1197_v12  ;;  %v1200_v11 = vadd.f32 %v1153_v38, %v1152_v36  ;;  %v1057_v25 = vpop.f32.mrf.mxu3  ;;  %v1122_v4 = vpop.f32.mrf.mxu2 }
 0x4c5   :  { %1692 = vmatpush.msra.mxu3 %v1646_v5  ;;  %v3551_v5 = vadd.f32 %v1057_v25, %v3260_v30  ;;  %v3554_v47 = vadd.f32 %v1122_v4, %v3262_v1 }
 0x4c6   :  { %v3513_v58 = vsub.f32 %v1138_v21, %v1224_v27  ;;  %v3517_v34 = vsub.f32 %v1139_v3, %v1224_v27  ;;  %v1645_v21 = vld [vmem:[#allocation6] sm:$0xff]  ;;  %v3525_v3 = vadd.f32 %v1054_v35, %v3260_v30  ;;  %v4228_v27 = vmax.f32 %v3528_v55, 0.0 }
 0x4c7   :  { %1693 = vmatpush.msra.mxu3 %v1645_v21  ;;  %v4230_v57 = vmax.f32 %v3551_v5, 0.0 }
 0x4c8   :  { %v1277_v26 = vmul.f32 %v3513_v58, %v3513_v58  ;;  %v1278_v23 = vmul.f32 %v3517_v34, %v3517_v34  ;;  %v4231_v35 = vmax.f32 %v3525_v3, 0.0 }
 0x4ca   :  { %v1314_v12 = vadd.f32 %v1278_v23, %v1277_v26  ;;  %v1203_v19 = vadd.f32 %v4228_v27, %v4231_v35 }
 0x4cb   :  { %v1184_v2 = vpop.xlane.xlu1 %1183 }
 0x4cc   :  { %v1225_v53 = vmul.f32 %v3362_v28, %v1184_v2  ;;  %1201 = vadd.xlane.f32.xlu1 %v1200_v11  ;;  %1315 = vadd.xlane.f32.xlu0 %v1314_v12  ;;  %v4229_v12 = vmax.f32 %v3554_v47, 0.0  ;;  %v1060_v4 = vpop.f32.mrf.mxu3 }
 0x4cd   :  { %v1301_v42 = vpop.xlane.xlu2 %1300  ;;  %v3581_v13 = vadd.f32 %v1060_v4, %v3260_v30 }
 0x4ce   :  { %v3539_v37 = vsub.f32 %v1140_v43, %v1225_v53  ;;  %v3543_v52 = vsub.f32 %v1141_v6, %v1225_v53  ;;  %v1347_v41 = vmul.f32 %v1301_v42, %v3362_v28  ;;  %v1125_v42 = vpop.f32.mrf.mxu2  ;;  %v1206_v22 = vadd.f32 %v4229_v12, %v4230_v57 }
 0x4cf   :  { %v1158_v30 = vmax.f32 %v3581_v13, 0.0 }
 0x4d0   :  { %v1279_v26 = vmul.f32 %v3539_v37, %v3539_v37  ;;  %v1280_v23 = vmul.f32 %v3543_v52, %v3543_v52  ;;  %v1363_v49 = vadd.f32 1e-05, %v1347_v41 }
 0x4d2   :  { %v1317_v43 = vadd.f32 %v1280_v23, %v1279_v26  ;;  %2415 = vrsqrt.f32 %v1363_v49  ;;  %vm1385_vm8 = vweird.f32 %v1363_v49 }
 0x4d3   :  { %v1187_v6 = vpop.xlane.xlu0 %1186 }
 0x4d4   :  { %v1226_v21 = vmul.f32 %v3362_v28, %v1187_v6  ;;  %1318 = vadd.xlane.f32.xlu2 %v1317_v43  ;;  %1204 = vadd.xlane.f32.xlu0 %v1203_v19 }
 0x4d5   :  { %v1304_v11 = vpop.xlane.xlu1 %1303 }
 0x4d6   :  { %v3565_v2 = vsub.f32 %v1142_v39, %v1226_v21  ;;  %v3569_v53 = vsub.f32 %v1143_v31, %v1226_v21  ;;  %v1348_v25 = vmul.f32 %v1304_v11, %v3362_v28  ;;  %v3584_v39 = vadd.f32 %v1125_v42, %v3262_v1 }
 0x4d8   :  { %v1364_v41 = vadd.f32 1e-05, %v1348_v25  ;;  %v1281_v26 = vmul.f32 %v3565_v2, %v3565_v2  ;;  %v1282_v23 = vmul.f32 %v3569_v53, %v3569_v53  ;;  %v2416_v43 = vpop.eup %2415  ;;  %v1159_v1 = vmax.f32 %v3584_v39, 0.0 }
 0x4d9   :  { %v1380_v19 = vmul.f32 %v2416_v43, %v1363_v49  ;;  %vm1386_vm7 = vweird.f32 %v2416_v43 }
 0x4da   :  { %2417 = vrsqrt.f32 %v1364_v41  ;;  %v1320_v6 = vadd.f32 %v1282_v23, %v1281_v26  ;;  %vm1387_vm9 = vmor %vm1385_vm8, %vm1386_vm7  ;;  %vm1395_vm11 = vweird.f32 %v1364_v41 }
 0x4db   :  { %v1190_v31 = vpop.xlane.xlu2 %1189  ;;  %v1381_v21 = vmul.f32 %v2416_v43, %v1380_v19  ;;  %v1163_v19 = vld [vmem:[#allocation7 + $0x5] ss:$8 sm:$0x3] }
 0x4dc   :  { %v1227_v11 = vmul.f32 %v3362_v28, %v1190_v31  ;;  %1207 = vadd.xlane.f32.xlu2 %v1206_v22  ;;  %1321 = vadd.xlane.f32.xlu1 %v1320_v6  ;;  %v1209_v6 = vadd.f32 %v1159_v1, %v1158_v30  ;;  %v3610_v35 = vperm.slane %v1163_v19, 0 }
 0x4dd   :  { %v1382_v25 = vmul.f32 0.5, %v1381_v21  ;;  %v3605_v21 = vperm.slane %v1161_v54, 0 }
 0x4de   :  { %v3589_v27 = vsub.f32 %v1144_v8, %v1227_v11  ;;  %v3593_v12 = vsub.f32 %v1145_v44, %v1227_v11  ;;  %v3607_v11 = vperm.slane %v1161_v54, 1 }
 0x4df   :  { %v1383_v42 = vsub.f32 1.5, %v1382_v25 }
 0x4e0   :  { %v2418_v4 = vpop.eup %2417  ;;  %v1283_v26 = vmul.f32 %v3589_v27, %v3589_v27  ;;  %v1284_v23 = vmul.f32 %v3593_v12, %v3593_v12 }
 0x4e1   :  { %v1390_v8 = vmul.f32 %v2418_v4, %v1364_v41  ;;  %v1384_v22 = vmul.f32 %v2416_v43, %v1383_v42  ;;  %vm1396_vm10 = vweird.f32 %v2418_v4 }
 0x4e2   :  { %v1323_v14 = vadd.f32 %v1284_v23, %v1283_v26  ;;  %v3614_v23 = vperm.slane %v1163_v19, 1  ;;  %vm1397_vm12 = vmor %vm1395_vm11, %vm1396_vm10 }
 0x4e3   :  { %v1391_v44 = vmul.f32 %v2418_v4, %v1390_v8  ;;  %v1193_v31 = vpop.xlane.xlu1 %1192  ;;  %v1388_v25 = vsel %vm1387_vm9, %v2416_v43, %v1384_v22 }
 0x4e4   :  { %v1228_v57 = vmul.f32 %v3362_v28, %v1193_v31  ;;  %1324 = vadd.xlane.f32.xlu0 %v1323_v14  ;;  %v1539_v49 = vmul.f32 %v1388_v25, %v3372_v24  ;;  %1210 = vadd.xlane.f32.xlu1 %v1209_v6  ;;  %v1540_v26 = vmul.f32 %v1388_v25, %v3376_v33 }
 0x4e5   :  { %v1392_v42 = vmul.f32 0.5, %v1391_v44 }
 0x4e6   :  { %v3618_v8 = vsub.f32 %v1146_v15, %v1228_v57  ;;  %v3622_v43 = vsub.f32 %v1147_v0, %v1228_v57  ;;  %v1576_v22 = vmul.f32 %v3605_v21, %v1539_v49  ;;  %v1577_v24 = vmul.f32 %v3607_v11, %v1540_v26 }
 0x4e7   :  { %v1393_v54 = vsub.f32 1.5, %v1392_v42 }
 0x4e8   :  { %v1285_v14 = vmul.f32 %v3618_v8, %v3618_v8  ;;  %v1286_v33 = vmul.f32 %v3622_v43, %v3622_v43  ;;  %v1613_v60 = vadd.f32 %v3610_v35, %v1576_v22  ;;  %v1614_v20 = vadd.f32 %v3614_v23, %v1577_v24 }
 0x4e9   :  { %v1394_v19 = vmul.f32 %v2418_v4, %v1393_v54 }
 0x4ea   :  { %v1326_v15 = vadd.f32 %v1286_v33, %v1285_v14  ;;  %1694 = vmatmul.f32.vlgmr.msra.gmra.mxu3 %v1613_v60  ;;  %1759 = vmatmul.f32.vlgmr.msrb.gmra.mxu0 %v1614_v20 }
 0x4eb   :  { %v1398_v0 = vsel %vm1397_vm12, %v2418_v4, %v1394_v19 }
 0x4ec   :  { %1327 = vadd.xlane.f32.xlu2 %v1326_v15  ;;  %v1541_v57 = vmul.f32 %v1398_v0, %v3397_v56  ;;  %v1542_v44 = vmul.f32 %v1398_v0, %v3401_v61 }
 0x4ee   :  { %v1578_v31 = vmul.f32 %v3605_v21, %v1541_v57  ;;  %v1579_v6 = vmul.f32 %v3607_v11, %v1542_v44 }
 0x4f0   :  { %v1615_v41 = vadd.f32 %v3610_v35, %v1578_v31  ;;  %v1616_v25 = vadd.f32 %v3614_v23, %v1579_v6 }
 0x4f2   :  { %1697 = vmatmul.f32.gmra.mxu3 %v1615_v41  ;;  %1762 = vmatmul.f32.gmra.mxu0 %v1616_v25 }
 0x526   :  { %v1307_v49 = vpop.xlane.xlu0 %1306 }
 0x527   :  { %v1349_v42 = vmul.f32 %v1307_v49, %v3362_v28 }
 0x529   :  { %v1365_v26 = vadd.f32 1e-05, %v1349_v42 }
 0x52b   :  { %2419 = vrsqrt.f32 %v1365_v26  ;;  %vm1405_vm14 = vweird.f32 %v1365_v26 }
 0x52e   :  { %v1196_v54 = vpop.xlane.xlu0 %1195 }
 0x52f   :  { %v1310_v4 = vpop.xlane.xlu2 %1309  ;;  %v1229_v61 = vmul.f32 %v3362_v28, %v1196_v54 }
 0x530   :  { %v1350_v56 = vmul.f32 %v1310_v4, %v3362_v28 }
 0x531   :  { %v2420_v22 = vpop.eup %2419  ;;  %v3643_v14 = vsub.f32 %v1148_v7, %v1229_v61  ;;  %v3647_v33 = vsub.f32 %v1149_v18, %v1229_v61 }
 0x532   :  { %v1366_v24 = vadd.f32 1e-05, %v1350_v56  ;;  %v1400_v19 = vmul.f32 %v2420_v22, %v1365_v26  ;;  %vm1406_vm13 = vweird.f32 %v2420_v22 }
 0x533   :  { %v1287_v60 = vmul.f32 %v3643_v14, %v3643_v14  ;;  %v1288_v20 = vmul.f32 %v3647_v33, %v3647_v33  ;;  %vm1407_vm15 = vmor %vm1405_vm14, %vm1406_vm13 }
 0x534   :  { %2421 = vrsqrt.f32 %v1366_v24  ;;  %v1401_v15 = vmul.f32 %v2420_v22, %v1400_v19  ;;  %vm1415_vm2 = vweird.f32 %v1366_v24 }
 0x535   :  { %v1329_v0 = vadd.f32 %v1288_v20, %v1287_v60 }
 0x536   :  { %v1402_v57 = vmul.f32 0.5, %v1401_v15 }
 0x537   :  { %v1199_v44 = vpop.xlane.xlu2 %1198  ;;  %v1313_v31 = vpop.xlane.xlu1 %1312  ;;  %1330 = vadd.xlane.f32.xlu0 %v1329_v0 }
 0x538   :  { %v1230_v63 = vmul.f32 %v3362_v28, %v1199_v44  ;;  %v1351_v7 = vmul.f32 %v1313_v31, %v3362_v28  ;;  %v1403_v62 = vsub.f32 1.5, %v1402_v57 }
 0x53a   :  { %v2422_v18 = vpop.eup %2421  ;;  %v3657_v6 = vsub.f32 %v1150_v32, %v1230_v63  ;;  %v3661_v41 = vsub.f32 %v1151_v59, %v1230_v63  ;;  %v1367_v25 = vadd.f32 1e-05, %v1351_v7  ;;  %v1404_v49 = vmul.f32 %v2420_v22, %v1403_v62 }
 0x53b   :  { %v1410_v42 = vmul.f32 %v2422_v18, %v1366_v24  ;;  %vm1416_vm1 = vweird.f32 %v2422_v18 }
 0x53c   :  { %2423 = vrsqrt.f32 %v1367_v25  ;;  %v1289_v4 = vmul.f32 %v3657_v6, %v3657_v6  ;;  %v1290_v54 = vmul.f32 %v3661_v41, %v3661_v41  ;;  %v1408_v40 = vsel %vm1407_vm15, %v2420_v22, %v1404_v49  ;;  %vm1417_vm3 = vmor %vm1415_vm2, %vm1416_vm1 }
 0x53d   :  { %v1411_v56 = vmul.f32 %v2422_v18, %v1410_v42  ;;  %v1543_v61 = vmul.f32 %v1408_v40, %v3441_v50  ;;  %v1544_v46 = vmul.f32 %v1408_v40, %v3445_v48  ;;  %vm1425_vm5 = vweird.f32 %v1367_v25 }
 0x53e   :  { %v1332_v32 = vadd.f32 %v1290_v54, %v1289_v4 }
 0x53f   :  { %v1412_v59 = vmul.f32 0.5, %v1411_v56  ;;  %v1202_v19 = vpop.xlane.xlu1 %1201  ;;  %v1316_v60 = vpop.xlane.xlu0 %1315  ;;  %v1580_v15 = vmul.f32 %v3605_v21, %v1543_v61  ;;  %v1581_v0 = vmul.f32 %v3607_v11, %v1544_v46 }
 0x540   :  { %v1231_v26 = vmul.f32 %v3362_v28, %v1202_v19  ;;  %v1352_v20 = vmul.f32 %v1316_v60, %v3362_v28  ;;  %1333 = vadd.xlane.f32.xlu1 %v1332_v32  ;;  %v4233_v60 = vmax.f32 %v3528_v55, 0.0 }
 0x541   :  { %v1413_v57 = vsub.f32 1.5, %v1412_v59  ;;  %v1617_v31 = vadd.f32 %v3610_v35, %v1580_v15  ;;  %v1618_v62 = vadd.f32 %v3614_v23, %v1581_v0 }
 0x542   :  { %v2424_v22 = vpop.eup %2423  ;;  %v3675_v50 = vsub.f32 %v1152_v36, %v1231_v26  ;;  %v3679_v48 = vsub.f32 %v1153_v38, %v1231_v26  ;;  %v3681_v44 = vadd.f32 1e-05, %v1352_v20 }
 0x543   :  { %v1414_v63 = vmul.f32 %v2422_v18, %v1413_v57  ;;  %v1420_v7 = vmul.f32 %v2424_v22, %v1367_v25  ;;  %1700 = vmatmul.f32.gmra.mxu3 %v1617_v31  ;;  %1765 = vmatmul.f32.gmra.mxu0 %v1618_v62  ;;  %vm1426_vm4 = vweird.f32 %v2424_v22 }
 0x544   :  { %2425 = vrsqrt.f32 %v3681_v44  ;;  %v1291_v45 = vmul.f32 %v3675_v50, %v3675_v50  ;;  %v1292_v16 = vmul.f32 %v3679_v48, %v3679_v48  ;;  %vm1427_vm6 = vmor %vm1425_vm5, %vm1426_vm4  ;;  %vm1435_vm7 = vweird.f32 %v3681_v44 }
 0x545   :  { %v1421_v38 = vmul.f32 %v2424_v22, %v1420_v7  ;;  %v1418_v36 = vsel %vm1417_vm3, %v2422_v18, %v1414_v63 }
 0x546   :  { %v1335_v49 = vadd.f32 %v1292_v16, %v1291_v45  ;;  %v1545_v42 = vmul.f32 %v1418_v36, %v3462_v29  ;;  %v1546_v24 = vmul.f32 %v1418_v36, %v3466_v9  ;;  %v4232_v29 = vmax.f32 %v3525_v3, 0.0 }
 0x547   :  { %v1422_v4 = vmul.f32 0.5, %v1421_v38  ;;  %v1319_v54 = vpop.xlane.xlu2 %1318  ;;  %v1205_v56 = vpop.xlane.xlu0 %1204 }
 0x548   :  { %v1353_v40 = vmul.f32 %v1319_v54, %v3362_v28  ;;  %v1232_v32 = vmul.f32 %v3362_v28, %v1205_v56  ;;  %1336 = vadd.xlane.f32.xlu2 %v1335_v49  ;;  %v1582_v61 = vmul.f32 %v3605_v21, %v1545_v42  ;;  %v1583_v46 = vmul.f32 %v3607_v11, %v1546_v24 }
 0x549   :  { %v1423_v59 = vsub.f32 1.5, %v1422_v4  ;;  %v4234_v54 = vmax.f32 %v3551_v5, 0.0 }
 0x54a   :  { %v2426_v18 = vpop.eup %2425  ;;  %v3696_v19 = vadd.f32 1e-05, %v1353_v40  ;;  %v3700_v9 = vsub.f32 %v4232_v29, %v1232_v32  ;;  %v3704_v26 = vsub.f32 %v4233_v60, %v1232_v32  ;;  %v1619_v20 = vadd.f32 %v3610_v35, %v1582_v61 }
 0x54b   :  { %v1424_v15 = vmul.f32 %v2424_v22, %v1423_v59  ;;  %v1430_v0 = vmul.f32 %v2426_v18, %v3681_v44  ;;  %v1620_v57 = vadd.f32 %v3614_v23, %v1583_v46  ;;  %vm1436_vm0 = vweird.f32 %v2426_v18 }
 0x54c   :  { %2427 = vrsqrt.f32 %v3696_v19  ;;  %1703 = vmatmul.f32.gmra.mxu3 %v1619_v20  ;;  %v1293_v3 = vmul.f32 %v3700_v9, %v3700_v9  ;;  %v1294_v55 = vmul.f32 %v3704_v26, %v3704_v26  ;;  %vm1437_vm8 = vmor %vm1435_vm7, %vm1436_vm0  ;;  %vm1445_vm10 = vweird.f32 %v3696_v19 }
 0x54d   :  { %v1431_v31 = vmul.f32 %v2426_v18, %v1430_v0  ;;  %1768 = vmatmul.f32.gmra.mxu0 %v1620_v57  ;;  %v1428_v63 = vsel %vm1427_vm6, %v2424_v22, %v1424_v15 }
 0x54e   :  { %v1338_v7 = vadd.f32 %v1294_v55, %v1293_v3  ;;  %v1547_v25 = vmul.f32 %v1428_v63, %v3488_v10  ;;  %v1548_v62 = vmul.f32 %v1428_v63, %v3492_v17  ;;  %v4235_v17 = vmax.f32 %v3554_v47, 0.0 }
 0x54f   :  { %v1432_v45 = vmul.f32 0.5, %v1431_v31  ;;  %v1208_v16 = vpop.xlane.xlu2 %1207  ;;  %v1322_v36 = vpop.xlane.xlu1 %1321 }
 0x550   :  { %v1233_v38 = vmul.f32 %v3362_v28, %v1208_v16  ;;  %1339 = vadd.xlane.f32.xlu0 %v1338_v7  ;;  %v1584_v49 = vmul.f32 %v3605_v21, %v1547_v25  ;;  %v1585_v42 = vmul.f32 %v3607_v11, %v1548_v62  ;;  %v1354_v4 = vmul.f32 %v1322_v36, %v3362_v28 }
 0x551   :  { %v1433_v24 = vsub.f32 1.5, %v1432_v45 }
 0x552   :  { %v2428_v22 = vpop.eup %2427  ;;  %v3722_v10 = vsub.f32 %v4234_v54, %v1233_v38  ;;  %v3726_v56 = vsub.f32 %v4235_v17, %v1233_v38  ;;  %v1621_v40 = vadd.f32 %v3610_v35, %v1584_v49  ;;  %v1622_v32 = vadd.f32 %v3614_v23, %v1585_v42 }
 0x553   :  { %v1434_v61 = vmul.f32 %v2426_v18, %v1433_v24  ;;  %v1440_v46 = vmul.f32 %v2428_v22, %v3696_v19  ;;  %v1370_v59 = vadd.f32 1e-05, %v1354_v4  ;;  %vm1446_vm9 = vweird.f32 %v2428_v22 }
 0x554   :  { %1706 = vmatmul.f32.gmra.mxu3 %v1621_v40  ;;  %v1295_v5 = vmul.f32 %v3722_v10, %v3722_v10  ;;  %v1296_v47 = vmul.f32 %v3726_v56, %v3726_v56  ;;  %vm1447_vm11 = vmor %vm1445_vm10, %vm1446_vm9 }
 0x555   :  { %v1441_v29 = vmul.f32 %v2428_v22, %v1440_v46  ;;  %2429 = vrsqrt.f32 %v1370_v59  ;;  %1771 = vmatmul.f32.gmra.mxu0 %v1622_v32  ;;  %v1438_v60 = vsel %vm1437_vm8, %v2426_v18, %v1434_v61  ;;  %vm1455_vm13 = vweird.f32 %v1370_v59 }
 0x556   :  { %v1341_v20 = vadd.f32 %v1296_v47, %v1295_v5  ;;  %v1549_v15 = vmul.f32 %v1438_v60, %v3513_v58  ;;  %v1550_v44 = vmul.f32 %v1438_v60, %v3517_v34 }
 0x557   :  { %v1442_v0 = vmul.f32 0.5, %v1441_v29  ;;  %v1325_v57 = vpop.xlane.xlu0 %1324  ;;  %v1211_v3 = vpop.xlane.xlu1 %1210 }
 0x558   :  { %v1355_v55 = vmul.f32 %v1325_v57, %v3362_v28  ;;  %1342 = vadd.xlane.f32.xlu1 %v1341_v20  ;;  %v1586_v31 = vmul.f32 %v3605_v21, %v1549_v15  ;;  %v1587_v63 = vmul.f32 %v3607_v11, %v1550_v44  ;;  %v1234_v25 = vmul.f32 %v3362_v28, %v1211_v3 }
 0x559   :  { %v1443_v7 = vsub.f32 1.5, %v1442_v0 }
 0x55a   :  { %v1371_v18 = vadd.f32 1e-05, %v1355_v55  ;;  %v1623_v62 = vadd.f32 %v3610_v35, %v1586_v31  ;;  %v1624_v58 = vadd.f32 %v3614_v23, %v1587_v63  ;;  %v3747_v16 = vsub.f32 %v1158_v30, %v1234_v25 }
 0x55b   :  { %v2430_v34 = vpop.eup %2429  ;;  %v1444_v45 = vmul.f32 %v2428_v22, %v1443_v7  ;;  %v3751_v38 = vsub.f32 %v1159_v1, %v1234_v25  ;;  %v3770_v7 = vld [vmem:[#allocation7 + $0x6] ss:$0 sm:$0xff] }
 0x55c   :  { %v1450_v36 = vmul.f32 %v2430_v34, %v1370_v59  ;;  %2431 = vrsqrt.f32 %v1371_v18  ;;  %1709 = vmatmul.f32.gmra.mxu3 %v1623_v62  ;;  %v1297_v49 = vmul.f32 %v3747_v16, %v3747_v16  ;;  %vm1456_vm12 = vweird.f32 %v2430_v34 }
 0x55d   :  { %1774 = vmatmul.f32.gmra.mxu0 %v1624_v58  ;;  %v1298_v42 = vmul.f32 %v3751_v38, %v3751_v38  ;;  %v1448_v19 = vsel %vm1447_vm11, %v2428_v22, %v1444_v45  ;;  %vm1457_vm14 = vmor %vm1455_vm13, %vm1456_vm12  ;;  %vm1465_vm1 = vweird.f32 %v1371_v18 }
 0x55e   :  { %v1451_v24 = vmul.f32 %v2430_v34, %v1450_v36  ;;  %v1551_v13 = vmul.f32 %v1448_v19, %v3539_v37  ;;  %v1552_v30 = vmul.f32 %v1448_v19, %v3543_v52 }
 0x55f   :  { %v1328_v39 = vpop.xlane.xlu2 %1327  ;;  %v1344_v1 = vadd.f32 %v1298_v42, %v1297_v49 }
 0x560   :  { %v1452_v4 = vmul.f32 0.5, %v1451_v24  ;;  %v1356_v54 = vmul.f32 %v1328_v39, %v3362_v28  ;;  %v1588_v17 = vmul.f32 %v3605_v21, %v1551_v13  ;;  %v1589_v40 = vmul.f32 %v3607_v11, %v1552_v30 }
 0x561   :  { %1345 = vadd.xlane.f32.xlu2 %v1344_v1 }
 0x562   :  { %v2432_v32 = vpop.eup %2431  ;;  %v1453_v61 = vsub.f32 1.5, %v1452_v4  ;;  %v1372_v46 = vadd.f32 1e-05, %v1356_v54  ;;  %v1625_v22 = vadd.f32 %v3610_v35, %v1588_v17  ;;  %v1626_v37 = vadd.f32 %v3614_v23, %v1589_v40 }
 0x563   :  { %v1460_v5 = vmul.f32 %v2432_v32, %v1371_v18  ;;  %vm1466_vm15 = vweird.f32 %v2432_v32 }
 0x564   :  { %v1454_v52 = vmul.f32 %v2430_v34, %v1453_v61  ;;  %2433 = vrsqrt.f32 %v1372_v46  ;;  %1712 = vmatmul.f32.gmra.mxu3 %v1625_v22  ;;  %vm1467_vm2 = vmor %vm1465_vm1, %vm1466_vm15  ;;  %vm1475_vm4 = vweird.f32 %v1372_v46 }
 0x565   :  { %v1461_v47 = vmul.f32 %v2432_v32, %v1460_v5  ;;  %1777 = vmatmul.f32.gmra.mxu0 %v1626_v37 }
 0x566   :  { %v1458_v29 = vsel %vm1457_vm14, %v2430_v34, %v1454_v52 }
 0x567   :  { %v1462_v60 = vmul.f32 0.5, %v1461_v47  ;;  %v1553_v20 = vmul.f32 %v1458_v29, %v3565_v2  ;;  %v1554_v15 = vmul.f32 %v1458_v29, %v3569_v53  ;;  %v1760_v25 = vpop.f32.mrf.mxu0 }
 0x569   :  { %v1463_v44 = vsub.f32 1.5, %v1462_v60  ;;  %v1590_v0 = vmul.f32 %v3605_v21, %v1553_v20  ;;  %v1591_v57 = vmul.f32 %v3607_v11, %v1554_v15 }
 0x56a   :  { %v2434_v3 = vpop.eup %2433 }
 0x56b   :  { %v1464_v55 = vmul.f32 %v2432_v32, %v1463_v44  ;;  %v1470_v59 = vmul.f32 %v2434_v3, %v1372_v46  ;;  %v1627_v31 = vadd.f32 %v3610_v35, %v1590_v0  ;;  %v1628_v63 = vadd.f32 %v3614_v23, %v1591_v57 }
 0x56c   :  { %vm1476_vm3 = vweird.f32 %v2434_v3 }
 0x56d   :  { %v1471_v2 = vmul.f32 %v2434_v3, %v1470_v59  ;;  %1715 = vmatmul.f32.gmra.mxu3 %v1627_v31  ;;  %v1468_v53 = vsel %vm1467_vm2, %v2432_v32, %v1464_v55  ;;  %1780 = vmatmul.f32.gmra.mxu0 %v1628_v63  ;;  %v1695_v62 = vpop.f32.mrf.mxu3  ;;  %vm1477_vm5 = vmor %vm1475_vm4, %vm1476_vm3 }
 0x56e   :  { %v1555_v58 = vmul.f32 %v1468_v53, %v3589_v27  ;;  %v1556_v34 = vmul.f32 %v1468_v53, %v3593_v12  ;;  %v1696_v18 = vadd.f32 %v1695_v62, %v3770_v7 }
 0x56f   :  { %v1472_v45 = vmul.f32 0.5, %v1471_v2  ;;  %v1763_v17 = vpop.f32.mrf.mxu0 }
 0x570   :  { %v1592_v36 = vmul.f32 %v3605_v21, %v1555_v58  ;;  %v1593_v49 = vmul.f32 %v3607_v11, %v1556_v34  ;;  %v3777_v19 = vadd.f32 %v1760_v25, %v1696_v18 }
 0x571   :  { %v1473_v42 = vsub.f32 1.5, %v1472_v45 }
 0x572   :  { %v1629_v24 = vadd.f32 %v3610_v35, %v1592_v36  ;;  %v1630_v13 = vadd.f32 %v3614_v23, %v1593_v49  ;;  %v1808_v27 = vmax.f32 %v3777_v19, 0.0 }
 0x573   :  { %v1474_v30 = vmul.f32 %v2434_v3, %v1473_v42 }
 0x574   :  { %1826 = vadd.xlane.f32.xlu0 %v1808_v27 }
 0x575   :  { %1718 = vmatmul.f32.gmra.mxu3 %v1629_v24  ;;  %v1478_v12 = vsel %vm1477_vm5, %v2434_v3, %v1474_v30  ;;  %1783 = vmatmul.f32.gmra.mxu0 %v1630_v13  ;;  %v1698_v39 = vpop.f32.mrf.mxu3 }
 0x576   :  { %v1557_v1 = vmul.f32 %v1478_v12, %v3618_v8  ;;  %v1558_v4 = vmul.f32 %v1478_v12, %v3622_v43  ;;  %v1699_v54 = vadd.f32 %v1698_v39, %v3770_v7 }
 0x578   :  { %v1594_v40 = vmul.f32 %v3605_v21, %v1557_v1  ;;  %v1595_v32 = vmul.f32 %v3607_v11, %v1558_v4  ;;  %v3789_v61 = vadd.f32 %v1763_v17, %v1699_v54 }
 0x57a   :  { %v1631_v46 = vadd.f32 %v3610_v35, %v1594_v40  ;;  %v1632_v22 = vadd.f32 %v3614_v23, %v1595_v32  ;;  %v1809_v37 = vmax.f32 %v3789_v61, 0.0 }
 0x57c   :  { %1828 = vadd.xlane.f32.xlu1 %v1809_v37 }
 0x57d   :  { %1721 = vmatmul.f32.gmra.mxu3 %v1631_v46  ;;  %1786 = vmatmul.f32.gmra.mxu0 %v1632_v22 }
 0x5aa   :  { %v1331_v8 = vpop.xlane.xlu0 %1330 }
 0x5ab   :  { %v1357_v43 = vmul.f32 %v1331_v8, %v3362_v28 }
 0x5ad   :  { %v1373_v5 = vadd.f32 1e-05, %v1357_v43 }
 0x5af   :  { %2435 = vrsqrt.f32 %v1373_v5  ;;  %vm1485_vm0 = vweird.f32 %v1373_v5 }
 0x5b3   :  { %v1334_v52 = vpop.xlane.xlu1 %1333 }
 0x5b4   :  { %v1358_v47 = vmul.f32 %v1334_v52, %v3362_v28 }
 0x5b5   :  { %v2436_v29 = vpop.eup %2435 }
 0x5b6   :  { %v1374_v60 = vadd.f32 1e-05, %v1358_v47  ;;  %v1480_v20 = vmul.f32 %v2436_v29, %v1373_v5  ;;  %vm1486_vm6 = vweird.f32 %v2436_v29 }
 0x5b7   :  { %vm1487_vm7 = vmor %vm1485_vm0, %vm1486_vm6 }
 0x5b8   :  { %2437 = vrsqrt.f32 %v1374_v60  ;;  %v1481_v15 = vmul.f32 %v2436_v29, %v1480_v20  ;;  %vm1495_vm9 = vweird.f32 %v1374_v60 }
 0x5ba   :  { %v1482_v44 = vmul.f32 0.5, %v1481_v15 }
 0x5bb   :  { %v1337_v0 = vpop.xlane.xlu2 %1336 }
 0x5bc   :  { %v1359_v57 = vmul.f32 %v1337_v0, %v3362_v28  ;;  %v1483_v3 = vsub.f32 1.5, %v1482_v44 }
 0x5be   :  { %v2438_v55 = vpop.eup %2437  ;;  %v1375_v59 = vadd.f32 1e-05, %v1359_v57  ;;  %v1484_v31 = vmul.f32 %v2436_v29, %v1483_v3 }
 0x5bf   :  { %v1490_v63 = vmul.f32 %v2438_v55, %v1374_v60  ;;  %vm1496_vm8 = vweird.f32 %v2438_v55 }
 0x5c0   :  { %2439 = vrsqrt.f32 %v1375_v59  ;;  %v1488_v53 = vsel %vm1487_vm7, %v2436_v29, %v1484_v31  ;;  %v1766_v25 = vpop.f32.mrf.mxu0  ;;  %vm1497_vm10 = vmor %vm1495_vm9, %vm1496_vm8  ;;  %vm1505_vm12 = vweird.f32 %v1375_v59 }
 0x5c1   :  { %v1491_v2 = vmul.f32 %v2438_v55, %v1490_v63  ;;  %v1559_v62 = vmul.f32 %v1488_v53, %v3643_v14  ;;  %v1560_v58 = vmul.f32 %v1488_v53, %v3647_v33 }
 0x5c3   :  { %v1492_v34 = vmul.f32 0.5, %v1491_v2  ;;  %v1340_v45 = vpop.xlane.xlu0 %1339  ;;  %v1596_v36 = vmul.f32 %v3605_v21, %v1559_v62  ;;  %v1597_v49 = vmul.f32 %v3607_v11, %v1560_v58 }
 0x5c4   :  { %v1360_v18 = vmul.f32 %v1340_v45, %v3362_v28 }
 0x5c5   :  { %v1493_v42 = vsub.f32 1.5, %v1492_v34  ;;  %v1633_v30 = vadd.f32 %v3610_v35, %v1596_v36  ;;  %v1634_v12 = vadd.f32 %v3614_v23, %v1597_v49 }
 0x5c6   :  { %v2440_v24 = vpop.eup %2439  ;;  %v3804_v13 = vadd.f32 1e-05, %v1360_v18  ;;  %v1701_v39 = vpop.f32.mrf.mxu3 }
 0x5c7   :  { %v1494_v14 = vmul.f32 %v2438_v55, %v1493_v42  ;;  %v1500_v33 = vmul.f32 %v2440_v24, %v1375_v59  ;;  %v1702_v1 = vadd.f32 %v1701_v39, %v3770_v7  ;;  %1724 = vmatmul.f32.gmra.mxu3 %v1633_v30  ;;  %1789 = vmatmul.f32.gmra.mxu0 %v1634_v12  ;;  %vm1506_vm11 = vweird.f32 %v2440_v24 }
 0x5c8   :  { %2441 = vrsqrt.f32 %v3804_v13  ;;  %vm1507_vm13 = vmor %vm1505_vm12, %vm1506_vm11  ;;  %vm1515_vm15 = vweird.f32 %v3804_v13 }
 0x5c9   :  { %v1501_v4 = vmul.f32 %v2440_v24, %v1500_v33  ;;  %v1498_v54 = vsel %vm1497_vm10, %v2438_v55, %v1494_v14  ;;  %v3810_v40 = vadd.f32 %v1766_v25, %v1702_v1 }
 0x5ca   :  { %v1769_v17 = vpop.f32.mrf.mxu0  ;;  %v1561_v32 = vmul.f32 %v1498_v54, %v3657_v6  ;;  %v1562_v46 = vmul.f32 %v1498_v54, %v3661_v41 }
 0x5cb   :  { %v1502_v22 = vmul.f32 0.5, %v1501_v4  ;;  %v1343_v8 = vpop.xlane.xlu1 %1342  ;;  %v1810_v5 = vmax.f32 %v3810_v40, 0.0  ;;  %v2189_v40 = vld [vmem:[%s4225_s4 + $0x58] sm:$0xff] }
 0x5cc   :  { %v1361_v43 = vmul.f32 %v1343_v8, %v3362_v28  ;;  %v1598_v52 = vmul.f32 %v3605_v21, %v1561_v32  ;;  %v1599_v47 = vmul.f32 %v3607_v11, %v1562_v46 }
 0x5cd   :  { %v1503_v29 = vsub.f32 1.5, %v1502_v22  ;;  %1830 = vadd.xlane.f32.xlu2 %v1810_v5 }
 0x5ce   :  { %v2442_v60 = vpop.eup %2441  ;;  %v1377_v20 = vadd.f32 1e-05, %v1361_v43  ;;  %v1635_v6 = vadd.f32 %v3610_v35, %v1598_v52  ;;  %v1636_v41 = vadd.f32 %v3614_v23, %v1599_v47 }
 0x5cf   :  { %v1504_v15 = vmul.f32 %v2440_v24, %v1503_v29  ;;  %v1510_v44 = vmul.f32 %v2442_v60, %v3804_v13  ;;  %v1704_v0 = vpop.f32.mrf.mxu3  ;;  %vm1516_vm14 = vweird.f32 %v2442_v60 }
 0x5d0   :  { %2443 = vrsqrt.f32 %v1377_v20  ;;  %v1705_v57 = vadd.f32 %v1704_v0, %v3770_v7  ;;  %1727 = vmatmul.f32.gmra.mxu3 %v1635_v6  ;;  %1792 = vmatmul.f32.gmra.mxu0 %v1636_v41  ;;  %vm1517_vm1 = vmor %vm1515_vm15, %vm1516_vm14  ;;  %vm1525_vm3 = vweird.f32 %v1377_v20 }
 0x5d1   :  { %v1511_v3 = vmul.f32 %v2442_v60, %v1510_v44  ;;  %v1508_v55 = vsel %vm1507_vm13, %v2440_v24, %v1504_v15 }
 0x5d2   :  { %v1772_v31 = vpop.f32.mrf.mxu0  ;;  %v3824_v63 = vadd.f32 %v1769_v17, %v1705_v57  ;;  %v1563_v2 = vmul.f32 %v1508_v55, %v3675_v50  ;;  %v1564_v53 = vmul.f32 %v1508_v55, %v3679_v48 }
 0x5d3   :  { %v1512_v25 = vmul.f32 0.5, %v1511_v3 }
 0x5d4   :  { %v1346_v59 = vpop.xlane.xlu2 %1345  ;;  %v1811_v62 = vmax.f32 %v3824_v63, 0.0  ;;  %v1600_v58 = vmul.f32 %v3605_v21, %v1563_v2  ;;  %v1601_v34 = vmul.f32 %v3607_v11, %v1564_v53  ;;  %v2185_v63 = vld [vmem:[%s4225_s4 + $0x38] sm:$0xff] }
 0x5d5   :  { %v1513_v45 = vsub.f32 1.5, %v1512_v25  ;;  %v1362_v18 = vmul.f32 %v1346_v59, %v3362_v28 }
 0x5d6   :  { %v2444_v36 = vpop.eup %2443  ;;  %1832 = vadd.xlane.f32.xlu0 %v1811_v62  ;;  %v1637_v50 = vadd.f32 %v3610_v35, %v1600_v58  ;;  %v1638_v48 = vadd.f32 %v3614_v23, %v1601_v34 }
 0x5d7   :  { %v1514_v49 = vmul.f32 %v2442_v60, %v1513_v45  ;;  %v1520_v42 = vmul.f32 %v2444_v36, %v1377_v20  ;;  %v1378_v24 = vadd.f32 1e-05, %v1362_v18  ;;  %v1707_v30 = vpop.f32.mrf.mxu3  ;;  %vm1526_vm2 = vweird.f32 %v2444_v36 }
 0x5d8   :  { %v1708_v12 = vadd.f32 %v1707_v30, %v3770_v7  ;;  %1730 = vmatmul.f32.gmra.mxu3 %v1637_v50  ;;  %1795 = vmatmul.f32.gmra.mxu0 %v1638_v48  ;;  %vm1527_vm4 = vmor %vm1525_vm3, %vm1526_vm2 }
 0x5d9   :  { %v1521_v28 = vmul.f32 %v2444_v36, %v1520_v42  ;;  %2445 = vrsqrt.f32 %v1378_v24  ;;  %v1518_v14 = vsel %vm1517_vm1, %v2442_v60, %v1514_v49  ;;  %vm1535_vm6 = vweird.f32 %v1378_v24 }
 0x5da   :  { %v3838_v33 = vadd.f32 %v1772_v31, %v1708_v12  ;;  %v1565_v39 = vmul.f32 %v1518_v14, %v3700_v9  ;;  %v1566_v1 = vmul.f32 %v1518_v14, %v3704_v26  ;;  %v1775_v54 = vpop.f32.mrf.mxu0 }
 0x5db   :  { %v1522_v4 = vmul.f32 0.5, %v1521_v28 }
 0x5dc   :  { %v1812_v13 = vmax.f32 %v3838_v33, 0.0  ;;  %v1602_v17 = vmul.f32 %v3605_v21, %v1565_v39  ;;  %v1603_v32 = vmul.f32 %v3607_v11, %v1566_v1  ;;  %v2181_v33 = vld [vmem:[%s4225_s4 + $0x18] sm:$0xff] }
 0x5dd   :  { %v1523_v46 = vsub.f32 1.5, %v1522_v4 }
 0x5de   :  { %1834 = vadd.xlane.f32.xlu1 %v1812_v13  ;;  %v1639_v22 = vadd.f32 %v3610_v35, %v1602_v17  ;;  %v1640_v8 = vadd.f32 %v3614_v23, %v1603_v32 }
 0x5df   :  { %v2446_v9 = vpop.eup %2445  ;;  %v1524_v43 = vmul.f32 %v2444_v36, %v1523_v46  ;;  %v1710_v26 = vpop.f32.mrf.mxu3 }
 0x5e0   :  { %v1530_v52 = vmul.f32 %v2446_v9, %v1378_v24  ;;  %v1711_v47 = vadd.f32 %v1710_v26, %v3770_v7  ;;  %1733 = vmatmul.f32.gmra.mxu3 %v1639_v22  ;;  %1798 = vmatmul.f32.gmra.mxu0 %v1640_v8  ;;  %vm1536_vm5 = vweird.f32 %v2446_v9  ;;  %v2191_v8 = vld [vmem:[%s4225_s4 + $0x68] sm:$0xff]  ;;  %v2190_v26 = vld [vmem:[%s4225_s4 + $0x60] sm:$0xff] }
 0x5e1   :  { %v1528_v29 = vsel %vm1527_vm4, %v2444_v36, %v1524_v43  ;;  %vm1537_vm0 = vmor %vm1535_vm6, %vm1536_vm5 }
 0x5e2   :  { %v1531_v60 = vmul.f32 %v2446_v9, %v1530_v52  ;;  %v3850_v6 = vadd.f32 %v1775_v54, %v1711_v47  ;;  %v1567_v41 = vmul.f32 %v1528_v29, %v3722_v10  ;;  %v1568_v15 = vmul.f32 %v1528_v29, %v3726_v56  ;;  %v1778_v3 = vpop.f32.mrf.mxu0  ;;  %v2192_v54 = vld [vmem:[%s4225_s4 + $0x70] sm:$0xff] }
 0x5e4   :  { %v1532_v44 = vmul.f32 0.5, %v1531_v60  ;;  %v1813_v0 = vmax.f32 %v3850_v6, 0.0  ;;  %v1604_v20 = vmul.f32 %v3605_v21, %v1567_v41  ;;  %v1605_v57 = vmul.f32 %v3607_v11, %v1568_v15  ;;  %v2188_v60 = vld [vmem:[%s4225_s4 + $0x50] sm:$0xff] }
 0x5e6   :  { %v1533_v55 = vsub.f32 1.5, %v1532_v44  ;;  %1836 = vadd.xlane.f32.xlu2 %v1813_v0  ;;  %v1641_v31 = vadd.f32 %v3610_v35, %v1604_v20  ;;  %v1642_v2 = vadd.f32 %v3614_v23, %v1605_v57  ;;  %v2187_v44 = vld [vmem:[%s4225_s4 + $0x48] sm:$0xff] }
 0x5e7   :  { %v1713_v10 = vpop.f32.mrf.mxu3  ;;  %v1827_v25 = vpop.xlane.xlu0 %1826 }
 0x5e8   :  { %v1534_v53 = vmul.f32 %v2446_v9, %v1533_v55  ;;  %v1714_v56 = vadd.f32 %v1713_v10, %v3770_v7  ;;  %1736 = vmatmul.f32.gmra.mxu3 %v1641_v31  ;;  %1801 = vmatmul.f32.gmra.mxu0 %v1642_v2  ;;  %v1858_v59 = vmul.f32 %v1827_v25, %v2966_v51  ;;  %v2186_v55 = vld [vmem:[%s4225_s4 + $0x40] sm:$0xff] }
 0x5ea   :  { %v1538_v58 = vsel %vm1537_vm0, %v2446_v9, %v1534_v53  ;;  %v3863_v34 = vadd.f32 %v1778_v3, %v1714_v56  ;;  %v3867_v45 = vsub.f32 %v1808_v27, %v1858_v59  ;;  %v1781_v24 = vpop.f32.mrf.mxu0  ;;  %v2184_v53 = vld [vmem:[%s4225_s4 + $0x30] sm:$0xff]  ;;  %v2183_v59 = vld [vmem:[%s4225_s4 + $0x28] sm:$0xff] }
 0x5eb   :  { %v1569_v18 = vmul.f32 %v1538_v58, %v3747_v16  ;;  %v1570_v36 = vmul.f32 %v1538_v58, %v3751_v38 }
 0x5ec   :  { %v1814_v50 = vmax.f32 %v3863_v34, 0.0  ;;  %v1890_v48 = vmul.f32 %v3867_v45, %v3867_v45 }
 0x5ed   :  { %v1606_v49 = vmul.f32 %v3605_v21, %v1569_v18  ;;  %v1607_v42 = vmul.f32 %v3607_v11, %v1570_v36 }
 0x5ee   :  { %1838 = vadd.xlane.f32.xlu1 %v1814_v50  ;;  %1906 = vadd.xlane.f32.xlu0 %v1890_v48  ;;  %v2182_v48 = vld [vmem:[%s4225_s4 + $0x20] sm:$0xff] }
 0x5ef   :  { %v1643_v19 = vadd.f32 %v3610_v35, %v1606_v49  ;;  %v1644_v16 = vadd.f32 %v3614_v23, %v1607_v42  ;;  %v1829_v27 = vpop.xlane.xlu1 %1828 }
 0x5f0   :  { %v1716_v38 = vpop.f32.mrf.mxu3  ;;  %v1859_v30 = vmul.f32 %v1829_v27, %v2966_v51 }
 0x5f1   :  { %v1717_v12 = vadd.f32 %v1716_v38, %v3770_v7  ;;  %1739 = vmatmul.f32.gmra.mxu3 %v1643_v19  ;;  %1804 = vmatmul.f32.gmra.mxu0 %v1644_v16  ;;  %v2179_v38 = vld [vmem:[%s4225_s4 + $0x8] sm:$0xff] }
 0x5f2   :  { %v3884_v21 = vsub.f32 %v1809_v37, %v1859_v30  ;;  %v1784_v39 = vpop.f32.mrf.mxu0  ;;  %v2193_v37 = vld [vmem:[%s4225_s4 + $0x78] sm:$0xff] }
 0x5f3   :  { %v3886_v11 = vadd.f32 %v1781_v24, %v1717_v12  ;;  %2195 = vmatpush.msrb.mxu1 %v2193_v37  ;;  %v2180_v24 = vld [vmem:[%s4225_s4 + $0x10] sm:$0xff] }
 0x5f4   :  { %v1891_v28 = vmul.f32 %v3884_v21, %v3884_v21 }
 0x5f5   :  { %v1815_v35 = vmax.f32 %v3886_v11, 0.0  ;;  %2196 = vmatpush.msrb.mxu1 %v2192_v54 }
 0x5f6   :  { %1908 = vadd.xlane.f32.xlu2 %v1891_v28 }
 0x5f7   :  { %1840 = vadd.xlane.f32.xlu0 %v1815_v35  ;;  %2197 = vmatpush.msrb.mxu1 %v2191_v8 }
 0x5f8   :  { %v1719_v23 = vpop.f32.mrf.mxu3 }
 0x5f9   :  { %v1720_v14 = vadd.f32 %v1719_v23, %v3770_v7  ;;  %2198 = vmatpush.msrb.mxu1 %v2190_v26  ;;  %v2178_v23 = vld [vmem:[%s4225_s4] sm:$0xff] }
 0x5fa   :  { %v1787_v4 = vpop.f32.mrf.mxu0 }
 0x5fb   :  { %v3894_v1 = vadd.f32 %v1784_v39, %v1720_v14  ;;  %2199 = vmatpush.msrb.mxu1 %v2189_v40 }
 0x5fd   :  { %v1816_v61 = vmax.f32 %v3894_v1, 0.0  ;;  %2200 = vmatpush.msrb.mxu1 %v2188_v60 }
 0x5ff   :  { %1842 = vadd.xlane.f32.xlu2 %v1816_v61  ;;  %2201 = vmatpush.msrb.mxu1 %v2187_v44 }
 0x600   :  { %v1722_v46 = vpop.f32.mrf.mxu3 }
 0x601   :  { %v1723_v9 = vadd.f32 %v1722_v46, %v3770_v7  ;;  %2202 = vmatpush.msrb.mxu1 %v2186_v55 }
 0x603   :  { %v3923_v29 = vadd.f32 %v1787_v4, %v1723_v9  ;;  %2203 = vmatpush.msrb.mxu1 %v2185_v63 }
 0x605   :  { %v1817_v57 = vmax.f32 %v3923_v29, 0.0  ;;  %2204 = vmatpush.msrb.mxu1 %v2184_v53 }
 0x607   :  { %2205 = vmatpush.msrb.mxu1 %v2183_v59 }
 0x609   :  { %2206 = vmatpush.msrb.mxu1 %v2182_v48 }
 0x60b   :  { %2207 = vmatpush.msrb.mxu1 %v2181_v33 }
 0x60d   :  { %2208 = vmatpush.msrb.mxu1 %v2180_v24 }
 0x60f   :  { %2209 = vmatpush.msrb.mxu1 %v2179_v38  ;;  %v4038_v38 = vld [vmem:[#allocation7 + $0x10] ss:$0 sm:$0xff] }
 0x611   :  { %2210 = vmatpush.msrb.mxu1 %v2178_v23 }
 0x640   :  { %v1831_v17 = vpop.xlane.xlu2 %1830 }
 0x641   :  { %v1860_v32 = vmul.f32 %v1831_v17, %v2966_v51 }
 0x643   :  { %v3908_v22 = vsub.f32 %v1810_v5, %v1860_v32 }
 0x644   :  { %v1790_v52 = vpop.f32.mrf.mxu0 }
 0x645   :  { %v1892_v43 = vmul.f32 %v3908_v22, %v3908_v22 }
 0x647   :  { %1910 = vadd.xlane.f32.xlu1 %v1892_v43 }
 0x649   :  { %v1833_v5 = vpop.xlane.xlu0 %1832 }
 0x64a   :  { %v1861_v47 = vmul.f32 %v1833_v5, %v2966_v51  ;;  %v1725_v41 = vpop.f32.mrf.mxu3 }
 0x64b   :  { %v1726_v20 = vadd.f32 %v1725_v41, %v3770_v7 }
 0x64c   :  { %v3930_v15 = vsub.f32 %v1811_v62, %v1861_v47 }
 0x64d   :  { %v1793_v31 = vpop.f32.mrf.mxu0  ;;  %v3948_v10 = vadd.f32 %v1790_v52, %v1726_v20 }
 0x64e   :  { %v1893_v3 = vmul.f32 %v3930_v15, %v3930_v15 }
 0x64f   :  { %1844 = vadd.xlane.f32.xlu1 %v1817_v57  ;;  %v1818_v36 = vmax.f32 %v3948_v10, 0.0 }
 0x650   :  { %1912 = vadd.xlane.f32.xlu0 %v1893_v3 }
 0x651   :  { %v1835_v62 = vpop.xlane.xlu1 %1834 }
 0x652   :  { %v1862_v2 = vmul.f32 %v1835_v62, %v2966_v51 }
 0x653   :  { %v1728_v56 = vpop.f32.mrf.mxu3 }
 0x654   :  { %v3955_v25 = vsub.f32 %v1812_v13, %v1862_v2  ;;  %v1729_v58 = vadd.f32 %v1728_v56, %v3770_v7 }
 0x655   :  { %v1796_v16 = vpop.f32.mrf.mxu0 }
 0x656   :  { %v1894_v18 = vmul.f32 %v3955_v25, %v3955_v25  ;;  %v3973_v42 = vadd.f32 %v1793_v31, %v1729_v58 }
 0x658   :  { %1914 = vadd.xlane.f32.xlu2 %v1894_v18  ;;  %1846 = vadd.xlane.f32.xlu0 %v1818_v36  ;;  %v1819_v28 = vmax.f32 %v3973_v42, 0.0 }
 0x659   :  { %v1837_v13 = vpop.xlane.xlu2 %1836 }
 0x65a   :  { %v1863_v49 = vmul.f32 %v1837_v13, %v2966_v51 }
 0x65b   :  { %v1731_v19 = vpop.f32.mrf.mxu3 }
 0x65c   :  { %v3980_v27 = vsub.f32 %v1813_v0, %v1863_v49  ;;  %v1732_v30 = vadd.f32 %v1731_v19, %v3770_v7  ;;  %v4033_v19 = vld [vmem:[#allocation7 + $0x7] ss:$0 sm:$0xff] }
 0x65d   :  { %v1799_v32 = vpop.f32.mrf.mxu0 }
 0x65e   :  { %v1895_v12 = vmul.f32 %v3980_v27, %v3980_v27  ;;  %v3995_v39 = vadd.f32 %v1796_v16, %v1732_v30 }
 0x660   :  { %1916 = vadd.xlane.f32.xlu1 %v1895_v12  ;;  %1848 = vadd.xlane.f32.xlu2 %v1819_v28  ;;  %v1820_v8 = vmax.f32 %v3995_v39, 0.0 }
 0x661   :  { %v1839_v6 = vpop.xlane.xlu1 %1838  ;;  %v1907_v14 = vpop.xlane.xlu0 %1906 }
 0x662   :  { %v1864_v0 = vmul.f32 %v1839_v6, %v2966_v51  ;;  %v1938_v37 = vmul.f32 %v1907_v14, %v2966_v51 }
 0x663   :  { %v1734_v4 = vpop.f32.mrf.mxu3 }
 0x664   :  { %v4000_v54 = vsub.f32 %v1814_v50, %v1864_v0  ;;  %v1954_v17 = vadd.f32 1e-05, %v1938_v37  ;;  %v1735_v46 = vadd.f32 %v1734_v4, %v3770_v7 }
 0x665   :  { %v1802_v63 = vpop.f32.mrf.mxu0 }
 0x666   :  { %v1896_v9 = vmul.f32 %v4000_v54, %v4000_v54  ;;  %2447 = vrsqrt.f32 %v1954_v17  ;;  %v4008_v52 = vadd.f32 %v1799_v32, %v1735_v46  ;;  %vm1976_vm8 = vweird.f32 %v1954_v17 }
 0x668   :  { %1850 = vadd.xlane.f32.xlu1 %v1820_v8  ;;  %1918 = vadd.xlane.f32.xlu0 %v1896_v9  ;;  %v1821_v44 = vmax.f32 %v4008_v52, 0.0 }
 0x669   :  { %v1909_v43 = vpop.xlane.xlu2 %1908 }
 0x66a   :  { %v1841_v26 = vpop.xlane.xlu0 %1840  ;;  %v1939_v34 = vmul.f32 %v1909_v43, %v2966_v51 }
 0x66b   :  { %v1865_v50 = vmul.f32 %v1841_v26, %v2966_v51  ;;  %v1737_v40 = vpop.f32.mrf.mxu3 }
 0x66c   :  { %v2448_v5 = vpop.eup %2447  ;;  %v1955_v47 = vadd.f32 1e-05, %v1939_v34  ;;  %v1738_v20 = vadd.f32 %v1737_v40, %v3770_v7 }
 0x66d   :  { %v4014_v60 = vsub.f32 %v1815_v35, %v1865_v50  ;;  %v1971_v41 = vmul.f32 %v2448_v5, %v1954_v17  ;;  %vm1977_vm7 = vweird.f32 %v2448_v5 }
 0x66e   :  { %2449 = vrsqrt.f32 %v1955_v47  ;;  %v4023_v35 = vadd.f32 %v1802_v63, %v1738_v20  ;;  %vm1978_vm9 = vmor %vm1976_vm8, %vm1977_vm7  ;;  %v1805_v16 = vpop.f32.mrf.mxu0  ;;  %vm1986_vm11 = vweird.f32 %v1955_v47 }
 0x66f   :  { %v1897_v3 = vmul.f32 %v4014_v60, %v4014_v60  ;;  %v1972_v55 = vmul.f32 %v2448_v5, %v1971_v41 }
 0x670   :  { %1852 = vadd.xlane.f32.xlu0 %v1821_v44  ;;  %v1822_v13 = vmax.f32 %v4023_v35, 0.0 }
 0x671   :  { %1920 = vadd.xlane.f32.xlu2 %v1897_v3  ;;  %v1973_v62 = vmul.f32 0.5, %v1972_v55 }
 0x672   :  { %v1843_v31 = vpop.xlane.xlu2 %1842 }
 0x673   :  { %v1866_v11 = vmul.f32 %v1843_v31, %v2966_v51  ;;  %v1974_v2 = vsub.f32 1.5, %v1973_v62 }
 0x674   :  { %v1740_v53 = vpop.f32.mrf.mxu3  ;;  %v2450_v56 = vpop.eup %2449 }
 0x675   :  { %v4027_v59 = vsub.f32 %v1816_v61, %v1866_v11  ;;  %v1975_v58 = vmul.f32 %v2448_v5, %v1974_v2  ;;  %v1981_v18 = vmul.f32 %v2450_v56, %v1955_v47  ;;  %v1741_v48 = vadd.f32 %v1740_v53, %v3770_v7 }
 0x676   :  { %vm1987_vm10 = vweird.f32 %v2450_v56 }
 0x677   :  { %v1898_v33 = vmul.f32 %v4027_v59, %v4027_v59  ;;  %v1979_v49 = vsel %vm1978_vm9, %v2448_v5, %v1975_v58  ;;  %v1982_v24 = vmul.f32 %v2450_v56, %v1981_v18  ;;  %v4041_v30 = vadd.f32 %v1805_v16, %v1741_v48  ;;  %vm1988_vm12 = vmor %vm1986_vm11, %vm1987_vm10 }
 0x678   :  { %v2130_v1 = vmul.f32 %v1979_v49, %v3867_v45 }
 0x679   :  { %1922 = vadd.xlane.f32.xlu1 %v1898_v33  ;;  %1854 = vadd.xlane.f32.xlu2 %v1822_v13  ;;  %v1983_v61 = vmul.f32 0.5, %v1982_v24  ;;  %v1823_v0 = vmax.f32 %v4041_v30, 0.0 }
 0x67a   :  { %v2146_v7 = vmul.f32 %v2130_v1, %v4033_v19 }
 0x67b   :  { %v1984_v12 = vsub.f32 1.5, %v1983_v61 }
 0x67c   :  { %v2162_v23 = vadd.f32 %v2146_v7, %v4038_v38 }
 0x67d   :  { %v1985_v6 = vmul.f32 %v2450_v56, %v1984_v12 }
 0x67e   :  { %2211 = vmatmul.f32.vlgmr.msrb.gmra.mxu1 %v2162_v23 }
 0x67f   :  { %v1989_v14 = vsel %vm1988_vm12, %v2450_v56, %v1985_v6 }
 0x680   :  { %v2131_v45 = vmul.f32 %v1989_v14, %v3884_v21 }
 0x681   :  { %1856 = vadd.xlane.f32.xlu1 %v1823_v0 }
 0x682   :  { %v2147_v37 = vmul.f32 %v2131_v45, %v4033_v19 }
 0x684   :  { %v2163_v4 = vadd.f32 %v2147_v37, %v4038_v38 }
 0x686   :  { %2214 = vmatmul.f32.gmra.mxu1 %v2163_v4 }
 0x6ba   :  { %v1911_v17 = vpop.xlane.xlu1 %1910 }
 0x6bb   :  { %v1940_v32 = vmul.f32 %v1911_v17, %v2966_v51 }
 0x6bd   :  { %v1956_v46 = vadd.f32 1e-05, %v1940_v32 }
 0x6bf   :  { %2451 = vrsqrt.f32 %v1956_v46  ;;  %vm1996_vm14 = vweird.f32 %v1956_v46 }
 0x6c2   :  { %v1845_v9 = vpop.xlane.xlu1 %1844 }
 0x6c3   :  { %v1913_v43 = vpop.xlane.xlu0 %1912  ;;  %v1867_v26 = vmul.f32 %v1845_v9, %v2966_v51 }
 0x6c4   :  { %v1941_v34 = vmul.f32 %v1913_v43, %v2966_v51 }
 0x6c5   :  { %v2452_v50 = vpop.eup %2451  ;;  %v4055_v21 = vsub.f32 %v1817_v57, %v1867_v26 }
 0x6c6   :  { %v1957_v40 = vadd.f32 1e-05, %v1941_v34  ;;  %v1991_v5 = vmul.f32 %v2452_v50, %v1956_v46  ;;  %vm1997_vm13 = vweird.f32 %v2452_v50 }
 0x6c7   :  { %v1899_v47 = vmul.f32 %v4055_v21, %v4055_v21  ;;  %vm1998_vm15 = vmor %vm1996_vm14, %vm1997_vm13 }
 0x6c8   :  { %2453 = vrsqrt.f32 %v1957_v40  ;;  %v1992_v41 = vmul.f32 %v2452_v50, %v1991_v5  ;;  %vm2006_vm2 = vweird.f32 %v1957_v40 }
 0x6c9   :  { %1924 = vadd.xlane.f32.xlu0 %v1899_v47 }
 0x6ca   :  { %v1993_v20 = vmul.f32 0.5, %v1992_v41 }
 0x6cb   :  { %v1915_v3 = vpop.xlane.xlu2 %1914  ;;  %v1847_v55 = vpop.xlane.xlu0 %1846 }
 0x6cc   :  { %v1942_v63 = vmul.f32 %v1915_v3, %v2966_v51  ;;  %v1868_v62 = vmul.f32 %v1847_v55, %v2966_v51  ;;  %v1994_v31 = vsub.f32 1.5, %v1993_v20 }
 0x6ce   :  { %v2454_v29 = vpop.eup %2453  ;;  %v1958_v57 = vadd.f32 1e-05, %v1942_v63  ;;  %v4063_v11 = vsub.f32 %v1818_v36, %v1868_v62  ;;  %v1995_v2 = vmul.f32 %v2452_v50, %v1994_v31 }
 0x6cf   :  { %v2001_v53 = vmul.f32 %v2454_v29, %v1957_v40  ;;  %vm2007_vm1 = vweird.f32 %v2454_v29 }
 0x6d0   :  { %2455 = vrsqrt.f32 %v1958_v57  ;;  %v1900_v56 = vmul.f32 %v4063_v11, %v4063_v11  ;;  %v1999_v18 = vsel %vm1998_vm15, %v2452_v50, %v1995_v2  ;;  %vm2008_vm3 = vmor %vm2006_vm2, %vm2007_vm1  ;;  %vm2016_vm5 = vweird.f32 %v1958_v57 }
 0x6d1   :  { %v2002_v58 = vmul.f32 %v2454_v29, %v2001_v53  ;;  %v2132_v48 = vmul.f32 %v1999_v18, %v3908_v22 }
 0x6d2   :  { %1926 = vadd.xlane.f32.xlu2 %v1900_v56 }
 0x6d3   :  { %v2003_v33 = vmul.f32 0.5, %v2002_v58  ;;  %v1917_v49 = vpop.xlane.xlu1 %1916  ;;  %v1849_v24 = vpop.xlane.xlu2 %1848  ;;  %v2148_v1 = vmul.f32 %v2132_v48, %v4033_v19 }
 0x6d4   :  { %v1943_v10 = vmul.f32 %v1917_v49, %v2966_v51  ;;  %v1869_v36 = vmul.f32 %v1849_v24, %v2966_v51 }
 0x6d5   :  { %v2004_v61 = vsub.f32 1.5, %v2003_v33  ;;  %v2164_v23 = vadd.f32 %v2148_v1, %v4038_v38 }
 0x6d6   :  { %v2456_v16 = vpop.eup %2455  ;;  %v1959_v7 = vadd.f32 1e-05, %v1943_v10  ;;  %v4073_v12 = vsub.f32 %v1819_v28, %v1869_v36 }
 0x6d7   :  { %v2005_v22 = vmul.f32 %v2454_v29, %v2004_v61  ;;  %v2011_v6 = vmul.f32 %v2456_v16, %v1958_v57  ;;  %2217 = vmatmul.f32.gmra.mxu1 %v2164_v23  ;;  %vm2017_vm4 = vweird.f32 %v2456_v16 }
 0x6d8   :  { %2457 = vrsqrt.f32 %v1959_v7  ;;  %v1901_v14 = vmul.f32 %v4073_v12, %v4073_v12  ;;  %vm2018_vm6 = vmor %vm2016_vm5, %vm2017_vm4  ;;  %vm2026_vm7 = vweird.f32 %v1959_v7 }
 0x6d9   :  { %v2012_v45 = vmul.f32 %v2456_v16, %v2011_v6  ;;  %v2009_v37 = vsel %vm2008_vm3, %v2454_v29, %v2005_v22 }
 0x6da   :  { %1928 = vadd.xlane.f32.xlu0 %v1901_v14  ;;  %v2133_v4 = vmul.f32 %v2009_v37, %v3930_v15 }
 0x6db   :  { %v2013_v17 = vmul.f32 0.5, %v2012_v45  ;;  %v1851_v42 = vpop.xlane.xlu1 %1850  ;;  %v1919_v28 = vpop.xlane.xlu0 %1918 }
 0x6dc   :  { %v1870_v32 = vmul.f32 %v1851_v42, %v2966_v51  ;;  %v1944_v46 = vmul.f32 %v1919_v28, %v2966_v51  ;;  %v2149_v9 = vmul.f32 %v2133_v4, %v4033_v19 }
 0x6dd   :  { %v2014_v43 = vsub.f32 1.5, %v2013_v17 }
 0x6de   :  { %v2458_v26 = vpop.eup %2457  ;;  %v4084_v34 = vsub.f32 %v1820_v8, %v1870_v32  ;;  %v1960_v50 = vadd.f32 1e-05, %v1944_v46  ;;  %v2165_v40 = vadd.f32 %v2149_v9, %v4038_v38 }
 0x6df   :  { %v2015_v15 = vmul.f32 %v2456_v16, %v2014_v43  ;;  %v2021_v5 = vmul.f32 %v2458_v26, %v1959_v7  ;;  %vm2027_vm0 = vweird.f32 %v2458_v26 }
 0x6e0   :  { %2459 = vrsqrt.f32 %v1960_v50  ;;  %2220 = vmatmul.f32.gmra.mxu1 %v2165_v40  ;;  %v1902_v47 = vmul.f32 %v4084_v34, %v4084_v34  ;;  %vm2028_vm8 = vmor %vm2026_vm7, %vm2027_vm0  ;;  %vm2036_vm10 = vweird.f32 %v1960_v50  ;;  %v4121_v40 = vld [vmem:[#allocation7 + $0x11] ss:$0 sm:$0xff] }
 0x6e1   :  { %v2022_v41 = vmul.f32 %v2458_v26, %v2021_v5  ;;  %v2019_v20 = vsel %vm2018_vm6, %v2456_v16, %v2015_v15 }
 0x6e2   :  { %1930 = vadd.xlane.f32.xlu1 %v1902_v47  ;;  %v2134_v3 = vmul.f32 %v2019_v20, %v3955_v25 }
 0x6e3   :  { %v2023_v39 = vmul.f32 0.5, %v2022_v41  ;;  %v1853_v8 = vpop.xlane.xlu0 %1852 }
 0x6e4   :  { %v1921_v55 = vpop.xlane.xlu2 %1920  ;;  %v1871_v63 = vmul.f32 %v1853_v8, %v2966_v51  ;;  %v2150_v62 = vmul.f32 %v2134_v3, %v4033_v19 }
 0x6e5   :  { %v2024_v31 = vsub.f32 1.5, %v2023_v39  ;;  %v1945_v29 = vmul.f32 %v1921_v55, %v2966_v51 }
 0x6e6   :  { %v2460_v57 = vpop.eup %2459  ;;  %v4095_v2 = vsub.f32 %v1821_v44, %v1871_v63  ;;  %v2166_v53 = vadd.f32 %v2150_v62, %v4038_v38 }
 0x6e7   :  { %v2025_v56 = vmul.f32 %v2458_v26, %v2024_v31  ;;  %v2031_v25 = vmul.f32 %v2460_v57, %v1960_v50  ;;  %v1961_v58 = vadd.f32 1e-05, %v1945_v29  ;;  %vm2037_vm9 = vweird.f32 %v2460_v57 }
 0x6e8   :  { %2223 = vmatmul.f32.gmra.mxu1 %v2166_v53  ;;  %v1903_v18 = vmul.f32 %v4095_v2, %v4095_v2  ;;  %vm2038_vm11 = vmor %vm2036_vm10, %vm2037_vm9 }
 0x6e9   :  { %v2032_v48 = vmul.f32 %v2460_v57, %v2031_v25  ;;  %2461 = vrsqrt.f32 %v1961_v58  ;;  %v2029_v33 = vsel %vm2028_vm8, %v2458_v26, %v2025_v56  ;;  %vm2046_vm13 = vweird.f32 %v1961_v58 }
 0x6ea   :  { %1932 = vadd.xlane.f32.xlu2 %v1903_v18  ;;  %v2135_v49 = vmul.f32 %v2029_v33, %v3980_v27 }
 0x6eb   :  { %v2033_v52 = vmul.f32 0.5, %v2032_v48 }
 0x6ec   :  { %v1923_v44 = vpop.xlane.xlu1 %1922  ;;  %v1855_v24 = vpop.xlane.xlu2 %1854  ;;  %v2151_v10 = vmul.f32 %v2135_v49, %v4033_v19 }
 0x6ed   :  { %v2034_v36 = vsub.f32 1.5, %v2033_v52  ;;  %v1946_v1 = vmul.f32 %v1923_v44, %v2966_v51  ;;  %v1872_v61 = vmul.f32 %v1855_v24, %v2966_v51 }
 0x6ee   :  { %v2167_v16 = vadd.f32 %v2151_v10, %v4038_v38 }
 0x6ef   :  { %v2462_v7 = vpop.eup %2461  ;;  %v2035_v23 = vmul.f32 %v2460_v57, %v2034_v36  ;;  %v1962_v22 = vadd.f32 1e-05, %v1946_v1  ;;  %v4107_v27 = vsub.f32 %v1822_v13, %v1872_v61 }
 0x6f0   :  { %v2041_v6 = vmul.f32 %v2462_v7, %v1961_v58  ;;  %2226 = vmatmul.f32.gmra.mxu1 %v2167_v16  ;;  %vm2047_vm12 = vweird.f32 %v2462_v7 }
 0x6f1   :  { %2463 = vrsqrt.f32 %v1962_v22  ;;  %v1904_v14 = vmul.f32 %v4107_v27, %v4107_v27  ;;  %v2039_v45 = vsel %vm2038_vm11, %v2460_v57, %v2035_v23  ;;  %vm2048_vm14 = vmor %vm2046_vm13, %vm2047_vm12  ;;  %vm2056_vm1 = vweird.f32 %v1962_v22 }
 0x6f2   :  { %v2042_v37 = vmul.f32 %v2462_v7, %v2041_v6  ;;  %v2136_v4 = vmul.f32 %v2039_v45, %v4000_v54 }
 0x6f3   :  { %1934 = vadd.xlane.f32.xlu0 %v1904_v14 }
 0x6f4   :  { %v2043_v17 = vmul.f32 0.5, %v2042_v37  ;;  %v1857_v42 = vpop.xlane.xlu1 %1856  ;;  %v2152_v28 = vmul.f32 %v2136_v4, %v4033_v19 }
 0x6f5   :  { %v1873_v35 = vmul.f32 %v1857_v42, %v2966_v51 }
 0x6f6   :  { %v2044_v13 = vsub.f32 1.5, %v2043_v17  ;;  %v2168_v32 = vadd.f32 %v2152_v28, %v4038_v38 }
 0x6f7   :  { %v2464_v46 = vpop.eup %2463  ;;  %v4117_v9 = vsub.f32 %v1823_v0, %v1873_v35 }
 0x6f8   :  { %v2045_v43 = vmul.f32 %v2462_v7, %v2044_v13  ;;  %v2051_v26 = vmul.f32 %v2464_v46, %v1962_v22  ;;  %2229 = vmatmul.f32.gmra.mxu1 %v2168_v32  ;;  %vm2057_vm15 = vweird.f32 %v2464_v46 }
 0x6f9   :  { %v1905_v54 = vmul.f32 %v4117_v9, %v4117_v9  ;;  %vm2058_vm2 = vmor %vm2056_vm1, %vm2057_vm15 }
 0x6fa   :  { %v2052_v50 = vmul.f32 %v2464_v46, %v2051_v26  ;;  %v2049_v15 = vsel %vm2048_vm14, %v2462_v7, %v2045_v43 }
 0x6fb   :  { %1936 = vadd.xlane.f32.xlu1 %v1905_v54  ;;  %v2137_v5 = vmul.f32 %v2049_v15, %v4014_v60  ;;  %v2212_v41 = vpop.f32.mrf.mxu1 }
 0x6fc   :  { %v2053_v47 = vmul.f32 0.5, %v2052_v50  ;;  %v2213_v30 = vadd.f32 %v2212_v41, %v4121_v40 }
 0x6fd   :  { %v2153_v0 = vmul.f32 %v2137_v5, %v4033_v19 }
 0x6fe   :  { %v2054_v20 = vsub.f32 1.5, %v2053_v47  ;;  %2260 = vst [vmem:[%s4227_s6] sm:$0xff] %v2213_v30 }
 0x6ff   :  { %v2169_v3 = vadd.f32 %v2153_v0, %v4038_v38 }
 0x700   :  { %v2055_v39 = vmul.f32 %v2464_v46, %v2054_v20 }
 0x701   :  { %2232 = vmatmul.f32.gmra.mxu1 %v2169_v3 }
 0x702   :  { %v2059_v8 = vsel %vm2058_vm2, %v2464_v46, %v2055_v39 }
 0x703   :  { %v2138_v60 = vmul.f32 %v2059_v8, %v4027_v59  ;;  %v2215_v55 = vpop.f32.mrf.mxu1 }
 0x704   :  { %v2216_v63 = vadd.f32 %v2215_v55, %v4121_v40 }
 0x705   :  { %v2154_v62 = vmul.f32 %v2138_v60, %v4033_v19 }
 0x706   :  { %2261 = vst [vmem:[%s4227_s6 + $0x8] sm:$0xff] %v2216_v63 }
 0x707   :  { %v2170_v31 = vadd.f32 %v2154_v62, %v4038_v38 }
 0x709   :  { %2235 = vmatmul.f32.gmra.mxu1 %v2170_v31 }
 0x73c   :  { %v1925_v29 = vpop.xlane.xlu0 %1924 }
 0x73d   :  { %v1947_v57 = vmul.f32 %v1925_v29, %v2966_v51 }
 0x73f   :  { %v1963_v53 = vadd.f32 1e-05, %v1947_v57 }
 0x741   :  { %2465 = vrsqrt.f32 %v1963_v53  ;;  %vm2066_vm4 = vweird.f32 %v1963_v53 }
 0x745   :  { %v1927_v56 = vpop.xlane.xlu2 %1926 }
 0x746   :  { %v1948_v59 = vmul.f32 %v1927_v56, %v2966_v51 }
 0x747   :  { %v2466_v25 = vpop.eup %2465 }
 0x748   :  { %v1964_v58 = vadd.f32 1e-05, %v1948_v59  ;;  %v2061_v18 = vmul.f32 %v2466_v25, %v1963_v53  ;;  %vm2067_vm3 = vweird.f32 %v2466_v25 }
 0x749   :  { %vm2068_vm5 = vmor %vm2066_vm4, %vm2067_vm3 }
 0x74a   :  { %2467 = vrsqrt.f32 %v1964_v58  ;;  %v2062_v48 = vmul.f32 %v2466_v25, %v2061_v18  ;;  %vm2076_vm0 = vweird.f32 %v1964_v58 }
 0x74c   :  { %v2063_v33 = vmul.f32 0.5, %v2062_v48 }
 0x74d   :  { %v1929_v49 = vpop.xlane.xlu0 %1928 }
 0x74e   :  { %v1949_v52 = vmul.f32 %v1929_v49, %v2966_v51  ;;  %v2064_v44 = vsub.f32 1.5, %v2063_v33 }
 0x750   :  { %v2468_v24 = vpop.eup %2467  ;;  %v1965_v10 = vadd.f32 1e-05, %v1949_v52  ;;  %v2065_v36 = vmul.f32 %v2466_v25, %v2064_v44 }
 0x751   :  { %v2071_v1 = vmul.f32 %v2468_v24, %v1964_v58  ;;  %vm2077_vm6 = vweird.f32 %v2468_v24 }
 0x752   :  { %2469 = vrsqrt.f32 %v1965_v10  ;;  %v2069_v16 = vsel %vm2068_vm5, %v2466_v25, %v2065_v36  ;;  %vm2078_vm7 = vmor %vm2076_vm0, %vm2077_vm6  ;;  %vm2086_vm9 = vweird.f32 %v1965_v10 }
 0x753   :  { %v2072_v61 = vmul.f32 %v2468_v24, %v2071_v1  ;;  %v2139_v7 = vmul.f32 %v2069_v16, %v4055_v21 }
 0x754   :  { %v2218_v6 = vpop.f32.mrf.mxu1 }
 0x755   :  { %v2073_v23 = vmul.f32 0.5, %v2072_v61  ;;  %v1931_v22 = vpop.xlane.xlu1 %1930  ;;  %v2219_v45 = vadd.f32 %v2218_v6, %v4121_v40  ;;  %v2155_v37 = vmul.f32 %v2139_v7, %v4033_v19 }
 0x756   :  { %v1950_v14 = vmul.f32 %v1931_v22, %v2966_v51 }
 0x757   :  { %v2074_v4 = vsub.f32 1.5, %v2073_v23  ;;  %2262 = vst [vmem:[%s4227_s6 + $0x10] sm:$0xff] %v2219_v45  ;;  %v2171_v28 = vadd.f32 %v2155_v37, %v4038_v38 }
 0x758   :  { %v2470_v17 = vpop.eup %2469  ;;  %v1966_v42 = vadd.f32 1e-05, %v1950_v14 }
 0x759   :  { %v2075_v21 = vmul.f32 %v2468_v24, %v2074_v4  ;;  %v2081_v35 = vmul.f32 %v2470_v17, %v1965_v10  ;;  %2238 = vmatmul.f32.gmra.mxu1 %v2171_v28  ;;  %vm2087_vm8 = vweird.f32 %v2470_v17 }
 0x75a   :  { %2471 = vrsqrt.f32 %v1966_v42  ;;  %vm2088_vm10 = vmor %vm2086_vm9, %vm2087_vm8  ;;  %vm2096_vm12 = vweird.f32 %v1966_v42 }
 0x75b   :  { %v2082_v13 = vmul.f32 %v2470_v17, %v2081_v35  ;;  %v2079_v32 = vsel %vm2078_vm7, %v2468_v24, %v2075_v21 }
 0x75c   :  { %v2140_v46 = vmul.f32 %v2079_v32, %v4063_v11 }
 0x75d   :  { %v2083_v43 = vmul.f32 0.5, %v2082_v13  ;;  %v2221_v26 = vpop.f32.mrf.mxu1  ;;  %v1933_v54 = vpop.xlane.xlu2 %1932 }
 0x75e   :  { %v2222_v50 = vadd.f32 %v2221_v26, %v4121_v40  ;;  %v1951_v15 = vmul.f32 %v1933_v54, %v2966_v51  ;;  %v2156_v5 = vmul.f32 %v2140_v46, %v4033_v19 }
 0x75f   :  { %v2084_v47 = vsub.f32 1.5, %v2083_v43 }
 0x760   :  { %v2472_v41 = vpop.eup %2471  ;;  %2263 = vst [vmem:[%s4227_s6 + $0x18] sm:$0xff] %v2222_v50  ;;  %v1967_v30 = vadd.f32 1e-05, %v1951_v15  ;;  %v2172_v0 = vadd.f32 %v2156_v5, %v4038_v38 }
 0x761   :  { %v2085_v11 = vmul.f32 %v2470_v17, %v2084_v47  ;;  %v2091_v20 = vmul.f32 %v2472_v41, %v1966_v42  ;;  %vm2097_vm11 = vweird.f32 %v2472_v41 }
 0x762   :  { %2473 = vrsqrt.f32 %v1967_v30  ;;  %2241 = vmatmul.f32.gmra.mxu1 %v2172_v0  ;;  %vm2098_vm13 = vmor %vm2096_vm12, %vm2097_vm11  ;;  %vm2106_vm15 = vweird.f32 %v1967_v30 }
 0x763   :  { %v2092_v3 = vmul.f32 %v2472_v41, %v2091_v20  ;;  %v2089_v39 = vsel %vm2088_vm10, %v2470_v17, %v2085_v11 }
 0x764   :  { %v2141_v8 = vmul.f32 %v2089_v39, %v4073_v12 }
 0x765   :  { %v2093_v60 = vmul.f32 0.5, %v2092_v3  ;;  %v2224_v55 = vpop.f32.mrf.mxu1 }
 0x766   :  { %v2225_v63 = vadd.f32 %v2224_v55, %v4121_v40  ;;  %v1935_v62 = vpop.xlane.xlu0 %1934  ;;  %v2157_v31 = vmul.f32 %v2141_v8, %v4033_v19 }
 0x767   :  { %v2094_v29 = vsub.f32 1.5, %v2093_v60  ;;  %v1952_v57 = vmul.f32 %v1935_v62, %v2966_v51 }
 0x768   :  { %v2474_v53 = vpop.eup %2473  ;;  %2264 = vst [vmem:[%s4227_s6 + $0x20] sm:$0xff] %v2225_v63  ;;  %v2173_v56 = vadd.f32 %v2157_v31, %v4038_v38 }
 0x769   :  { %v2095_v59 = vmul.f32 %v2472_v41, %v2094_v29  ;;  %v2101_v12 = vmul.f32 %v2474_v53, %v1967_v30  ;;  %v1968_v25 = vadd.f32 1e-05, %v1952_v57  ;;  %vm2107_vm14 = vweird.f32 %v2474_v53 }
 0x76a   :  { %2244 = vmatmul.f32.gmra.mxu1 %v2173_v56  ;;  %vm2108_vm1 = vmor %vm2106_vm15, %vm2107_vm14 }
 0x76b   :  { %v2102_v58 = vmul.f32 %v2474_v53, %v2101_v12  ;;  %2475 = vrsqrt.f32 %v1968_v25  ;;  %v2099_v18 = vsel %vm2098_vm13, %v2472_v41, %v2095_v59  ;;  %vm2116_vm3 = vweird.f32 %v1968_v25 }
 0x76c   :  { %v2142_v48 = vmul.f32 %v2099_v18, %v4084_v34 }
 0x76d   :  { %v2103_v33 = vmul.f32 0.5, %v2102_v58  ;;  %v2227_v49 = vpop.f32.mrf.mxu1 }
 0x76e   :  { %v1937_v52 = vpop.xlane.xlu1 %1936  ;;  %v2228_v44 = vadd.f32 %v2227_v49, %v4121_v40  ;;  %v2158_v24 = vmul.f32 %v2142_v48, %v4033_v19 }
 0x76f   :  { %v2104_v10 = vsub.f32 1.5, %v2103_v33  ;;  %v1953_v36 = vmul.f32 %v1937_v52, %v2966_v51 }
 0x770   :  { %2265 = vst [vmem:[%s4227_s6 + $0x28] sm:$0xff] %v2228_v44  ;;  %v2174_v1 = vadd.f32 %v2158_v24, %v4038_v38 }
 0x771   :  { %v2476_v61 = vpop.eup %2475  ;;  %v2105_v16 = vmul.f32 %v2474_v53, %v2104_v10  ;;  %v1969_v34 = vadd.f32 1e-05, %v1953_v36 }
 0x772   :  { %v2111_v7 = vmul.f32 %v2476_v61, %v1968_v25  ;;  %2247 = vmatmul.f32.gmra.mxu1 %v2174_v1  ;;  %vm2117_vm2 = vweird.f32 %v2476_v61 }
 0x773   :  { %2477 = vrsqrt.f32 %v1969_v34  ;;  %v2109_v23 = vsel %vm2108_vm1, %v2474_v53, %v2105_v16  ;;  %vm2118_vm4 = vmor %vm2116_vm3, %vm2117_vm2  ;;  %vm2126_vm6 = vweird.f32 %v1969_v34 }
 0x774   :  { %v2112_v22 = vmul.f32 %v2476_v61, %v2111_v7  ;;  %v2143_v6 = vmul.f32 %v2109_v23, %v4095_v2 }
 0x775   :  { %v2230_v14 = vpop.f32.mrf.mxu1 }
 0x776   :  { %v2113_v51 = vmul.f32 0.5, %v2112_v22  ;;  %v2231_v45 = vadd.f32 %v2230_v14, %v4121_v40  ;;  %v2159_v37 = vmul.f32 %v2143_v6, %v4033_v19 }
 0x778   :  { %v2114_v4 = vsub.f32 1.5, %v2113_v51  ;;  %2266 = vst [vmem:[%s4227_s6 + $0x30] sm:$0xff] %v2231_v45  ;;  %v2175_v17 = vadd.f32 %v2159_v37, %v4038_v38 }
 0x779   :  { %v2478_v42 = vpop.eup %2477 }
 0x77a   :  { %v2115_v28 = vmul.f32 %v2476_v61, %v2114_v4  ;;  %v2121_v21 = vmul.f32 %v2478_v42, %v1969_v34  ;;  %2250 = vmatmul.f32.gmra.mxu1 %v2175_v17  ;;  %vm2127_vm5 = vweird.f32 %v2478_v42 }
 0x77b   :  { %vm2128_vm0 = vmor %vm2126_vm6, %vm2127_vm5 }
 0x77c   :  { %v2122_v2 = vmul.f32 %v2478_v42, %v2121_v21  ;;  %v2119_v35 = vsel %vm2118_vm4, %v2476_v61, %v2115_v28 }
 0x77d   :  { %v2144_v13 = vmul.f32 %v2119_v35, %v4107_v27 }
 0x77e   :  { %v2123_v32 = vmul.f32 0.5, %v2122_v2  ;;  %v2233_v46 = vpop.f32.mrf.mxu1 }
 0x77f   :  { %v2234_v43 = vadd.f32 %v2233_v46, %v4121_v40  ;;  %v2160_v26 = vmul.f32 %v2144_v13, %v4033_v19 }
 0x780   :  { %v2124_v54 = vsub.f32 1.5, %v2123_v32 }
 0x781   :  { %2267 = vst [vmem:[%s4227_s6 + $0x38] sm:$0xff] %v2234_v43  ;;  %v2176_v50 = vadd.f32 %v2160_v26, %v4038_v38 }
 0x782   :  { %v2125_v15 = vmul.f32 %v2478_v42, %v2124_v54 }
 0x783   :  { %2253 = vmatmul.f32.gmra.mxu1 %v2176_v50 }
 0x784   :  { %v2129_v5 = vsel %vm2128_vm0, %v2478_v42, %v2125_v15 }
 0x785   :  { %v2145_v27 = vmul.f32 %v2129_v5, %v4117_v9 }
 0x786   :  { %v2236_v47 = vpop.f32.mrf.mxu1 }
 0x787   :  { %v2237_v41 = vadd.f32 %v2236_v47, %v4121_v40  ;;  %v2161_v30 = vmul.f32 %v2145_v27, %v4033_v19 }
 0x789   :  { %2268 = vst [vmem:[%s4227_s6 + $0x40] sm:$0xff] %v2237_v41  ;;  %v2177_v0 = vadd.f32 %v2161_v30, %v4038_v38 }
 0x78b   :  { %2256 = vmatmul.f32.gmra.mxu1 %v2177_v0 }
 0x7d6   :  { %v2239_v11 = vpop.f32.mrf.mxu1 }
 0x7d7   :  { %v2240_v20 = vadd.f32 %v2239_v11, %v4121_v40 }
 0x7d9   :  { %2269 = vst [vmem:[%s4227_s6 + $0x48] sm:$0xff] %v2240_v20 }
 0x7df   :  { %v2242_v9 = vpop.f32.mrf.mxu1 }
 0x7e0   :  { %v2243_v3 = vadd.f32 %v2242_v9, %v4121_v40 }
 0x7e2   :  { %2270 = vst [vmem:[%s4227_s6 + $0x50] sm:$0xff] %v2243_v3 }
 0x7e7   :  { %v2245_v19 = vpop.f32.mrf.mxu1 }
 0x7e8   :  { %v2246_v39 = vadd.f32 %v2245_v19, %v4121_v40 }
 0x7ea   :  { %2271 = vst [vmem:[%s4227_s6 + $0x58] sm:$0xff] %v2246_v39 }
 0x7ef   :  { %v2248_v38 = vpop.f32.mrf.mxu1 }
 0x7f0   :  { %v2249_v8 = vadd.f32 %v2248_v38, %v4121_v40 }
 0x7f2   :  { %2272 = vst [vmem:[%s4227_s6 + $0x60] sm:$0xff] %v2249_v8 }
 0x7f7   :  { %v2251_v60 = vpop.f32.mrf.mxu1 }
 0x7f8   :  { %v2252_v55 = vadd.f32 %v2251_v60, %v4121_v40 }
 0x7fa   :  { %2273 = vst [vmem:[%s4227_s6 + $0x68] sm:$0xff] %v2252_v55 }
 0x800   :  { %v2254_v63 = vpop.f32.mrf.mxu1 }
 0x801   :  { %v2255_v62 = vadd.f32 %v2254_v63, %v4121_v40 }
 0x803   :  { %2274 = vst [vmem:[%s4227_s6 + $0x70] sm:$0xff] %v2255_v62 }
 0x808   :  { %v2257_v31 = vpop.f32.mrf.mxu1 }
 0x809   :  { %v2258_v29 = vadd.f32 %v2257_v31, %v4121_v40 }
 0x80b   :  { %2275 = vst [vmem:[%s4227_s6 + $0x78] sm:$0xff] %v2258_v29 }
 0x80c   :  { %2280 = vsyncpa [#allocation3], 1 }
 0x80d   :  { %2281 = vsyncpa [#allocation5], 1 }
 0x80e   :  { %2282 = vsyncpa [#allocation8], 1 }

</bundles_post_ra>
